<compile_context>
chip_gen: v6e
topology: v6e:2x2x1
jax: 0.10.0
libtpu: 0.0.40
codegen_flags: <defaults>
</compile_context>

<pallas_src>
import functools

import numpy as np
import jax
import jax.numpy as jnp
from jax.experimental import pallas as pl
from jax.experimental.pallas import tpu as pltpu

NDF = 8            # opt.ndf (small, synthetic)
NUM_CLASS = 10
LRELU_SLOPE = 0.2
BN_EPS = 1e-5

_VMEM = pl.BlockSpec(memory_space=pltpu.MemorySpace.VMEM)


# --------------------------------------------------------------------------
# Pallas kernels (lane-dense transposed layout: activations are (C, M))
# --------------------------------------------------------------------------
def _conv_lrelu_T_kernel(w_ref, cols_ref, o_ref, *, slope):
    """Layer 1: y^T = leaky_relu(W^T @ cols^T); bf16 out.  out: (Cout, M)."""
    y = jnp.dot(w_ref[...], cols_ref[...], preferred_element_type=jnp.float32)
    o_ref[...] = jnp.where(y >= 0.0, y, slope * y).astype(o_ref.dtype)


def _conv_bn_lrelu_T_kernel(w_ref, cols_ref, g_ref, b_ref, o_ref, *, eps, slope):
    """Layer 2: conv + BatchNorm2d(batch stats) + LeakyReLU, transposed; bf16 out.

    w_ref: (Cout, K), cols_ref: (K, M), g/b: (Cout, 1), out: (Cout, M).
    BN statistics are per-channel reductions over the lane axis (M = N*Ho*Wo).
    """
    y = jnp.dot(w_ref[...], cols_ref[...], preferred_element_type=jnp.float32)
    inv_m = 1.0 / y.shape[1]
    mean = jnp.sum(y, axis=1, keepdims=True) * inv_m
    var = jnp.maximum(jnp.sum(y * y, axis=1, keepdims=True) * inv_m - mean * mean, 0.0)
    y = (y - mean) * jax.lax.rsqrt(var + eps) * g_ref[...] + b_ref[...]
    o_ref[...] = jnp.where(y >= 0.0, y, slope * y).astype(o_ref.dtype)


def _l34_linear_kernel(w3_ref, cols3_ref, g3_ref, b3_ref,
                       w4_ref, sel_ref, g4_ref, b4_ref,
                       wl_ref, bl_ref, o_ref,
                       *, eps, slope, n_kk, n_batch, n_hw):
    """Fused layer 3 + layer 4 + Flatten + Linear.  All intermediates stay in VMEM.

    * layer 3 (conv+BN+lrelu) is a single lane-dense matmul over cols3.
    * the 3->4 im2col is done in-kernel: cols4[(kh,kw,c3), m4] is assembled from 16
      independent selection matmuls h3 @ S_kk (gather-as-matmul, zero rows = padding).
    * layer 4 (conv+BN+lrelu) is one matmul over the assembled cols4.
    * the Linear is ONE matmul on the (n_hw*C4, N) rearrangement of the layer-4
      activation (flatten permutation pre-folded into wl).  Output: logits^T (K, N).
    """
    # ---- layer 3: conv + BN + LeakyReLU --------------------------------------
    y3 = jnp.dot(w3_ref[...], cols3_ref[...], preferred_element_type=jnp.float32)
    inv_m = 1.0 / y3.shape[1]
    mean = jnp.sum(y3, axis=1, keepdims=True) * inv_m
    var = jnp.maximum(jnp.sum(y3 * y3, axis=1, keepdims=True) * inv_m - mean * mean, 0.0)
    h3 = (y3 - mean) * jax.lax.rsqrt(var + eps) * g3_ref[...] + b3_ref[...]
    h3 = jnp.where(h3 >= 0.0, h3, slope * h3).astype(jnp.bfloat16)      # (C3, M3)

    # ---- in-kernel im2col 3->4 (16 independent selection matmuls) -----------
    cols4 = jnp.concatenate(
        [jnp.dot(h3, sel_ref[kk], preferred_element_type=jnp.float32
                 ).astype(jnp.bfloat16)
         for kk in range(n_kk)],
        axis=0)                                                          # (16*C3, M4)

    # ---- layer 4: conv + BN + LeakyReLU --------------------------------------
    y4 = jnp.dot(w4_ref[...], cols4, preferred_element_type=jnp.float32)  # (C4, M4)
    inv_m4 = 1.0 / y4.shape[1]
    mean4 = jnp.sum(y4, axis=1, keepdims=True) * inv_m4
    var4 = jnp.maximum(jnp.sum(y4 * y4, axis=1, keepdims=True) * inv_m4 - mean4 * mean4, 0.0)
    h4 = (y4 - mean4) * jax.lax.rsqrt(var4 + eps) * g4_ref[...] + b4_ref[...]
    h4 = jnp.where(h4 >= 0.0, h4, slope * h4)                            # (C4, n_hw*N)

    # ---- Flatten + Linear as ONE matmul --------------------------------------
    # columns of h4 are ordered (hw, n); stack the per-hw column blocks vertically
    # to get (n_hw*C4, N), matching wl rows ordered (hw, c4).
    h_r = jnp.concatenate(
        [h4[:, i * n_batch:(i + 1) * n_batch] for i in range(n_hw)],
        axis=0).astype(jnp.bfloat16)                                     # (n_hw*C4, N)
    o_ref[...] = (jnp.dot(wl_ref[...], h_r, preferred_element_type=jnp.float32)
                  + bl_ref[...])


# --------------------------------------------------------------------------
# Pallas-call wrappers (single VMEM block each; everything fits trivially)
# --------------------------------------------------------------------------
def conv_lrelu_T(wT, colsT):
    cout, M = wT.shape[0], colsT.shape[1]
    return pl.pallas_call(
        functools.partial(_conv_lrelu_T_kernel, slope=LRELU_SLOPE),
        out_shape=jax.ShapeDtypeStruct((cout, M), jnp.bfloat16),
        in_specs=[_VMEM, _VMEM],
        out_specs=_VMEM,
    )(wT, colsT)


def conv_bn_lrelu_T(wT, colsT, gamma, beta):
    cout, M = wT.shape[0], colsT.shape[1]
    return pl.pallas_call(
        functools.partial(_conv_bn_lrelu_T_kernel, eps=BN_EPS, slope=LRELU_SLOPE),
        out_shape=jax.ShapeDtypeStruct((cout, M), jnp.bfloat16),
        in_specs=[_VMEM] * 4,
        out_specs=_VMEM,
    )(wT, colsT, gamma, beta)


def l34_linear(w3, cols3, g3, b3, w4, sel, g4, b4, wl, bl, *, n_batch, n_hw):
    num_class = wl.shape[0]
    return pl.pallas_call(
        functools.partial(_l34_linear_kernel, eps=BN_EPS, slope=LRELU_SLOPE,
                          n_kk=sel.shape[0], n_batch=n_batch, n_hw=n_hw),
        out_shape=jax.ShapeDtypeStruct((num_class, n_batch), jnp.float32),
        in_specs=[_VMEM] * 10,
        out_specs=_VMEM,
    )(w3, cols3, g3, b3, w4, sel, g4, b4, wl, bl)


# --------------------------------------------------------------------------
# Wrapper-side glue: im2col on the transposed (C, N, H, W) layout, param setup
# --------------------------------------------------------------------------
def im2col_cnhw(x_cnhw, *, k=4, stride=2, pad=1, dtype=jnp.bfloat16):
    """4x4 / stride-2 / pad-1 patches from a (C, N, H, W) activation.

    Returns cols of shape (k*k*C, N*Ho*Wo): rows ordered (kh, kw, c), columns
    ordered (n, ho, wo).  Pure XLA data movement; consumes the transposed (C, M)
    kernel output via a free reshape (no per-layer transpose back to NHWC).
    """
    c, n, h, w = x_cnhw.shape
    xp = jnp.pad(x_cnhw.astype(dtype), ((0, 0), (0, 0), (pad, pad), (pad, pad)))
    ho = (h + 2 * pad - k) // stride + 1
    wo = (w + 2 * pad - k) // stride + 1
    patches = [xp[:, :, kh:kh + stride * ho:stride, kw:kw + stride * wo:stride]
               for kh in range(k) for kw in range(k)]
    cols = jnp.stack(patches, axis=0)                     # (k*k, c, n, ho, wo)
    return cols.reshape(k * k * c, n * ho * wo), (n, ho, wo)


def build_patch_select(n, h, w, *, k=4, stride=2, pad=1, dtype=jnp.bfloat16):
    """0/1 selection matrices S[kk, m_in, m_out] implementing the layer-3 -> layer-4
    im2col as matmuls.  m_in ordered (n, h, w); m_out ordered (hw, n).  Out-of-range
    (padding) reads simply have all-zero rows.  Built once at trace time (numpy)."""
    ho = (h + 2 * pad - k) // stride + 1
    wo = (w + 2 * pad - k) // stride + 1
    s = np.zeros((k * k, n * h * w, ho * wo * n), np.float32)
    for kh in range(k):
        for kw in range(k):
            kk = kh * k + kw
            for oh in range(ho):
                hi = stride * oh + kh - pad
                if not (0 <= hi < h):
                    continue
                for ow in range(wo):
                    wi = stride * ow + kw - pad
                    if not (0 <= wi < w):
                        continue
                    for b in range(n):
                        s[kk, (b * h + hi) * w + wi, (oh * wo + ow) * n + b] = 1.0
    return jnp.asarray(s, dtype), ho * wo


def torch_conv_w_to_matT(w_oihw):
    """PyTorch conv weight (Cout, Cin, KH, KW) -> (Cout, KH*KW*Cin),
    matching the (kh, kw, cin) row ordering of im2col_cnhw."""
    cout, cin, kh, kw = w_oihw.shape
    return jnp.transpose(w_oihw, (0, 2, 3, 1)).reshape(cout, kh * kw * cin)


def init_params(key, ndf=NDF, num_class=NUM_CLASS):
    ks = jax.random.split(key, 11)
    chans = [3, ndf, ndf * 2, ndf * 4, ndf * 8]
    params = {}
    for i in range(1, 5):
        w = 0.02 * jax.random.normal(
            ks[i - 1], (chans[i], chans[i - 1], 4, 4), jnp.float32
        )  # DCGAN-style init, PyTorch (Cout, Cin, KH, KW) layout
        params[f"w{i}"] = torch_conv_w_to_matT(w).astype(jnp.bfloat16)
        if i >= 2:  # layers 2-4 have BatchNorm2d
            params[f"g{i}"] = (
                1.0 + 0.02 * jax.random.normal(ks[3 + i], (chans[i], 1), jnp.float32)
            )
            params[f"b{i}"] = jnp.zeros((chans[i], 1), jnp.float32)
    # Linear(ndf*8*4*4 -> num_class).  PyTorch flatten is f = c*16 + hw (NCHW); the
    # fused kernel presents the activation with rows ordered (hw, c), so fold that
    # permutation into the weight: wl_r[k, hw*C4 + c] = wl[k, c*16 + hw].
    cout4, hw = ndf * 8, 4 * 4
    wl = 0.02 * jax.random.normal(ks[9], (num_class, cout4 * hw), jnp.float32)
    bl = 0.02 * jax.random.normal(ks[10], (num_class,), jnp.float32)
    params["wl"] = (wl.reshape(num_class, cout4, hw).transpose(0, 2, 1)
                      .reshape(num_class, hw * cout4)).astype(jnp.bfloat16)
    params["bl"] = bl.reshape(num_class, 1)
    return params


def discriminator_forward(x_nchw, params):
    # TODO(synk): the ngpu>1 nn.parallel.data_parallel branch of the PyTorch module
    # has no single-device Pallas equivalent; only the single-device path is
    # implemented (identical math).
    n, _, hh, ww = x_nchw.shape
    x = jnp.transpose(x_nchw, (1, 0, 2, 3))               # (C, N, H, W)

    # Layer 1: Conv(3 -> ndf) + LeakyReLU (no BN).  bf16 out, transposed (C, M).
    cols1, (_, h1, w1) = im2col_cnhw(x)
    y1 = conv_lrelu_T(params["w1"], cols1)

    # Layer 2: Conv + BatchNorm2d + LeakyReLU.  bf16 out, transposed (C, M).
    cols2, (_, h2, w2) = im2col_cnhw(y1.reshape(-1, n, h1, w1))
    y2 = conv_bn_lrelu_T(params["w2"], cols2, params["g2"], params["b2"])

    # Layers 3 + 4 + Flatten + Linear: single fused kernel (in-kernel 3->4 im2col
    # via selection matmuls, single-matmul linear with folded flatten).
    cols3, (_, h3, w3) = im2col_cnhw(y2.reshape(-1, n, h2, w2))
    sel, n_hw = build_patch_select(n, h3, w3)
    assert n_hw * (NDF * 8) == params["wl"].shape[1], "input must be 64x64"
    logitsT = l34_linear(params["w3"], cols3, params["g3"], params["b3"],
                         params["w4"], sel, params["g4"], params["b4"],
                         params["wl"], params["bl"], n_batch=n, n_hw=n_hw)
    return logitsT.T  # (N, num_class), float32


# --------------------------------------------------------------------------
if __name__ == "__main__":
    key = jax.random.PRNGKey(0)
    k_x, k_p = jax.random.split(key)

    # Input must be 64x64 so the feature map is 4x4 at the Linear layer
    # (nn.Linear(ndf*8*4*4, num_class)).  batch=2, channels=3.
    x = jax.random.normal(k_x, (2, 3, 64, 64), jnp.float32)
    params = init_params(k_p)

    fwd = jax.jit(lambda inp: discriminator_forward(inp, params))
    out = fwd(x)
    jax.block_until_ready(out)

    assert out.shape == (2, NUM_CLASS), out.shape
    assert out.dtype == jnp.float32
    print("KERNEL_OK")
</pallas_src>

<mosaic_0001>
module attributes {stable_mosaic.version = 11 : i64} {
  func.func @_conv_lrelu_T_kernel(%arg0: memref<8x48xbf16, #tpu.memory_space<vmem>>, %arg1: memref<48x2048xbf16, #tpu.memory_space<vmem>>, %arg2: memref<8x2048xbf16, #tpu.memory_space<vmem>>) attributes {dimension_semantics = [], scalar_prefetch = 0 : i64, scratch_operands = 0 : i64, tpu.core_type = #tpu.core_type<tc>} {
    %c0 = arith.constant 0 : index
    %c0_0 = arith.constant 0 : index
    %0 = vector.load %arg0[%c0, %c0_0] : memref<8x48xbf16, #tpu.memory_space<vmem>>, vector<8x48xbf16>
    %c0_1 = arith.constant 0 : index
    %c0_2 = arith.constant 0 : index
    %1 = vector.load %arg1[%c0_1, %c0_2] : memref<48x2048xbf16, #tpu.memory_space<vmem>>, vector<48x2048xbf16>
    %cst = arith.constant dense<0.000000e+00> : vector<8x2048xf32>
    %2 = tpu.matmul %0, %1, %cst {dimension_numbers = #tpu.dot_dimension_numbers<[1], [0], [0], [1], [0, 0, 1, 1], [], []>} : vector<8x48xbf16>, vector<48x2048xbf16>, vector<8x2048xf32> -> vector<8x2048xf32>
    %cst_3 = arith.constant 0.000000e+00 : f32
    %3 = vector.broadcast %cst_3 : f32 to vector<8x2048xf32>
    %4 = arith.cmpf oge, %2, %3 : vector<8x2048xf32>
    %cst_4 = arith.constant 2.000000e-01 : f32
    %5 = vector.broadcast %cst_4 : f32 to vector<8x2048xf32>
    %6 = arith.mulf %5, %2 : vector<8x2048xf32>
    %7 = arith.select %4, %2, %6 : vector<8x2048xi1>, vector<8x2048xf32>
    %8 = arith.truncf %7 : vector<8x2048xf32> to vector<8x2048xbf16>
    %c0_5 = arith.constant 0 : index
    %c0_6 = arith.constant 0 : index
    %9 = vector.load %arg2[%c0_5, %c0_6] : memref<8x2048xbf16, #tpu.memory_space<vmem>>, vector<8x2048xbf16>
    tpu.vector_store %arg2[%c0_5, %c0_6], %8 {strides = array<i32>} : memref<8x2048xbf16, #tpu.memory_space<vmem>>, vector<8x2048xbf16>,
    return
  }
}

module attributes {stable_mosaic.version = 11 : i64} {
  func.func @_conv_bn_lrelu_T_kernel(%arg0: memref<16x128xbf16, #tpu.memory_space<vmem>>, %arg1: memref<128x512xbf16, #tpu.memory_space<vmem>>, %arg2: memref<16x1xf32, #tpu.memory_space<vmem>>, %arg3: memref<16x1xf32, #tpu.memory_space<vmem>>, %arg4: memref<16x512xbf16, #tpu.memory_space<vmem>>) attributes {dimension_semantics = [], scalar_prefetch = 0 : i64, scratch_operands = 0 : i64, tpu.core_type = #tpu.core_type<tc>} {
    %c0 = arith.constant 0 : index
    %c0_0 = arith.constant 0 : index
    %0 = vector.load %arg0[%c0, %c0_0] : memref<16x128xbf16, #tpu.memory_space<vmem>>, vector<16x128xbf16>
    %c0_1 = arith.constant 0 : index
    %c0_2 = arith.constant 0 : index
    %1 = vector.load %arg1[%c0_1, %c0_2] : memref<128x512xbf16, #tpu.memory_space<vmem>>, vector<128x512xbf16>
    %cst = arith.constant dense<0.000000e+00> : vector<16x512xf32>
    %2 = tpu.matmul %0, %1, %cst {dimension_numbers = #tpu.dot_dimension_numbers<[1], [0], [0], [1], [0, 0, 1, 1], [], []>} : vector<16x128xbf16>, vector<128x512xbf16>, vector<16x512xf32> -> vector<16x512xf32>
    %cst_3 = arith.constant dense<0.000000e+00> : vector<16xf32>
    %3 = vector.multi_reduction <add>, %2, %cst_3 [1] : vector<16x512xf32> to vector<16xf32>
    %4 = vector.shape_cast %3 : vector<16xf32> to vector<16x1xf32>
    %cst_4 = arith.constant 0.001953125 : f32
    %5 = vector.broadcast %cst_4 : f32 to vector<16x1xf32>
    %6 = arith.mulf %4, %5 : vector<16x1xf32>
    %7 = arith.mulf %2, %2 : vector<16x512xf32>
    %cst_5 = arith.constant dense<0.000000e+00> : vector<16xf32>
    %8 = vector.multi_reduction <add>, %7, %cst_5 [1] : vector<16x512xf32> to vector<16xf32>
    %9 = vector.shape_cast %8 : vector<16xf32> to vector<16x1xf32>
    %cst_6 = arith.constant 0.001953125 : f32
    %10 = vector.broadcast %cst_6 : f32 to vector<16x1xf32>
    %11 = arith.mulf %9, %10 : vector<16x1xf32>
    %12 = arith.mulf %6, %6 : vector<16x1xf32>
    %13 = arith.subf %11, %12 : vector<16x1xf32>
    %cst_7 = arith.constant 0.000000e+00 : f32
    %14 = vector.broadcast %cst_7 : f32 to vector<16x1xf32>
    %15 = arith.maximumf %13, %14 : vector<16x1xf32>
    %16 = vector.broadcast %6 : vector<16x1xf32> to vector<16x512xf32>
    %17 = arith.subf %2, %16 : vector<16x512xf32>
    %cst_8 = arith.constant 9.99999974E-6 : f32
    %18 = vector.broadcast %cst_8 : f32 to vector<16x1xf32>
    %19 = arith.addf %15, %18 : vector<16x1xf32>
    %20 = math.rsqrt %19 : vector<16x1xf32>
    %21 = vector.broadcast %20 : vector<16x1xf32> to vector<16x512xf32>
    %22 = arith.mulf %17, %21 : vector<16x512xf32>
    %c0_9 = arith.constant 0 : index
    %c0_10 = arith.constant 0 : index
    %23 = vector.load %arg2[%c0_9, %c0_10] : memref<16x1xf32, #tpu.memory_space<vmem>>, vector<16x1xf32>
    %24 = vector.broadcast %23 : vector<16x1xf32> to vector<16x512xf32>
    %25 = arith.mulf %22, %24 : vector<16x512xf32>
    %c0_11 = arith.constant 0 : index
    %c0_12 = arith.constant 0 : index
    %26 = vector.load %arg3[%c0_11, %c0_12] : memref<16x1xf32, #tpu.memory_space<vmem>>, vector<16x1xf32>
    %27 = vector.broadcast %26 : vector<16x1xf32> to vector<16x512xf32>
    %28 = arith.addf %25, %27 : vector<16x512xf32>
    %cst_13 = arith.constant 0.000000e+00 : f32
    %29 = vector.broadcast %cst_13 : f32 to vector<16x512xf32>
    %30 = arith.cmpf oge, %28, %29 : vector<16x512xf32>
    %cst_14 = arith.constant 2.000000e-01 : f32
    %31 = vector.broadcast %cst_14 : f32 to vector<16x512xf32>
    %32 = arith.mulf %31, %28 : vector<16x512xf32>
    %33 = arith.select %30, %28, %32 : vector<16x512xi1>, vector<16x512xf32>
    %34 = arith.truncf %33 : vector<16x512xf32> to vector<16x512xbf16>
    %c0_15 = arith.constant 0 : index
    %c0_16 = arith.constant 0 : index
    %35 = vector.load %arg4[%c0_15, %c0_16] : memref<16x512xbf16, #tpu.memory_space<vmem>>, vector<16x512xbf16>
    tpu.vector_store %arg4[%c0_15, %c0_16], %34 {strides = array<i32>} : memref<16x512xbf16, #tpu.memory_space<vmem>>, vector<16x512xbf16>,
    return
  }
}

module attributes {stable_mosaic.version = 11 : i64} {
  func.func @_l34_linear_kernel(%arg0: memref<32x256xbf16, #tpu.memory_space<vmem>>, %arg1: memref<256x128xbf16, #tpu.memory_space<vmem>>, %arg2: memref<32x1xf32, #tpu.memory_space<vmem>>, %arg3: memref<32x1xf32, #tpu.memory_space<vmem>>, %arg4: memref<64x512xbf16, #tpu.memory_space<vmem>>, %arg5: memref<16x128x32xbf16, #tpu.memory_space<vmem>>, %arg6: memref<64x1xf32, #tpu.memory_space<vmem>>, %arg7: memref<64x1xf32, #tpu.memory_space<vmem>>, %arg8: memref<10x1024xbf16, #tpu.memory_space<vmem>>, %arg9: memref<10x1xf32, #tpu.memory_space<vmem>>, %arg10: memref<10x2xf32, #tpu.memory_space<vmem>>) attributes {dimension_semantics = [], scalar_prefetch = 0 : i64, scratch_operands = 0 : i64, tpu.core_type = #tpu.core_type<tc>} {
    %c0 = arith.constant 0 : index
    %c0_0 = arith.constant 0 : index
    %0 = vector.load %arg0[%c0, %c0_0] : memref<32x256xbf16, #tpu.memory_space<vmem>>, vector<32x256xbf16>
    %c0_1 = arith.constant 0 : index
    %c0_2 = arith.constant 0 : index
    %1 = vector.load %arg1[%c0_1, %c0_2] : memref<256x128xbf16, #tpu.memory_space<vmem>>, vector<256x128xbf16>
    %cst = arith.constant dense<0.000000e+00> : vector<32x128xf32>
    %2 = tpu.matmul %0, %1, %cst {dimension_numbers = #tpu.dot_dimension_numbers<[1], [0], [0], [1], [0, 0, 1, 1], [], []>} : vector<32x256xbf16>, vector<256x128xbf16>, vector<32x128xf32> -> vector<32x128xf32>
    %cst_3 = arith.constant dense<0.000000e+00> : vector<32xf32>
    %3 = vector.multi_reduction <add>, %2, %cst_3 [1] : vector<32x128xf32> to vector<32xf32>
    %4 = vector.shape_cast %3 : vector<32xf32> to vector<32x1xf32>
    %cst_4 = arith.constant 7.812500e-03 : f32
    %5 = vector.broadcast %cst_4 : f32 to vector<32x1xf32>
    %6 = arith.mulf %4, %5 : vector<32x1xf32>
    %7 = arith.mulf %2, %2 : vector<32x128xf32>
    %cst_5 = arith.constant dense<0.000000e+00> : vector<32xf32>
    %8 = vector.multi_reduction <add>, %7, %cst_5 [1] : vector<32x128xf32> to vector<32xf32>
    %9 = vector.shape_cast %8 : vector<32xf32> to vector<32x1xf32>
    %cst_6 = arith.constant 7.812500e-03 : f32
    %10 = vector.broadcast %cst_6 : f32 to vector<32x1xf32>
    %11 = arith.mulf %9, %10 : vector<32x1xf32>
    %12 = arith.mulf %6, %6 : vector<32x1xf32>
    %13 = arith.subf %11, %12 : vector<32x1xf32>
    %cst_7 = arith.constant 0.000000e+00 : f32
    %14 = vector.broadcast %cst_7 : f32 to vector<32x1xf32>
    %15 = arith.maximumf %13, %14 : vector<32x1xf32>
    %16 = vector.broadcast %6 : vector<32x1xf32> to vector<32x128xf32>
    %17 = arith.subf %2, %16 : vector<32x128xf32>
    %cst_8 = arith.constant 9.99999974E-6 : f32
    %18 = vector.broadcast %cst_8 : f32 to vector<32x1xf32>
    %19 = arith.addf %15, %18 : vector<32x1xf32>
    %20 = math.rsqrt %19 : vector<32x1xf32>
    %21 = vector.broadcast %20 : vector<32x1xf32> to vector<32x128xf32>
    %22 = arith.mulf %17, %21 : vector<32x128xf32>
    %c0_9 = arith.constant 0 : index
    %c0_10 = arith.constant 0 : index
    %23 = vector.load %arg2[%c0_9, %c0_10] : memref<32x1xf32, #tpu.memory_space<vmem>>, vector<32x1xf32>
    %24 = vector.broadcast %23 : vector<32x1xf32> to vector<32x128xf32>
    %25 = arith.mulf %22, %24 : vector<32x128xf32>
    %c0_11 = arith.constant 0 : index
    %c0_12 = arith.constant 0 : index
    %26 = vector.load %arg3[%c0_11, %c0_12] : memref<32x1xf32, #tpu.memory_space<vmem>>, vector<32x1xf32>
    %27 = vector.broadcast %26 : vector<32x1xf32> to vector<32x128xf32>
    %28 = arith.addf %25, %27 : vector<32x128xf32>
    %cst_13 = arith.constant 0.000000e+00 : f32
    %29 = vector.broadcast %cst_13 : f32 to vector<32x128xf32>
    %30 = arith.cmpf oge, %28, %29 : vector<32x128xf32>
    %cst_14 = arith.constant 2.000000e-01 : f32
    %31 = vector.broadcast %cst_14 : f32 to vector<32x128xf32>
    %32 = arith.mulf %31, %28 : vector<32x128xf32>
    %33 = arith.select %30, %28, %32 : vector<32x128xi1>, vector<32x128xf32>
    %34 = arith.truncf %33 : vector<32x128xf32> to vector<32x128xbf16>
    %c0_15 = arith.constant 0 : index
    %c0_16 = arith.constant 0 : index
    %c0_17 = arith.constant 0 : index
    %35 = vector.load %arg5[%c0_15, %c0_16, %c0_17] : memref<16x128x32xbf16, #tpu.memory_space<vmem>>, vector<1x128x32xbf16>
    %36 = vector.shape_cast %35 : vector<1x128x32xbf16> to vector<128x32xbf16>
    %cst_18 = arith.constant dense<0.000000e+00> : vector<32x32xf32>
    %37 = tpu.matmul %34, %36, %cst_18 {dimension_numbers = #tpu.dot_dimension_numbers<[1], [0], [0], [1], [0, 0, 1, 1], [], []>} : vector<32x128xbf16>, vector<128x32xbf16>, vector<32x32xf32> -> vector<32x32xf32>
    %38 = arith.truncf %37 : vector<32x32xf32> to vector<32x32xbf16>
    %c1 = arith.constant 1 : index
    %c0_19 = arith.constant 0 : index
    %c0_20 = arith.constant 0 : index
    %39 = vector.load %arg5[%c1, %c0_19, %c0_20] : memref<16x128x32xbf16, #tpu.memory_space<vmem>>, vector<1x128x32xbf16>
    %40 = vector.shape_cast %39 : vector<1x128x32xbf16> to vector<128x32xbf16>
    %cst_21 = arith.constant dense<0.000000e+00> : vector<32x32xf32>
    %41 = tpu.matmul %34, %40, %cst_21 {dimension_numbers = #tpu.dot_dimension_numbers<[1], [0], [0], [1], [0, 0, 1, 1], [], []>} : vector<32x128xbf16>, vector<128x32xbf16>, vector<32x32xf32> -> vector<32x32xf32>
    %42 = arith.truncf %41 : vector<32x32xf32> to vector<32x32xbf16>
    %c2 = arith.constant 2 : index
    %c0_22 = arith.constant 0 : index
    %c0_23 = arith.constant 0 : index
    %43 = vector.load %arg5[%c2, %c0_22, %c0_23] : memref<16x128x32xbf16, #tpu.memory_space<vmem>>, vector<1x128x32xbf16>
    %44 = vector.shape_cast %43 : vector<1x128x32xbf16> to vector<128x32xbf16>
    %cst_24 = arith.constant dense<0.000000e+00> : vector<32x32xf32>
    %45 = tpu.matmul %34, %44, %cst_24 {dimension_numbers = #tpu.dot_dimension_numbers<[1], [0], [0], [1], [0, 0, 1, 1], [], []>} : vector<32x128xbf16>, vector<128x32xbf16>, vector<32x32xf32> -> vector<32x32xf32>
    %46 = arith.truncf %45 : vector<32x32xf32> to vector<32x32xbf16>
    %c3 = arith.constant 3 : index
    %c0_25 = arith.constant 0 : index
    %c0_26 = arith.constant 0 : index
    %47 = vector.load %arg5[%c3, %c0_25, %c0_26] : memref<16x128x32xbf16, #tpu.memory_space<vmem>>, vector<1x128x32xbf16>
    %48 = vector.shape_cast %47 : vector<1x128x32xbf16> to vector<128x32xbf16>
    %cst_27 = arith.constant dense<0.000000e+00> : vector<32x32xf32>
    %49 = tpu.matmul %34, %48, %cst_27 {dimension_numbers = #tpu.dot_dimension_numbers<[1], [0], [0], [1], [0, 0, 1, 1], [], []>} : vector<32x128xbf16>, vector<128x32xbf16>, vector<32x32xf32> -> vector<32x32xf32>
    %50 = arith.truncf %49 : vector<32x32xf32> to vector<32x32xbf16>
    %c4 = arith.constant 4 : index
    %c0_28 = arith.constant 0 : index
    %c0_29 = arith.constant 0 : index
    %51 = vector.load %arg5[%c4, %c0_28, %c0_29] : memref<16x128x32xbf16, #tpu.memory_space<vmem>>, vector<1x128x32xbf16>
    %52 = vector.shape_cast %51 : vector<1x128x32xbf16> to vector<128x32xbf16>
    %cst_30 = arith.constant dense<0.000000e+00> : vector<32x32xf32>
    %53 = tpu.matmul %34, %52, %cst_30 {dimension_numbers = #tpu.dot_dimension_numbers<[1], [0], [0], [1], [0, 0, 1, 1], [], []>} : vector<32x128xbf16>, vector<128x32xbf16>, vector<32x32xf32> -> vector<32x32xf32>
    %54 = arith.truncf %53 : vector<32x32xf32> to vector<32x32xbf16>
    %c5 = arith.constant 5 : index
    %c0_31 = arith.constant 0 : index
    %c0_32 = arith.constant 0 : index
    %55 = vector.load %arg5[%c5, %c0_31, %c0_32] : memref<16x128x32xbf16, #tpu.memory_space<vmem>>, vector<1x128x32xbf16>
    %56 = vector.shape_cast %55 : vector<1x128x32xbf16> to vector<128x32xbf16>
    %cst_33 = arith.constant dense<0.000000e+00> : vector<32x32xf32>
    %57 = tpu.matmul %34, %56, %cst_33 {dimension_numbers = #tpu.dot_dimension_numbers<[1], [0], [0], [1], [0, 0, 1, 1], [], []>} : vector<32x128xbf16>, vector<128x32xbf16>, vector<32x32xf32> -> vector<32x32xf32>
    %58 = arith.truncf %57 : vector<32x32xf32> to vector<32x32xbf16>
    %c6 = arith.constant 6 : index
    %c0_34 = arith.constant 0 : index
    %c0_35 = arith.constant 0 : index
    %59 = vector.load %arg5[%c6, %c0_34, %c0_35] : memref<16x128x32xbf16, #tpu.memory_space<vmem>>, vector<1x128x32xbf16>
    %60 = vector.shape_cast %59 : vector<1x128x32xbf16> to vector<128x32xbf16>
    %cst_36 = arith.constant dense<0.000000e+00> : vector<32x32xf32>
    %61 = tpu.matmul %34, %60, %cst_36 {dimension_numbers = #tpu.dot_dimension_numbers<[1], [0], [0], [1], [0, 0, 1, 1], [], []>} : vector<32x128xbf16>, vector<128x32xbf16>, vector<32x32xf32> -> vector<32x32xf32>
    %62 = arith.truncf %61 : vector<32x32xf32> to vector<32x32xbf16>
    %c7 = arith.constant 7 : index
    %c0_37 = arith.constant 0 : index
    %c0_38 = arith.constant 0 : index
    %63 = vector.load %arg5[%c7, %c0_37, %c0_38] : memref<16x128x32xbf16, #tpu.memory_space<vmem>>, vector<1x128x32xbf16>
    %64 = vector.shape_cast %63 : vector<1x128x32xbf16> to vector<128x32xbf16>
    %cst_39 = arith.constant dense<0.000000e+00> : vector<32x32xf32>
    %65 = tpu.matmul %34, %64, %cst_39 {dimension_numbers = #tpu.dot_dimension_numbers<[1], [0], [0], [1], [0, 0, 1, 1], [], []>} : vector<32x128xbf16>, vector<128x32xbf16>, vector<32x32xf32> -> vector<32x32xf32>
    %66 = arith.truncf %65 : vector<32x32xf32> to vector<32x32xbf16>
    %c8 = arith.constant 8 : index
    %c0_40 = arith.constant 0 : index
    %c0_41 = arith.constant 0 : index
    %67 = vector.load %arg5[%c8, %c0_40, %c0_41] : memref<16x128x32xbf16, #tpu.memory_space<vmem>>, vector<1x128x32xbf16>
    %68 = vector.shape_cast %67 : vector<1x128x32xbf16> to vector<128x32xbf16>
    %cst_42 = arith.constant dense<0.000000e+00> : vector<32x32xf32>
    %69 = tpu.matmul %34, %68, %cst_42 {dimension_numbers = #tpu.dot_dimension_numbers<[1], [0], [0], [1], [0, 0, 1, 1], [], []>} : vector<32x128xbf16>, vector<128x32xbf16>, vector<32x32xf32> -> vector<32x32xf32>
    %70 = arith.truncf %69 : vector<32x32xf32> to vector<32x32xbf16>
    %c9 = arith.constant 9 : index
    %c0_43 = arith.constant 0 : index
    %c0_44 = arith.constant 0 : index
    %71 = vector.load %arg5[%c9, %c0_43, %c0_44] : memref<16x128x32xbf16, #tpu.memory_space<vmem>>, vector<1x128x32xbf16>
    %72 = vector.shape_cast %71 : vector<1x128x32xbf16> to vector<128x32xbf16>
    %cst_45 = arith.constant dense<0.000000e+00> : vector<32x32xf32>
    %73 = tpu.matmul %34, %72, %cst_45 {dimension_numbers = #tpu.dot_dimension_numbers<[1], [0], [0], [1], [0, 0, 1, 1], [], []>} : vector<32x128xbf16>, vector<128x32xbf16>, vector<32x32xf32> -> vector<32x32xf32>
    %74 = arith.truncf %73 : vector<32x32xf32> to vector<32x32xbf16>
    %c10 = arith.constant 10 : index
    %c0_46 = arith.constant 0 : index
    %c0_47 = arith.constant 0 : index
    %75 = vector.load %arg5[%c10, %c0_46, %c0_47] : memref<16x128x32xbf16, #tpu.memory_space<vmem>>, vector<1x128x32xbf16>
    %76 = vector.shape_cast %75 : vector<1x128x32xbf16> to vector<128x32xbf16>
    %cst_48 = arith.constant dense<0.000000e+00> : vector<32x32xf32>
    %77 = tpu.matmul %34, %76, %cst_48 {dimension_numbers = #tpu.dot_dimension_numbers<[1], [0], [0], [1], [0, 0, 1, 1], [], []>} : vector<32x128xbf16>, vector<128x32xbf16>, vector<32x32xf32> -> vector<32x32xf32>
    %78 = arith.truncf %77 : vector<32x32xf32> to vector<32x32xbf16>
    %c11 = arith.constant 11 : index
    %c0_49 = arith.constant 0 : index
    %c0_50 = arith.constant 0 : index
    %79 = vector.load %arg5[%c11, %c0_49, %c0_50] : memref<16x128x32xbf16, #tpu.memory_space<vmem>>, vector<1x128x32xbf16>
    %80 = vector.shape_cast %79 : vector<1x128x32xbf16> to vector<128x32xbf16>
    %cst_51 = arith.constant dense<0.000000e+00> : vector<32x32xf32>
    %81 = tpu.matmul %34, %80, %cst_51 {dimension_numbers = #tpu.dot_dimension_numbers<[1], [0], [0], [1], [0, 0, 1, 1], [], []>} : vector<32x128xbf16>, vector<128x32xbf16>, vector<32x32xf32> -> vector<32x32xf32>
    %82 = arith.truncf %81 : vector<32x32xf32> to vector<32x32xbf16>
    %c12 = arith.constant 12 : index
    %c0_52 = arith.constant 0 : index
    %c0_53 = arith.constant 0 : index
    %83 = vector.load %arg5[%c12, %c0_52, %c0_53] : memref<16x128x32xbf16, #tpu.memory_space<vmem>>, vector<1x128x32xbf16>
    %84 = vector.shape_cast %83 : vector<1x128x32xbf16> to vector<128x32xbf16>
    %cst_54 = arith.constant dense<0.000000e+00> : vector<32x32xf32>
    %85 = tpu.matmul %34, %84, %cst_54 {dimension_numbers = #tpu.dot_dimension_numbers<[1], [0], [0], [1], [0, 0, 1, 1], [], []>} : vector<32x128xbf16>, vector<128x32xbf16>, vector<32x32xf32> -> vector<32x32xf32>
    %86 = arith.truncf %85 : vector<32x32xf32> to vector<32x32xbf16>
    %c13 = arith.constant 13 : index
    %c0_55 = arith.constant 0 : index
    %c0_56 = arith.constant 0 : index
    %87 = vector.load %arg5[%c13, %c0_55, %c0_56] : memref<16x128x32xbf16, #tpu.memory_space<vmem>>, vector<1x128x32xbf16>
    %88 = vector.shape_cast %87 : vector<1x128x32xbf16> to vector<128x32xbf16>
    %cst_57 = arith.constant dense<0.000000e+00> : vector<32x32xf32>
    %89 = tpu.matmul %34, %88, %cst_57 {dimension_numbers = #tpu.dot_dimension_numbers<[1], [0], [0], [1], [0, 0, 1, 1], [], []>} : vector<32x128xbf16>, vector<128x32xbf16>, vector<32x32xf32> -> vector<32x32xf32>
    %90 = arith.truncf %89 : vector<32x32xf32> to vector<32x32xbf16>
    %c14 = arith.constant 14 : index
    %c0_58 = arith.constant 0 : index
    %c0_59 = arith.constant 0 : index
    %91 = vector.load %arg5[%c14, %c0_58, %c0_59] : memref<16x128x32xbf16, #tpu.memory_space<vmem>>, vector<1x128x32xbf16>
    %92 = vector.shape_cast %91 : vector<1x128x32xbf16> to vector<128x32xbf16>
    %cst_60 = arith.constant dense<0.000000e+00> : vector<32x32xf32>
    %93 = tpu.matmul %34, %92, %cst_60 {dimension_numbers = #tpu.dot_dimension_numbers<[1], [0], [0], [1], [0, 0, 1, 1], [], []>} : vector<32x128xbf16>, vector<128x32xbf16>, vector<32x32xf32> -> vector<32x32xf32>
    %94 = arith.truncf %93 : vector<32x32xf32> to vector<32x32xbf16>
    %c15 = arith.constant 15 : index
    %c0_61 = arith.constant 0 : index
    %c0_62 = arith.constant 0 : index
    %95 = vector.load %arg5[%c15, %c0_61, %c0_62] : memref<16x128x32xbf16, #tpu.memory_space<vmem>>, vector<1x128x32xbf16>
    %96 = vector.shape_cast %95 : vector<1x128x32xbf16> to vector<128x32xbf16>
    %cst_63 = arith.constant dense<0.000000e+00> : vector<32x32xf32>
    %97 = tpu.matmul %34, %96, %cst_63 {dimension_numbers = #tpu.dot_dimension_numbers<[1], [0], [0], [1], [0, 0, 1, 1], [], []>} : vector<32x128xbf16>, vector<128x32xbf16>, vector<32x32xf32> -> vector<32x32xf32>
    %98 = arith.truncf %97 : vector<32x32xf32> to vector<32x32xbf16>
    %99 = tpu.concatenate %38, %42, %46, %50, %54, %58, %62, %66, %70, %74, %78, %82, %86, %90, %94, %98 in 0 : vector<32x32xbf16>, vector<32x32xbf16>, vector<32x32xbf16>, vector<32x32xbf16>, vector<32x32xbf16>, vector<32x32xbf16>, vector<32x32xbf16>, vector<32x32xbf16>, vector<32x32xbf16>, vector<32x32xbf16>, vector<32x32xbf16>, vector<32x32xbf16>, vector<32x32xbf16>, vector<32x32xbf16>, vector<32x32xbf16>, vector<32x32xbf16> -> vector<512x32xbf16>
    %c0_64 = arith.constant 0 : index
    %c0_65 = arith.constant 0 : index
    %100 = vector.load %arg4[%c0_64, %c0_65] : memref<64x512xbf16, #tpu.memory_space<vmem>>, vector<64x512xbf16>
    %cst_66 = arith.constant dense<0.000000e+00> : vector<64x32xf32>
    %101 = tpu.matmul %100, %99, %cst_66 {dimension_numbers = #tpu.dot_dimension_numbers<[1], [0], [0], [1], [0, 0, 1, 1], [], []>} : vector<64x512xbf16>, vector<512x32xbf16>, vector<64x32xf32> -> vector<64x32xf32>
    %cst_67 = arith.constant dense<0.000000e+00> : vector<64xf32>
    %102 = vector.multi_reduction <add>, %101, %cst_67 [1] : vector<64x32xf32> to vector<64xf32>
    %103 = vector.shape_cast %102 : vector<64xf32> to vector<64x1xf32>
    %cst_68 = arith.constant 3.125000e-02 : f32
    %104 = vector.broadcast %cst_68 : f32 to vector<64x1xf32>
    %105 = arith.mulf %103, %104 : vector<64x1xf32>
    %106 = arith.mulf %101, %101 : vector<64x32xf32>
    %cst_69 = arith.constant dense<0.000000e+00> : vector<64xf32>
    %107 = vector.multi_reduction <add>, %106, %cst_69 [1] : vector<64x32xf32> to vector<64xf32>
    %108 = vector.shape_cast %107 : vector<64xf32> to vector<64x1xf32>
    %cst_70 = arith.constant 3.125000e-02 : f32
    %109 = vector.broadcast %cst_70 : f32 to vector<64x1xf32>
    %110 = arith.mulf %108, %109 : vector<64x1xf32>
    %111 = arith.mulf %105, %105 : vector<64x1xf32>
    %112 = arith.subf %110, %111 : vector<64x1xf32>
    %cst_71 = arith.constant 0.000000e+00 : f32
    %113 = vector.broadcast %cst_71 : f32 to vector<64x1xf32>
    %114 = arith.maximumf %112, %113 : vector<64x1xf32>
    %115 = vector.broadcast %105 : vector<64x1xf32> to vector<64x32xf32>
    %116 = arith.subf %101, %115 : vector<64x32xf32>
    %cst_72 = arith.constant 9.99999974E-6 : f32
    %117 = vector.broadcast %cst_72 : f32 to vector<64x1xf32>
    %118 = arith.addf %114, %117 : vector<64x1xf32>
    %119 = math.rsqrt %118 : vector<64x1xf32>
    %120 = vector.broadcast %119 : vector<64x1xf32> to vector<64x32xf32>
    %121 = arith.mulf %116, %120 : vector<64x32xf32>
    %c0_73 = arith.constant 0 : index
    %c0_74 = arith.constant 0 : index
    %122 = vector.load %arg6[%c0_73, %c0_74] : memref<64x1xf32, #tpu.memory_space<vmem>>, vector<64x1xf32>
    %123 = vector.broadcast %122 : vector<64x1xf32> to vector<64x32xf32>
    %124 = arith.mulf %121, %123 : vector<64x32xf32>
    %c0_75 = arith.constant 0 : index
    %c0_76 = arith.constant 0 : index
    %125 = vector.load %arg7[%c0_75, %c0_76] : memref<64x1xf32, #tpu.memory_space<vmem>>, vector<64x1xf32>
    %126 = vector.broadcast %125 : vector<64x1xf32> to vector<64x32xf32>
    %127 = arith.addf %124, %126 : vector<64x32xf32>
    %cst_77 = arith.constant 0.000000e+00 : f32
    %128 = vector.broadcast %cst_77 : f32 to vector<64x32xf32>
    %129 = arith.cmpf oge, %127, %128 : vector<64x32xf32>
    %cst_78 = arith.constant 2.000000e-01 : f32
    %130 = vector.broadcast %cst_78 : f32 to vector<64x32xf32>
    %131 = arith.mulf %130, %127 : vector<64x32xf32>
    %132 = arith.select %129, %127, %131 : vector<64x32xi1>, vector<64x32xf32>
    %133 = vector.extract_strided_slice %132 {offsets = [0, 0], sizes = [64, 2], strides = [1, 1]} : vector<64x32xf32> to vector<64x2xf32>
    %134 = vector.extract_strided_slice %132 {offsets = [0, 2], sizes = [64, 2], strides = [1, 1]} : vector<64x32xf32> to vector<64x2xf32>
    %135 = vector.extract_strided_slice %132 {offsets = [0, 4], sizes = [64, 2], strides = [1, 1]} : vector<64x32xf32> to vector<64x2xf32>
    %136 = vector.extract_strided_slice %132 {offsets = [0, 6], sizes = [64, 2], strides = [1, 1]} : vector<64x32xf32> to vector<64x2xf32>
    %137 = vector.extract_strided_slice %132 {offsets = [0, 8], sizes = [64, 2], strides = [1, 1]} : vector<64x32xf32> to vector<64x2xf32>
    %138 = vector.extract_strided_slice %132 {offsets = [0, 10], sizes = [64, 2], strides = [1, 1]} : vector<64x32xf32> to vector<64x2xf32>
    %139 = vector.extract_strided_slice %132 {offsets = [0, 12], sizes = [64, 2], strides = [1, 1]} : vector<64x32xf32> to vector<64x2xf32>
    %140 = vector.extract_strided_slice %132 {offsets = [0, 14], sizes = [64, 2], strides = [1, 1]} : vector<64x32xf32> to vector<64x2xf32>
    %141 = vector.extract_strided_slice %132 {offsets = [0, 16], sizes = [64, 2], strides = [1, 1]} : vector<64x32xf32> to vector<64x2xf32>
    %142 = vector.extract_strided_slice %132 {offsets = [0, 18], sizes = [64, 2], strides = [1, 1]} : vector<64x32xf32> to vector<64x2xf32>
    %143 = vector.extract_strided_slice %132 {offsets = [0, 20], sizes = [64, 2], strides = [1, 1]} : vector<64x32xf32> to vector<64x2xf32>
    %144 = vector.extract_strided_slice %132 {offsets = [0, 22], sizes = [64, 2], strides = [1, 1]} : vector<64x32xf32> to vector<64x2xf32>
    %145 = vector.extract_strided_slice %132 {offsets = [0, 24], sizes = [64, 2], strides = [1, 1]} : vector<64x32xf32> to vector<64x2xf32>
    %146 = vector.extract_strided_slice %132 {offsets = [0, 26], sizes = [64, 2], strides = [1, 1]} : vector<64x32xf32> to vector<64x2xf32>
    %147 = vector.extract_strided_slice %132 {offsets = [0, 28], sizes = [64, 2], strides = [1, 1]} : vector<64x32xf32> to vector<64x2xf32>
    %148 = vector.extract_strided_slice %132 {offsets = [0, 30], sizes = [64, 2], strides = [1, 1]} : vector<64x32xf32> to vector<64x2xf32>
    %149 = tpu.concatenate %133, %134, %135, %136, %137, %138, %139, %140, %141, %142, %143, %144, %145, %146, %147, %148 in 0 : vector<64x2xf32>, vector<64x2xf32>, vector<64x2xf32>, vector<64x2xf32>, vector<64x2xf32>, vector<64x2xf32>, vector<64x2xf32>, vector<64x2xf32>, vector<64x2xf32>, vector<64x2xf32>, vector<64x2xf32>, vector<64x2xf32>, vector<64x2xf32>, vector<64x2xf32>, vector<64x2xf32>, vector<64x2xf32> -> vector<1024x2xf32>
    %150 = arith.truncf %149 : vector<1024x2xf32> to vector<1024x2xbf16>
    %c0_79 = arith.constant 0 : index
    %c0_80 = arith.constant 0 : index
    %151 = vector.load %arg8[%c0_79, %c0_80] : memref<10x1024xbf16, #tpu.memory_space<vmem>>, vector<10x1024xbf16>
    %cst_81 = arith.constant dense<0.000000e+00> : vector<10x2xf32>
    %152 = tpu.matmul %151, %150, %cst_81 {dimension_numbers = #tpu.dot_dimension_numbers<[1], [0], [0], [1], [0, 0, 1, 1], [], []>} : vector<10x1024xbf16>, vector<1024x2xbf16>, vector<10x2xf32> -> vector<10x2xf32>
    %c0_82 = arith.constant 0 : index
    %c0_83 = arith.constant 0 : index
    %153 = vector.load %arg9[%c0_82, %c0_83] : memref<10x1xf32, #tpu.memory_space<vmem>>, vector<10x1xf32>
    %154 = vector.broadcast %153 : vector<10x1xf32> to vector<10x2xf32>
    %155 = arith.addf %152, %154 : vector<10x2xf32>
    %c0_84 = arith.constant 0 : index
    %c0_85 = arith.constant 0 : index
    %156 = vector.load %arg10[%c0_84, %c0_85] : memref<10x2xf32, #tpu.memory_space<vmem>>, vector<10x2xf32>
    tpu.vector_store %arg10[%c0_84, %c0_85], %155 {strides = array<i32>} : memref<10x2xf32, #tpu.memory_space<vmem>>, vector<10x2xf32>,
    return
  }
}

</mosaic_0001>

<bundles_post_ra>
// kernel: _lambda_.3
= control target key start
LH: loop header
LB: loop body
LE: loop exit
PB: predicated region body
PF: predicated region fallthrough
CT: control target
= control target key end

     0   :  { %v830_v3 = vmov 0   ;;  %vm301_vm0 = vcmask 392192   ;;  %s1043_s1 = inlined_call_operand.vmem [shape: bf16[48,2048], index: 1, kind: input, shape index: {}]   ;;  %s1044_s0 = inlined_call_operand.vmem [shape: bf16[8,48], index: 0, kind: input, shape index: {}]   ;;  %s1045_s2 = inlined_call_operand.vmem [shape: bf16[8,2048], index: 2, kind: output, shape index: {}]  }
   0x1   :  { %v45_v0 = vld [vmem:[%s1043_s1 + $0x100] sm:$0xff]  ;;  %v46_v2 = vld [vmem:[%s1043_s1 + $0x108] sm:$0xff]  ;;  %337 = vmatprep.mubr.bf16.mxu0 %v830_v3  ;;  %378 = vmatprep.mubr.bf16.mxu1 %v830_v3  ;;  %v47_v23 = vld [vmem:[%s1043_s1 + $0x110] sm:$0xff] }
   0x2   :  { %v53_v1 = vld [vmem:[%s1043_s1 + $0x140] sm:$0xff]  ;;  %v54_v5 = vld [vmem:[%s1043_s1 + $0x148] sm:$0xff]  ;;  %v55_v24 = vld [vmem:[%s1043_s1 + $0x150] sm:$0xff] }
   0x3   :  { %v790_v4 = vcombine.high %v45_v0, %v53_v1  ;;  %v789_v6 = vcombine.low %v45_v0, %v53_v1  ;;  %v29_v7 = vld [vmem:[%s1043_s1 + $0x80] sm:$0xff]  ;;  %v792_v9 = vcombine.high %v46_v2, %v54_v5  ;;  %v791_v10 = vcombine.low %v46_v2, %v54_v5  ;;  %v30_v12 = vld [vmem:[%s1043_s1 + $0x88] sm:$0xff]  ;;  %v48_v25 = vld [vmem:[%s1043_s1 + $0x118] sm:$0xff] }
   0x4   :  { %v37_v8 = vld [vmem:[%s1043_s1 + $0xc0] sm:$0xff]  ;;  %v38_v13 = vld [vmem:[%s1043_s1 + $0xc8] sm:$0xff]  ;;  %v56_v26 = vld [vmem:[%s1043_s1 + $0x158] sm:$0xff]  ;;  %v794_v29 = vcombine.high %v47_v23, %v55_v24  ;;  %v793_v36 = vcombine.low %v47_v23, %v55_v24 }
   0x5   :  { %v774_v11 = vcombine.high %v29_v7, %v37_v8  ;;  %v13_v14 = vld [vmem:[%s1043_s1] sm:$0xff]  ;;  %315 = vmatprep.subr.bf16.mxu0 %v790_v4  ;;  %v776_v15 = vcombine.high %v30_v12, %v38_v13  ;;  %v14_v17 = vld [vmem:[%s1043_s1 + $0x8] sm:$0xff]  ;;  %356 = vmatprep.subr.bf16.mxu1 %v792_v9  ;;  %v773_v19 = vcombine.low %v29_v7, %v37_v8  ;;  %v31_v31 = vld [vmem:[%s1043_s1 + $0x90] sm:$0xff] }
   0x6   :  { %v21_v16 = vld [vmem:[%s1043_s1 + $0x40] sm:$0xff]  ;;  %v22_v18 = vld [vmem:[%s1043_s1 + $0x48] sm:$0xff]  ;;  %316 = vmatpush1.bf16.msra.mxu0 %v789_v6  ;;  %357 = vmatpush1.bf16.msra.mxu1 %v791_v10  ;;  %v775_v20 = vcombine.low %v30_v12, %v38_v13  ;;  %v796_v30 = vcombine.high %v48_v25, %v56_v26  ;;  %v39_v32 = vld [vmem:[%s1043_s1 + $0xd0] sm:$0xff]  ;;  %v795_v37 = vcombine.low %v48_v25, %v56_v26 }
   0x7   :  { %317 = vmatprep.subr.bf16.mxu0 %v774_v11  ;;  %v758_v21 = vcombine.high %v13_v14, %v21_v16  ;;  %358 = vmatprep.subr.bf16.mxu1 %v776_v15  ;;  %v760_v22 = vcombine.high %v14_v17, %v22_v18  ;;  %v757_v27 = vcombine.low %v13_v14, %v21_v16  ;;  %v32_v33 = vld [vmem:[%s1043_s1 + $0x98] sm:$0xff]  ;;  %v911_v35 = vld [vmem:[%s1044_s0] sm:$0xf]  ;;  %v15_v40 = vld [vmem:[%s1043_s1 + $0x10] sm:$0xff] }
   0x8   :  { %v759_v28 = vcombine.low %v14_v17, %v22_v18  ;;  %v40_v34 = vld [vmem:[%s1043_s1 + $0xd8] sm:$0xff]  ;;  %v778_v38 = vcombine.high %v31_v31, %v39_v32  ;;  %v23_v41 = vld [vmem:[%s1043_s1 + $0x50] sm:$0xff]  ;;  %v777_v44 = vcombine.low %v31_v31, %v39_v32  ;;  %v49_v48 = vld [vmem:[%s1043_s1 + $0x120] sm:$0xff] }
   0x9   :  { %v780_v39 = vcombine.high %v32_v33, %v40_v34  ;;  %v16_v42 = vld [vmem:[%s1043_s1 + $0x18] sm:$0xff]  ;;  %v779_v45 = vcombine.low %v32_v33, %v40_v34  ;;  %v762_v46 = vcombine.high %v15_v40, %v23_v41  ;;  %v57_v49 = vld [vmem:[%s1043_s1 + $0x160] sm:$0xff]  ;;  %v50_v50 = vld [vmem:[%s1043_s1 + $0x128] sm:$0xff]  ;;  %v761_v52 = vcombine.low %v15_v40, %v23_v41 }
   0xa   :  { %318 = vmatpush1.bf16.msra.mxu0 %v773_v19  ;;  %359 = vmatpush1.bf16.msra.mxu1 %v775_v20  ;;  %v24_v43 = vld [vmem:[%s1043_s1 + $0x58] sm:$0xff]  ;;  %v58_v51 = vld [vmem:[%s1043_s1 + $0x168] sm:$0xff]  ;;  %v798_v54 = vcombine.high %v49_v48, %v57_v49  ;;  %v33_v56 = vld [vmem:[%s1043_s1 + $0xa0] sm:$0xff]  ;;  %v797_v60 = vcombine.low %v49_v48, %v57_v49 }
   0xb   :  { %319 = vmatprep.subr.bf16.mxu0 %v758_v21  ;;  %360 = vmatprep.subr.bf16.mxu1 %v760_v22  ;;  %v764_v47 = vcombine.high %v16_v42, %v24_v43  ;;  %v763_v53 = vcombine.low %v16_v42, %v24_v43  ;;  %v800_v55 = vcombine.high %v50_v50, %v58_v51  ;;  %v41_v57 = vld [vmem:[%s1043_s1 + $0xe0] sm:$0xff]  ;;  %v34_v58 = vld [vmem:[%s1043_s1 + $0xa8] sm:$0xff]  ;;  %v51_v9 = vld [vmem:[%s1043_s1 + $0x130] sm:$0xff] }
   0xc   :  { %v42_v59 = vld [vmem:[%s1043_s1 + $0xe8] sm:$0xff]  ;;  %v799_v61 = vcombine.low %v50_v50, %v58_v51  ;;  %v782_v62 = vcombine.high %v33_v56, %v41_v57  ;;  %v17_v0 = vld [vmem:[%s1043_s1 + $0x20] sm:$0xff]  ;;  %v781_v5 = vcombine.low %v33_v56, %v41_v57  ;;  %v59_v10 = vld [vmem:[%s1043_s1 + $0x170] sm:$0xff] }
   0xd   :  { %v784_v63 = vcombine.high %v34_v58, %v42_v59  ;;  %v25_v1 = vld [vmem:[%s1043_s1 + $0x60] sm:$0xff]  ;;  %v18_v2 = vld [vmem:[%s1043_s1 + $0x28] sm:$0xff]  ;;  %v783_v6 = vcombine.low %v34_v58, %v42_v59  ;;  %v52_v11 = vld [vmem:[%s1043_s1 + $0x138] sm:$0xff]  ;;  %v802_v15 = vcombine.high %v51_v9, %v59_v10  ;;  %v801_v21 = vcombine.low %v51_v9, %v59_v10 }
   0xe   :  { %320 = vmatpush1.bf16.msra.mxu0 %v757_v27  ;;  %361 = vmatpush1.bf16.msra.mxu1 %v759_v28  ;;  %v26_v4 = vld [vmem:[%s1043_s1 + $0x68] sm:$0xff]  ;;  %v766_v7 = vcombine.high %v17_v0, %v25_v1  ;;  %v60_v12 = vld [vmem:[%s1043_s1 + $0x178] sm:$0xff]  ;;  %v765_v13 = vcombine.low %v17_v0, %v25_v1  ;;  %v35_v17 = vld [vmem:[%s1043_s1 + $0xb0] sm:$0xff] }
   0xf   :  { %397 = vmatprep.subr.bf16.mxu0 %v794_v29  ;;  %438 = vmatprep.subr.bf16.mxu1 %v796_v30  ;;  %v768_v8 = vcombine.high %v18_v2, %v26_v4  ;;  %v767_v14 = vcombine.low %v18_v2, %v26_v4  ;;  %v804_v16 = vcombine.high %v52_v11, %v60_v12  ;;  %v43_v18 = vld [vmem:[%s1043_s1 + $0xf0] sm:$0xff]  ;;  %v36_v19 = vld [vmem:[%s1043_s1 + $0xb8] sm:$0xff] }
  0x10   :  { %v44_v20 = vld [vmem:[%s1043_s1 + $0xf8] sm:$0xff]  ;;  %v803_v22 = vcombine.low %v52_v11, %v60_v12  ;;  %v786_v23 = vcombine.high %v35_v17, %v43_v18  ;;  %v19_v25 = vld [vmem:[%s1043_s1 + $0x30] sm:$0xff]  ;;  %v785_v29 = vcombine.low %v35_v17, %v43_v18 }
  0x11   :  { %805 = vmatmul.mubr.msk.bf16.vlgmr.msra.gmra.mxu0 %vm301_vm0, %v911_v35  ;;  %806 = vmatmul.mubr.msk.bf16.vlgmr.msra.gmra.mxu1 %vm301_vm0, %v911_v35  ;;  %v788_v24 = vcombine.high %v36_v19, %v44_v20  ;;  %v27_v26 = vld [vmem:[%s1043_s1 + $0x70] sm:$0xff]  ;;  %v20_v27 = vld [vmem:[%s1043_s1 + $0x38] sm:$0xff]  ;;  %v787_v30 = vcombine.low %v36_v19, %v44_v20 }
  0x12   :  { %398 = vmatpush1.bf16.msra.mxu0 %v793_v36  ;;  %439 = vmatpush1.bf16.msra.mxu1 %v795_v37  ;;  %v28_v28 = vld [vmem:[%s1043_s1 + $0x78] sm:$0xff]  ;;  %v770_v31 = vcombine.high %v19_v25, %v27_v26  ;;  %v769_v33 = vcombine.low %v19_v25, %v27_v26 }
  0x13   :  { %399 = vmatprep.subr.bf16.mxu0 %v778_v38  ;;  %440 = vmatprep.subr.bf16.mxu1 %v780_v39  ;;  %v772_v32 = vcombine.high %v20_v27, %v28_v28  ;;  %v771_v34 = vcombine.low %v20_v27, %v28_v28 }
  0x14   :  { %419 = vmatprep.mubr.bf16.mxu0 %v830_v3  ;;  %460 = vmatprep.mubr.bf16.mxu1 %v830_v3 }
  0x16   :  { %400 = vmatpush1.bf16.msra.mxu0 %v777_v44  ;;  %441 = vmatpush1.bf16.msra.mxu1 %v779_v45 }
  0x17   :  { %401 = vmatprep.subr.bf16.mxu0 %v762_v46  ;;  %442 = vmatprep.subr.bf16.mxu1 %v764_v47 }
  0x1a   :  { %402 = vmatpush1.bf16.msra.mxu0 %v761_v52  ;;  %443 = vmatpush1.bf16.msra.mxu1 %v763_v53 }
  0x1b   :  { %479 = vmatprep.subr.bf16.mxu0 %v798_v54  ;;  %520 = vmatprep.subr.bf16.mxu1 %v800_v55 }
  0x1d   :  { %807 = vmatmul.mubr.msk.bf16.vlgmr.msra.gmra.mxu0 %vm301_vm0, %v911_v35  ;;  %808 = vmatmul.mubr.msk.bf16.vlgmr.msra.gmra.mxu1 %vm301_vm0, %v911_v35 }
  0x1e   :  { %480 = vmatpush1.bf16.msra.mxu0 %v797_v60  ;;  %521 = vmatpush1.bf16.msra.mxu1 %v799_v61 }
  0x1f   :  { %481 = vmatprep.subr.bf16.mxu0 %v782_v62  ;;  %522 = vmatprep.subr.bf16.mxu1 %v784_v63 }
  0x20   :  { %501 = vmatprep.mubr.bf16.mxu0 %v830_v3  ;;  %542 = vmatprep.mubr.bf16.mxu1 %v830_v3 }
  0x22   :  { %482 = vmatpush1.bf16.msra.mxu0 %v781_v5  ;;  %523 = vmatpush1.bf16.msra.mxu1 %v783_v6 }
  0x23   :  { %483 = vmatprep.subr.bf16.mxu0 %v766_v7  ;;  %524 = vmatprep.subr.bf16.mxu1 %v768_v8 }
  0x26   :  { %484 = vmatpush1.bf16.msra.mxu0 %v765_v13  ;;  %525 = vmatpush1.bf16.msra.mxu1 %v767_v14 }
  0x27   :  { %561 = vmatprep.subr.bf16.mxu0 %v802_v15  ;;  %602 = vmatprep.subr.bf16.mxu1 %v804_v16 }
  0x29   :  { %809 = vmatmul.mubr.msk.bf16.vlgmr.msra.gmra.mxu0 %vm301_vm0, %v911_v35  ;;  %810 = vmatmul.mubr.msk.bf16.vlgmr.msra.gmra.mxu1 %vm301_vm0, %v911_v35 }
  0x2a   :  { %562 = vmatpush1.bf16.msra.mxu0 %v801_v21  ;;  %603 = vmatpush1.bf16.msra.mxu1 %v803_v22 }
  0x2b   :  { %563 = vmatprep.subr.bf16.mxu0 %v786_v23  ;;  %604 = vmatprep.subr.bf16.mxu1 %v788_v24 }
  0x2c   :  { %583 = vmatprep.mubr.bf16.mxu0 %v830_v3  ;;  %624 = vmatprep.mubr.bf16.mxu1 %v830_v3 }
  0x2e   :  { %564 = vmatpush1.bf16.msra.mxu0 %v785_v29  ;;  %605 = vmatpush1.bf16.msra.mxu1 %v787_v30 }
  0x2f   :  { %565 = vmatprep.subr.bf16.mxu0 %v770_v31  ;;  %606 = vmatprep.subr.bf16.mxu1 %v772_v32 }
  0x32   :  { %566 = vmatpush1.bf16.msra.mxu0 %v769_v33  ;;  %607 = vmatpush1.bf16.msra.mxu1 %v771_v34 }
  0x35   :  { %811 = vmatmul.mubr.msk.bf16.vlgmr.msra.gmra.mxu0 %vm301_vm0, %v911_v35  ;;  %812 = vmatmul.mubr.msk.bf16.vlgmr.msra.gmra.mxu1 %vm301_vm0, %v911_v35 }
  0xd1   :  { %v339_v36 = vpop.f32.mrf.mxu0  ;;  %v380_v38 = vpop.f32.mrf.mxu1 }
  0xd2   :  { %v649_v37 = vmul.f32 0.2, %v339_v36  ;;  %vm633_vm1 = vcmp.ge.f32.partialorder %v339_v36, 0.0  ;;  %v651_v39 = vmul.f32 0.2, %v380_v38  ;;  %vm635_vm2 = vcmp.ge.f32.partialorder %v380_v38, 0.0 }
  0xd3   :  { %v341_v3 = vpop.f32.mrf.mxu0  ;;  %v382_v41 = vpop.f32.mrf.mxu1 }
  0xd4   :  { %vm634_vm3 = vcmp.ge.f32.partialorder %v341_v3, 0.0  ;;  %v650_v40 = vmul.f32 0.2, %v341_v3  ;;  %vm636_vm4 = vcmp.ge.f32.partialorder %v382_v41, 0.0  ;;  %v652_v42 = vmul.f32 0.2, %v382_v41 }
  0xd5   :  { %v343_v43 = vpop.f32.mrf.mxu0  ;;  %v665_v44 = vsel %vm633_vm1, %v339_v36, %v649_v37  ;;  %v384_v46 = vpop.f32.mrf.mxu1  ;;  %v667_v47 = vsel %vm635_vm2, %v380_v38, %v651_v39 }
  0xd6   :  { %v666_v45 = vsel %vm634_vm3, %v341_v3, %v650_v40  ;;  %v668_v49 = vsel %vm636_vm4, %v382_v41, %v652_v42 }
  0xd7   :  { %v821_v48 = vpack.c.bf16 %v666_v45, %v665_v44  ;;  %v344_v35 = vpop.f32.mrf.mxu0  ;;  %v822_v50 = vpack.c.bf16 %v668_v49, %v667_v47  ;;  %v385_v51 = vpop.f32.mrf.mxu1 }
  0xd9   :  { %745 = vst [vmem:[%s1045_s2] sm:$0xff] %v821_v48  ;;  %746 = vst [vmem:[%s1045_s2 + $0x8] sm:$0xff] %v822_v50 }
  0xdd   :  { %v421_v52 = vpop.f32.mrf.mxu0  ;;  %v462_v54 = vpop.f32.mrf.mxu1 }
  0xde   :  { %v653_v53 = vmul.f32 0.2, %v421_v52  ;;  %vm637_vm5 = vcmp.ge.f32.partialorder %v421_v52, 0.0  ;;  %v655_v55 = vmul.f32 0.2, %v462_v54  ;;  %vm639_vm6 = vcmp.ge.f32.partialorder %v462_v54, 0.0 }
  0xdf   :  { %v423_v56 = vpop.f32.mrf.mxu0  ;;  %v464_v58 = vpop.f32.mrf.mxu1 }
  0xe0   :  { %vm638_vm7 = vcmp.ge.f32.partialorder %v423_v56, 0.0  ;;  %v654_v57 = vmul.f32 0.2, %v423_v56  ;;  %vm640_vm8 = vcmp.ge.f32.partialorder %v464_v58, 0.0  ;;  %v656_v59 = vmul.f32 0.2, %v464_v58 }
  0xe1   :  { %v425_v60 = vpop.f32.mrf.mxu0  ;;  %v669_v61 = vsel %vm637_vm5, %v421_v52, %v653_v53  ;;  %v466_v63 = vpop.f32.mrf.mxu1  ;;  %v671_v0 = vsel %vm639_vm6, %v462_v54, %v655_v55 }
  0xe2   :  { %v670_v62 = vsel %vm638_vm7, %v423_v56, %v654_v57  ;;  %v672_v2 = vsel %vm640_vm8, %v464_v58, %v656_v59 }
  0xe3   :  { %v823_v1 = vpack.c.bf16 %v670_v62, %v669_v61  ;;  %v426_v4 = vpop.f32.mrf.mxu0  ;;  %v824_v5 = vpack.c.bf16 %v672_v2, %v671_v0  ;;  %v467_v6 = vpop.f32.mrf.mxu1 }
  0xe5   :  { %747 = vst [vmem:[%s1045_s2 + $0x10] sm:$0xff] %v823_v1  ;;  %748 = vst [vmem:[%s1045_s2 + $0x18] sm:$0xff] %v824_v5 }
  0xe9   :  { %v503_v7 = vpop.f32.mrf.mxu0  ;;  %v544_v9 = vpop.f32.mrf.mxu1 }
  0xea   :  { %v657_v8 = vmul.f32 0.2, %v503_v7  ;;  %vm641_vm9 = vcmp.ge.f32.partialorder %v503_v7, 0.0  ;;  %v659_v10 = vmul.f32 0.2, %v544_v9  ;;  %vm643_vm10 = vcmp.ge.f32.partialorder %v544_v9, 0.0 }
  0xeb   :  { %v505_v11 = vpop.f32.mrf.mxu0  ;;  %v546_v13 = vpop.f32.mrf.mxu1 }
  0xec   :  { %vm642_vm11 = vcmp.ge.f32.partialorder %v505_v11, 0.0  ;;  %v658_v12 = vmul.f32 0.2, %v505_v11  ;;  %vm644_vm12 = vcmp.ge.f32.partialorder %v546_v13, 0.0  ;;  %v660_v14 = vmul.f32 0.2, %v546_v13 }
  0xed   :  { %v507_v15 = vpop.f32.mrf.mxu0  ;;  %v673_v16 = vsel %vm641_vm9, %v503_v7, %v657_v8  ;;  %v548_v18 = vpop.f32.mrf.mxu1  ;;  %v675_v19 = vsel %vm643_vm10, %v544_v9, %v659_v10 }
  0xee   :  { %v674_v17 = vsel %vm642_vm11, %v505_v11, %v658_v12  ;;  %v676_v21 = vsel %vm644_vm12, %v546_v13, %v660_v14 }
  0xef   :  { %v825_v20 = vpack.c.bf16 %v674_v17, %v673_v16  ;;  %v508_v22 = vpop.f32.mrf.mxu0  ;;  %v826_v23 = vpack.c.bf16 %v676_v21, %v675_v19  ;;  %v549_v24 = vpop.f32.mrf.mxu1 }
  0xf1   :  { %749 = vst [vmem:[%s1045_s2 + $0x20] sm:$0xff] %v825_v20  ;;  %750 = vst [vmem:[%s1045_s2 + $0x28] sm:$0xff] %v826_v23 }
  0xf5   :  { %v585_v25 = vpop.f32.mrf.mxu0  ;;  %v626_v27 = vpop.f32.mrf.mxu1 }
  0xf6   :  { %v661_v26 = vmul.f32 0.2, %v585_v25  ;;  %vm645_vm13 = vcmp.ge.f32.partialorder %v585_v25, 0.0  ;;  %v663_v28 = vmul.f32 0.2, %v626_v27  ;;  %vm647_vm14 = vcmp.ge.f32.partialorder %v626_v27, 0.0 }
  0xf7   :  { %v587_v29 = vpop.f32.mrf.mxu0  ;;  %v628_v31 = vpop.f32.mrf.mxu1 }
  0xf8   :  { %vm646_vm15 = vcmp.ge.f32.partialorder %v587_v29, 0.0  ;;  %v662_v30 = vmul.f32 0.2, %v587_v29  ;;  %vm648_vm0 = vcmp.ge.f32.partialorder %v628_v31, 0.0  ;;  %v664_v32 = vmul.f32 0.2, %v628_v31 }
  0xf9   :  { %v589_v33 = vpop.f32.mrf.mxu0  ;;  %v677_v34 = vsel %vm645_vm13, %v585_v25, %v661_v26  ;;  %v630_v37 = vpop.f32.mrf.mxu1  ;;  %v679_v38 = vsel %vm647_vm14, %v626_v27, %v663_v28 }
  0xfa   :  { %v678_v36 = vsel %vm646_vm15, %v587_v29, %v662_v30  ;;  %v680_v3 = vsel %vm648_vm0, %v628_v31, %v664_v32 }
  0xfb   :  { %v827_v39 = vpack.c.bf16 %v678_v36, %v677_v34  ;;  %v590_v40 = vpop.f32.mrf.mxu0  ;;  %v828_v41 = vpack.c.bf16 %v680_v3, %v679_v38  ;;  %v631_v42 = vpop.f32.mrf.mxu1 }
  0xfd   :  { %751 = vst [vmem:[%s1045_s2 + $0x30] sm:$0xff] %v827_v39  ;;  %752 = vst [vmem:[%s1045_s2 + $0x38] sm:$0xff] %v828_v41 }

// kernel: _lambda_.4
= control target key start
LH: loop header
LB: loop body
LE: loop exit
PB: predicated region body
PF: predicated region fallthrough
CT: control target
= control target key end

     0   :  { %v555_v1 = vmov 0   ;;  %s728_s1 = inlined_call_operand.vmem [shape: bf16[128,512], index: 1, kind: input, shape index: {}]   ;;  %s729_s0 = inlined_call_operand.vmem [shape: bf16[16,128], index: 0, kind: input, shape index: {}]   ;;  %s730_s2 = inlined_call_operand.vmem [shape: f32[16,1], index: 2, kind: input, shape index: {}]   ;;  %s731_s3 = inlined_call_operand.vmem [shape: f32[16,1], index: 3, kind: input, shape index: {}]   ;;  %s732_s4 = inlined_call_operand.vmem [shape: bf16[16,512], index: 4, kind: output, shape index: {}]  }
   0x1   :  { %v502_v0 = vld [vmem:[%s728_s1 + $0xe4] ss:$16 sps:$4 sm:$0xff]   ;;  %250 = vmatprep.mubr.bf16.mxu0 %v555_v1  ;;  %293 = vmatprep.mubr.bf16.mxu1 %v555_v1  ;;  %v504_v2 = vld [vmem:[%s728_s1 + $0xec] ss:$16 sps:$4 sm:$0xff]   ;;  %v506_v3 = vld [vmem:[%s728_s1 + $0xe0] ss:$16 sps:$4 sm:$0xff]  }
   0x2   :  { %501 = vset.pattern.permute.xlu1 %v555_v1  ;;  %500 = vset.pattern.permute.xlu0 %v555_v1  ;;  %v507_v4 = vld [vmem:[%s728_s1 + $0xe8] ss:$16 sps:$4 sm:$0xff]   ;;  %v508_v5 = vld [vmem:[%s728_s1 + $0xc4] ss:$16 sps:$4 sm:$0xff]   ;;  %v510_v6 = vld [vmem:[%s728_s1 + $0xcc] ss:$16 sps:$4 sm:$0xff]  }
   0x3   :  { %218 = vmatprep.subr.bf16.mxu0 %v502_v0  ;;  %261 = vmatprep.subr.bf16.mxu1 %v504_v2  ;;  %v512_v7 = vld [vmem:[%s728_s1 + $0xc0] ss:$16 sps:$4 sm:$0xff]   ;;  %v513_v8 = vld [vmem:[%s728_s1 + $0xc8] ss:$16 sps:$4 sm:$0xff]   ;;  %v514_v9 = vld [vmem:[%s728_s1 + $0xa4] ss:$16 sps:$4 sm:$0xff]  }
   0x4   :  { %219 = vmatpush1.bf16.msra.mxu0 %v506_v3  ;;  %262 = vmatpush1.bf16.msra.mxu1 %v507_v4  ;;  %v516_v10 = vld [vmem:[%s728_s1 + $0xac] ss:$16 sps:$4 sm:$0xff]   ;;  %v518_v11 = vld [vmem:[%s728_s1 + $0xa0] ss:$16 sps:$4 sm:$0xff]   ;;  %v519_v12 = vld [vmem:[%s728_s1 + $0xa8] ss:$16 sps:$4 sm:$0xff]  }
   0x5   :  { %220 = vmatprep.subr.bf16.mxu0 %v508_v5  ;;  %263 = vmatprep.subr.bf16.mxu1 %v510_v6  ;;  %v520_v13 = vld [vmem:[%s728_s1 + $0x84] ss:$16 sps:$4 sm:$0xff]   ;;  %v522_v14 = vld [vmem:[%s728_s1 + $0x8c] ss:$16 sps:$4 sm:$0xff]   ;;  %v524_v15 = vld [vmem:[%s728_s1 + $0x80] ss:$16 sps:$4 sm:$0xff]  }
   0x6   :  { %v525_v16 = vld [vmem:[%s728_s1 + $0x88] ss:$16 sps:$4 sm:$0xff]   ;;  %v526_v17 = vld [vmem:[%s728_s1 + $0x64] ss:$16 sps:$4 sm:$0xff]   ;;  %v528_v18 = vld [vmem:[%s728_s1 + $0x6c] ss:$16 sps:$4 sm:$0xff]  }
   0x7   :  { %v530_v19 = vld [vmem:[%s728_s1 + $0x60] ss:$16 sps:$4 sm:$0xff]   ;;  %v531_v20 = vld [vmem:[%s728_s1 + $0x68] ss:$16 sps:$4 sm:$0xff]   ;;  %v532_v21 = vld [vmem:[%s728_s1 + $0x44] ss:$16 sps:$4 sm:$0xff]  }
   0x8   :  { %221 = vmatpush1.bf16.msra.mxu0 %v512_v7  ;;  %264 = vmatpush1.bf16.msra.mxu1 %v513_v8  ;;  %v534_v22 = vld [vmem:[%s728_s1 + $0x4c] ss:$16 sps:$4 sm:$0xff]   ;;  %v536_v23 = vld [vmem:[%s728_s1 + $0x40] ss:$16 sps:$4 sm:$0xff]   ;;  %v537_v24 = vld [vmem:[%s728_s1 + $0x48] ss:$16 sps:$4 sm:$0xff]  }
   0x9   :  { %222 = vmatprep.subr.bf16.mxu0 %v514_v9  ;;  %265 = vmatprep.subr.bf16.mxu1 %v516_v10  ;;  %v538_v25 = vld [vmem:[%s728_s1 + $0x24] ss:$16 sps:$4 sm:$0xff]   ;;  %v540_v26 = vld [vmem:[%s728_s1 + $0x2c] ss:$16 sps:$4 sm:$0xff]   ;;  %v542_v27 = vld [vmem:[%s728_s1 + $0x20] ss:$16 sps:$4 sm:$0xff]  }
   0xa   :  { %v543_v28 = vld [vmem:[%s728_s1 + $0x28] ss:$16 sps:$4 sm:$0xff]   ;;  %v544_v29 = vld [vmem:[%s728_s1 + $0x4] ss:$16 sps:$4 sm:$0xff]   ;;  %v546_v30 = vld [vmem:[%s728_s1 + $0xc] ss:$16 sps:$4 sm:$0xff]  }
   0xb   :  { %v548_v31 = vld [vmem:[%s728_s1] ss:$16 sps:$4 sm:$0xff]   ;;  %v549_v32 = vld [vmem:[%s728_s1 + $0x8] ss:$16 sps:$4 sm:$0xff]  }
   0xc   :  { %223 = vmatpush1.bf16.msra.mxu0 %v518_v11  ;;  %266 = vmatpush1.bf16.msra.mxu1 %v519_v12  ;;  %v550_v33 = vld [vmem:[%s729_s0] sm:$0xff]   ;;  %v363_v55 = vld [vmem:[%s730_s2 + $0x8] sm:$0xff] }
   0xd   :  { %224 = vmatprep.subr.bf16.mxu0 %v520_v13  ;;  %267 = vmatprep.subr.bf16.mxu1 %v522_v14  ;;  %v382_v56 = vld [vmem:[%s731_s3] sm:$0xff]  ;;  %v383_v1 = vld [vmem:[%s731_s3 + $0x8] sm:$0xff] }
   0xe   :  { %v362_v57 = vld [vmem:[%s730_s2] sm:$0xff] }
  0x10   :  { %225 = vmatpush1.bf16.msra.mxu0 %v524_v15  ;;  %268 = vmatpush1.bf16.msra.mxu1 %v525_v16 }
  0x11   :  { %226 = vmatprep.subr.bf16.mxu0 %v526_v17  ;;  %269 = vmatprep.subr.bf16.mxu1 %v528_v18 }
  0x14   :  { %227 = vmatpush1.bf16.msra.mxu0 %v530_v19  ;;  %270 = vmatpush1.bf16.msra.mxu1 %v531_v20 }
  0x15   :  { %228 = vmatprep.subr.bf16.mxu0 %v532_v21  ;;  %271 = vmatprep.subr.bf16.mxu1 %v534_v22 }
  0x18   :  { %229 = vmatpush1.bf16.msra.mxu0 %v536_v23  ;;  %272 = vmatpush1.bf16.msra.mxu1 %v537_v24 }
  0x19   :  { %230 = vmatprep.subr.bf16.mxu0 %v538_v25  ;;  %273 = vmatprep.subr.bf16.mxu1 %v540_v26 }
  0x1c   :  { %231 = vmatpush1.bf16.msra.mxu0 %v542_v27  ;;  %274 = vmatpush1.bf16.msra.mxu1 %v543_v28 }
  0x1d   :  { %232 = vmatprep.subr.bf16.mxu0 %v544_v29  ;;  %275 = vmatprep.subr.bf16.mxu1 %v546_v30 }
  0x20   :  { %233 = vmatpush1.bf16.msra.mxu0 %v548_v31  ;;  %276 = vmatpush1.bf16.msra.mxu1 %v549_v32 }
  0x23   :  { %251 = vmatmul.mubr.bf16.vlgmr.msra.gmra.mxu0 %v550_v33  ;;  %294 = vmatmul.mubr.bf16.vlgmr.msra.gmra.mxu1 %v550_v33 }
  0xe3   :  { %v252_v34 = vpop.f32.mrf.mxu0  ;;  %v295_v35 = vpop.f32.mrf.mxu1 }
  0xe4   :  { %v316_v38 = vmul.f32 %v252_v34, %v252_v34  ;;  %v318_v41 = vmul.f32 %v295_v35, %v295_v35 }
  0xe5   :  { %v254_v36 = vpop.f32.mrf.mxu0  ;;  %v297_v37 = vpop.f32.mrf.mxu1 }
  0xe6   :  { %v304_v39 = vadd.f32 %v254_v36, %v252_v34  ;;  %v317_v40 = vmul.f32 %v254_v36, %v254_v36  ;;  %v319_v49 = vmul.f32 %v297_v37, %v297_v37 }
  0xe7   :  { %v680_v42 = vpop.f32.mrf.mxu0  ;;  %v682_v45 = vpop.f32.mrf.mxu1 }
  0xe8   :  { %v305_v43 = vadd.f32 %v304_v39, %v295_v35  ;;  %v324_v44 = vadd.f32 %v317_v40, %v316_v38  ;;  %v320_v59 = vmul.f32 %v680_v42, %v680_v42  ;;  %v322_v61 = vmul.f32 %v682_v45, %v682_v45 }
  0xe9   :  { %v684_v46 = vpop.f32.mrf.mxu0  ;;  %v689_v52 = vpop.f32.mrf.mxu1 }
  0xea   :  { %v309_v47 = vadd.f32 %v684_v46, %v680_v42  ;;  %v306_v48 = vadd.f32 %v305_v43, %v297_v37  ;;  %v325_v50 = vadd.f32 %v324_v44, %v318_v41  ;;  %v321_v58 = vmul.f32 %v684_v46, %v684_v46 }
  0xeb   :  { %v323_v63 = vmul.f32 %v689_v52, %v689_v52 }
  0xec   :  { %307 = vadd.xlane.f32.xlu0 %v306_v48  ;;  %v310_v51 = vadd.f32 %v309_v47, %v682_v45  ;;  %v326_v53 = vadd.f32 %v325_v50, %v319_v49  ;;  %v329_v60 = vadd.f32 %v321_v58, %v320_v59 }
  0xee   :  { %v311_v54 = vadd.f32 %v310_v51, %v689_v52  ;;  %327 = vadd.xlane.f32.xlu1 %v326_v53  ;;  %v330_v62 = vadd.f32 %v329_v60, %v322_v61 }
  0xf0   :  { %312 = vadd.xlane.f32.xlu0 %v311_v54  ;;  %v331_v0 = vadd.f32 %v330_v62, %v323_v63 }
  0xff   :  { %371 = vperm.xlu1 %501, %v363_v55  }
 0x103   :  { %386 = vperm.xlu1 %501, %v382_v56  }
 0x106   :  { %366 = vperm.xlu0 %500, %v362_v57  }
 0x127   :  { %332 = vadd.xlane.f32.xlu1 %v331_v0 }
 0x138   :  { %391 = vperm.xlu1 %501, %v383_v1  }
 0x175   :  { %v308_v2 = vpop.xlane.xlu0 %307 }
 0x176   :  { %v314_v3 = vmul.f32 0.001953125, %v308_v2 }
 0x177   :  { %v328_v4 = vpop.xlane.xlu1 %327 }
 0x178   :  { %v336_v5 = vmul.f32 %v314_v3, %v314_v3  ;;  %v334_v6 = vmul.f32 0.001953125, %v328_v4  ;;  %v342_v12 = vsub.f32 %v252_v34, %v314_v3  ;;  %v343_v13 = vsub.f32 %v254_v36, %v314_v3 }
 0x179   :  { %v313_v10 = vpop.xlane.xlu0 %312  ;;  %v344_v14 = vsub.f32 %v295_v35, %v314_v3  ;;  %v345_v15 = vsub.f32 %v297_v37, %v314_v3 }
 0x17a   :  { %v338_v7 = vsub.f32 %v334_v6, %v336_v5  ;;  %v315_v41 = vmul.f32 0.001953125, %v313_v10 }
 0x17b   :  { %v372_v11 = vpop.permute.xlu1 %371 }
 0x17c   :  { %v340_v8 = vmax.f32 %v338_v7, 0.0  ;;  %v337_v47 = vmul.f32 %v315_v41, %v315_v41  ;;  %v346_v51 = vsub.f32 %v680_v42, %v315_v41  ;;  %v347_v53 = vsub.f32 %v684_v46, %v315_v41 }
 0x17d   :  { %v348_v54 = vsub.f32 %v682_v45, %v315_v41  ;;  %v349_v55 = vsub.f32 %v689_v52, %v315_v41 }
 0x17e   :  { %v350_v9 = vadd.f32 1e-05, %v340_v8 }
 0x17f   :  { %v387_v26 = vpop.permute.xlu1 %386 }
 0x180   :  { %551 = vrsqrt.f32 %v350_v9 }
 0x181   :  { %v367_v17 = vpop.permute.xlu0 %366 }
 0x18d   :  { %v552_v16 = vpop.eup %551 }
 0x18e   :  { %v354_v18 = vmul.f32 %v552_v16, %v342_v12  ;;  %v355_v19 = vmul.f32 %v552_v16, %v343_v13  ;;  %v356_v20 = vmul.f32 %v552_v16, %v344_v14  ;;  %v357_v21 = vmul.f32 %v552_v16, %v345_v15 }
 0x190   :  { %v374_v22 = vmul.f32 %v367_v17, %v354_v18  ;;  %v375_v23 = vmul.f32 %v367_v17, %v355_v19  ;;  %v376_v24 = vmul.f32 %v367_v17, %v356_v20  ;;  %v377_v25 = vmul.f32 %v367_v17, %v357_v21 }
 0x192   :  { %v394_v27 = vadd.f32 %v387_v26, %v374_v22  ;;  %v395_v28 = vadd.f32 %v387_v26, %v375_v23  ;;  %v396_v29 = vadd.f32 %v387_v26, %v376_v24  ;;  %v397_v30 = vadd.f32 %v387_v26, %v377_v25 }
 0x194   :  { %vm402_vm0 = vcmp.ge.f32.partialorder %v394_v27, 0.0  ;;  %vm403_vm1 = vcmp.ge.f32.partialorder %v395_v28, 0.0  ;;  %vm404_vm2 = vcmp.ge.f32.partialorder %v396_v29, 0.0  ;;  %vm405_vm3 = vcmp.ge.f32.partialorder %v397_v30, 0.0 }
 0x195   :  { %v410_v31 = vmul.f32 0.2, %v394_v27  ;;  %v411_v32 = vmul.f32 0.2, %v395_v28  ;;  %v412_v33 = vmul.f32 0.2, %v396_v29 }
 0x196   :  { %v413_v34 = vmul.f32 0.2, %v397_v30 }
 0x197   :  { %v418_v35 = vsel %vm402_vm0, %v394_v27, %v410_v31  ;;  %v419_v36 = vsel %vm403_vm1, %v395_v28, %v411_v32  ;;  %v420_v37 = vsel %vm404_vm2, %v396_v29, %v412_v33 }
 0x198   :  { %v421_v38 = vsel %vm405_vm3, %v397_v30, %v413_v34  ;;  %v495_v39 = vpack.c.bf16 %v419_v36, %v418_v35 }
 0x199   :  { %v496_v40 = vpack.c.bf16 %v421_v38, %v420_v37 }
 0x19a   :  { %450 = vst [vmem:[%s732_s4] sm:$0xff] %v495_v39 }
 0x19b   :  { %451 = vst [vmem:[%s732_s4 + $0x8] sm:$0xff] %v496_v40 }
 0x1b0   :  { %v333_v43 = vpop.xlane.xlu1 %332 }
 0x1b1   :  { %v335_v44 = vmul.f32 0.001953125, %v333_v43 }
 0x1b3   :  { %v339_v48 = vsub.f32 %v335_v44, %v337_v47 }
 0x1b4   :  { %v392_v1 = vpop.permute.xlu1 %391 }
 0x1b5   :  { %v341_v49 = vmax.f32 %v339_v48, 0.0 }
 0x1b7   :  { %v351_v50 = vadd.f32 1e-05, %v341_v49 }
 0x1b9   :  { %553 = vrsqrt.f32 %v351_v50 }
 0x1c6   :  { %v554_v56 = vpop.eup %553 }
 0x1c7   :  { %v358_v57 = vmul.f32 %v554_v56, %v346_v51  ;;  %v359_v58 = vmul.f32 %v554_v56, %v347_v53  ;;  %v360_v59 = vmul.f32 %v554_v56, %v348_v54  ;;  %v361_v60 = vmul.f32 %v554_v56, %v349_v55 }
 0x1c9   :  { %v378_v61 = vmul.f32 %v372_v11, %v358_v57  ;;  %v379_v62 = vmul.f32 %v372_v11, %v359_v58  ;;  %v380_v63 = vmul.f32 %v372_v11, %v360_v59  ;;  %v381_v0 = vmul.f32 %v372_v11, %v361_v60 }
 0x1cb   :  { %v398_v2 = vadd.f32 %v392_v1, %v378_v61  ;;  %v399_v3 = vadd.f32 %v392_v1, %v379_v62  ;;  %v400_v4 = vadd.f32 %v392_v1, %v380_v63  ;;  %v401_v42 = vadd.f32 %v392_v1, %v381_v0 }
 0x1cd   :  { %vm406_vm4 = vcmp.ge.f32.partialorder %v398_v2, 0.0  ;;  %vm407_vm5 = vcmp.ge.f32.partialorder %v399_v3, 0.0  ;;  %vm408_vm6 = vcmp.ge.f32.partialorder %v400_v4, 0.0  ;;  %vm409_vm7 = vcmp.ge.f32.partialorder %v401_v42, 0.0 }
 0x1ce   :  { %v414_v45 = vmul.f32 0.2, %v398_v2  ;;  %v415_v46 = vmul.f32 0.2, %v399_v3  ;;  %v416_v52 = vmul.f32 0.2, %v400_v4 }
 0x1cf   :  { %v417_v5 = vmul.f32 0.2, %v401_v42 }
 0x1d0   :  { %v422_v6 = vsel %vm406_vm4, %v398_v2, %v414_v45  ;;  %v423_v7 = vsel %vm407_vm5, %v399_v3, %v415_v46  ;;  %v424_v8 = vsel %vm408_vm6, %v400_v4, %v416_v52 }
 0x1d1   :  { %v425_v9 = vsel %vm409_vm7, %v401_v42, %v417_v5  ;;  %v497_v10 = vpack.c.bf16 %v423_v7, %v422_v6 }
 0x1d2   :  { %v498_v12 = vpack.c.bf16 %v425_v9, %v424_v8 }
 0x1d3   :  { %452 = vst [vmem:[%s732_s4 + $0x10] sm:$0xff] %v497_v10 }
 0x1d4   :  { %453 = vst [vmem:[%s732_s4 + $0x18] sm:$0xff] %v498_v12 }

// kernel: _lambda_.5
= control target key start
LH: loop header
LB: loop body
LE: loop exit
PB: predicated region body
PF: predicated region fallthrough
CT: control target
= control target key end

     0   :  { %v4977_v20 = vmov 0   ;;  %vm2444_vm4 = vcmask 261120   ;;  %s4980_s11 = smov 118   ;;  %s4982_s12 = smov 124   ;;  %vm3365_vm13 = vcmask 15360   ;;  %vm3367_vm14 = vcmask 9216   ;;  %s6118_s1 = inlined_call_operand.vmem [shape: bf16[256,128], index: 1, kind: input, shape index: {}]   ;;  %s6119_s0 = inlined_call_operand.vmem [shape: bf16[32,256], index: 0, kind: input, shape index: {}]   ;;  %s6120_s2 = inlined_call_operand.vmem [shape: f32[32,1], index: 2, kind: input, shape index: {}]   ;;  %s6121_s3 = inlined_call_operand.vmem [shape: f32[32,1], index: 3, kind: input, shape index: {}]   ;;  %s6122_s6 = inlined_call_operand.vmem [shape: f32[64,1], index: 6, kind: input, shape index: {}]   ;;  %s6123_s7 = inlined_call_operand.vmem [shape: f32[64,1], index: 7, kind: input, shape index: {}]   ;;  %s6124_s5 = inlined_call_operand.vmem [shape: bf16[16,128,32], index: 5, kind: input, shape index: {}]   ;;  %s6125_s4 = inlined_call_operand.vmem [shape: bf16[64,512], index: 4, kind: input, shape index: {}]   ;;  %s6126_s8 = inlined_call_operand.vmem [shape: bf16[10,1024], index: 8, kind: input, shape index: {}]   ;;  %s6127_s9 = inlined_call_operand.vmem [shape: f32[10,1], index: 9, kind: input, shape index: {}]   ;;  %s6128_s10 = inlined_call_operand.vmem [shape: f32[10,2], index: 10, kind: output, shape index: {}]  }
   0x1   :  { %v4779_v0 = vld [vmem:[%s6118_s1 + $0x78] sm:$0xff]   ;;  %v4781_v2 = vld [vmem:[%s6118_s1 + $0x70] sm:$0xff]   ;;  %v4783_v4 = vld [vmem:[%s6118_s1 + $0x68] sm:$0xff]   ;;  %4478 = vset.pattern.permute.xlu1 %v4977_v20  ;;  %4477 = vset.pattern.permute.xlu0 %v4977_v20  ;;  %s4985_s13 = smov 106   ;;  %s4986_s14 = smov 110  }
   0x2   :  { %v4780_v1 = vld [vmem:[%s6118_s1 + $0x38] sm:$0xff]   ;;  %3785 = vmatprep.subr.bf16.mxu0 %v4779_v0  ;;  %v4782_v3 = vld [vmem:[%s6118_s1 + $0x30] sm:$0xff]   ;;  %v4784_v5 = vld [vmem:[%s6118_s1 + $0x28] sm:$0xff]   ;;  %s4987_s15 = smov 102   ;;  %s4989_s23 = smov 112  }
   0x3   :  { %3786 = vmatpush3.bf16.msra.mxu0 %v4780_v1  ;;  %v4785_v6 = vld [vmem:[%s6118_s1 + $0x60] sm:$0xff]   ;;  %v4787_v8 = vld [vmem:[%s6118_s1 + $0x58] sm:$0xff]   ;;  %v4789_v10 = vld [vmem:[%s6118_s1 + $0x50] sm:$0xff]   ;;  %s4990_s24 = smov 108   ;;  %s4991_s25 = smov 104  }
   0x4   :  { %3787 = vmatprep.subr.bf16.mxu0 %v4781_v2  ;;  %v4786_v7 = vld [vmem:[%s6118_s1 + $0x20] sm:$0xff]   ;;  %v4788_v9 = vld [vmem:[%s6118_s1 + $0x18] sm:$0xff]   ;;  %v4790_v12 = vld [vmem:[%s6118_s1 + $0x10] sm:$0xff]   ;;  %s4992_s26 = smov 100  }
   0x5   :  { %v4797_v11 = vld [vmem:[%s6119_s0 + $0x4] ss:$8 sps:$4 sm:$0xff]   ;;  %v4795_v17 = vld [vmem:[%s6119_s0] ss:$8 sps:$4 sm:$0xff]   ;;  %v4798_v18 = vld [vmem:[%s6119_s0 + $0x14] ss:$8 sps:$4 sm:$0xff]  }
   0x6   :  { %220 = vmatprep.mubr.bf16.mxu0 %v4797_v11  ;;  %v4791_v13 = vld [vmem:[%s6118_s1 + $0x48] sm:$0xff]   ;;  %v4793_v15 = vld [vmem:[%s6118_s1 + $0x40] sm:$0xff]   ;;  %v4800_v19 = vld [vmem:[%s6119_s0 + $0x10] ss:$8 sps:$4 sm:$0xff]   ;;  %s4983_s0 = smov 116  }
   0x7   :  { %3788 = vmatpush3.bf16.msra.mxu0 %v4782_v3  ;;  %v4792_v14 = vld [vmem:[%s6118_s1 + $0x8] sm:$0xff]   ;;  %v4794_v16 = vld [vmem:[%s6118_s1] sm:$0xff]   ;;  %v295_v34 = vld [vmem:[%s6120_s2 + $0x10] sm:$0xff]  ;;  %s4984_s1 = smov 120  }
   0x8   :  { %3789 = vmatprep.subr.bf16.mxu0 %v4783_v4  ;;  %v294_v33 = vld [vmem:[%s6120_s2 + $0x8] sm:$0xff]  ;;  %v293_v35 = vld [vmem:[%s6120_s2] sm:$0xff]  ;;  %v296_v36 = vld [vmem:[%s6120_s2 + $0x18] sm:$0xff] }
   0x9   :  { %v2579_v37 = vld [vmem:[%s6122_s6 + $0x30] sm:$0xff]  ;;  %v321_v38 = vld [vmem:[%s6121_s3] sm:$0xff]  ;;  %v2636_v39 = vld [vmem:[%s6123_s7 + $0x38] sm:$0xff] }
   0xa   :  { %v322_v40 = vld [vmem:[%s6121_s3 + $0x8] sm:$0xff]  ;;  %v323_v42 = vld [vmem:[%s6121_s3 + $0x10] sm:$0xff]  ;;  %v4801_v47 = vld [vmem:[%s6124_s5 + $0x38] sm:$0xff]  }
   0xb   :  { %3790 = vmatpush3.bf16.msra.mxu0 %v4784_v5  ;;  %v2578_v41 = vld [vmem:[%s6122_s6 + $0x28] sm:$0xff]  ;;  %v4802_v48 = vld [vmem:[%s6124_s5 + $0x78] sm:$0xff]   ;;  %4141 = vmatprep.subr.bf16.mxu1 %v4801_v47  ;;  %v4803_v50 = vld [vmem:[%s6124_s5 + $0x30] sm:$0xff]  }
   0xc   :  { %3791 = vmatprep.subr.bf16.mxu0 %v4785_v6  ;;  %v324_v49 = vld [vmem:[%s6121_s3 + $0x18] sm:$0xff]  ;;  %4142 = vmatpush3.bf16.msra.mxu1 %v4801_v47  ;;  %v4804_v51 = vld [vmem:[%s6124_s5 + $0x70] sm:$0xff]   ;;  %v4805_v53 = vld [vmem:[%s6124_s5 + $0x28] sm:$0xff]  }
   0xd   :  { %4143 = vmatprep.subr.bf16.mxu1 %v4803_v50  ;;  %v2580_v52 = vld [vmem:[%s6122_s6 + $0x38] sm:$0xff]  ;;  %v4806_v54 = vld [vmem:[%s6124_s5 + $0x68] sm:$0xff]   ;;  %v2635_v55 = vld [vmem:[%s6123_s7 + $0x30] sm:$0xff] }
   0xe   :  { %v4807_v56 = vld [vmem:[%s6124_s5 + $0x20] sm:$0xff]   ;;  %v4809_v59 = vld [vmem:[%s6124_s5 + $0x18] sm:$0xff]   ;;  %v4811_v62 = vld [vmem:[%s6124_s5 + $0x10] sm:$0xff]  }
   0xf   :  { %3792 = vmatpush3.bf16.msra.mxu0 %v4786_v7  ;;  %v4808_v57 = vld [vmem:[%s6124_s5 + $0x60] sm:$0xff]   ;;  %v4810_v60 = vld [vmem:[%s6124_s5 + $0x58] sm:$0xff]   ;;  %v4812_v63 = vld [vmem:[%s6124_s5 + $0x50] sm:$0xff]  }
  0x10   :  { %3793 = vmatprep.subr.bf16.mxu0 %v4787_v8  ;;  %4144 = vmatpush3.bf16.msra.mxu1 %v4803_v50  ;;  %v2577_v58 = vld [vmem:[%s6122_s6 + $0x20] sm:$0xff]  ;;  %v4813_v0 = vld [vmem:[%s6124_s5 + $0x8] sm:$0xff]   ;;  %v5224_v4 = vld [vmem:[%s6124_s5 + $0xb8] sm:$0xff]  }
  0x11   :  { %4145 = vmatprep.subr.bf16.mxu1 %v4805_v53  ;;  %v2633_v61 = vld [vmem:[%s6123_s7 + $0x20] sm:$0xff]  ;;  %v4814_v1 = vld [vmem:[%s6124_s5 + $0x48] sm:$0xff]   ;;  %v5229_v5 = vld [vmem:[%s6124_s5 + $0xf8] sm:$0xff]  }
  0x12   :  { %v4815_v2 = vld [vmem:[%s6124_s5] sm:$0xff]  }
  0x13   :  { %3794 = vmatpush3.bf16.msra.mxu0 %v4788_v9  ;;  %v4816_v3 = vld [vmem:[%s6124_s5 + $0x40] sm:$0xff]  }
  0x14   :  { %3795 = vmatprep.subr.bf16.mxu0 %v4789_v10  ;;  %4146 = vmatpush3.bf16.msra.mxu1 %v4805_v53 }
  0x15   :  { %4147 = vmatprep.subr.bf16.mxu1 %v4807_v56 }
  0x17   :  { %3796 = vmatpush3.bf16.msra.mxu0 %v4790_v12 }
  0x18   :  { %3797 = vmatprep.subr.bf16.mxu0 %v4791_v13  ;;  %4148 = vmatpush3.bf16.msra.mxu1 %v4807_v56 }
  0x19   :  { %4149 = vmatprep.subr.bf16.mxu1 %v4809_v59 }
  0x1b   :  { %3798 = vmatpush3.bf16.msra.mxu0 %v4792_v14 }
  0x1c   :  { %3799 = vmatprep.subr.bf16.mxu0 %v4793_v15  ;;  %4150 = vmatpush3.bf16.msra.mxu1 %v4809_v59 }
  0x1d   :  { %4151 = vmatprep.subr.bf16.mxu1 %v4811_v62 }
  0x1f   :  { %3800 = vmatpush3.bf16.msra.mxu0 %v4794_v16 }
  0x20   :  { %4161 = vmatprep.subr.bf16.mxu0 %v4802_v48  ;;  %4152 = vmatpush3.bf16.msra.mxu1 %v4811_v62 }
  0x21   :  { %4153 = vmatprep.subr.bf16.mxu1 %v4813_v0 }
  0x22   :  { %221 = vmatmul.mubr.bf16.vlgmr.msra.gmra.mxu0 %v4795_v17 }
  0x23   :  { %228 = vmatprep.mubr.bf16.mxu0 %v4798_v18  ;;  %4162 = vmatpush3.bf16.msra.mxu0 %v4802_v48 }
  0x24   :  { %4163 = vmatprep.subr.bf16.mxu0 %v4804_v51  ;;  %4154 = vmatpush3.bf16.msra.mxu1 %v4813_v0 }
  0x25   :  { %4155 = vmatprep.subr.bf16.mxu1 %v4815_v2 }
  0x27   :  { %4164 = vmatpush3.bf16.msra.mxu0 %v4804_v51 }
  0x28   :  { %4165 = vmatprep.subr.bf16.mxu0 %v4806_v54  ;;  %4156 = vmatpush3.bf16.msra.mxu1 %v4815_v2 }
  0x29   :  { %4181 = vmatprep.subr.bf16.mxu1 %v5224_v4 }
  0x2a   :  { %229 = vmatmul.mubr.bf16.gmra.mxu0 %v4800_v19 }
  0x2b   :  { %4166 = vmatpush3.bf16.msra.mxu0 %v4806_v54 }
  0x2c   :  { %4167 = vmatprep.subr.bf16.mxu0 %v4808_v57 }
  0x2f   :  { %4168 = vmatpush3.bf16.msra.mxu0 %v4808_v57 }
  0x30   :  { %4169 = vmatprep.subr.bf16.mxu0 %v4810_v60 }
  0x33   :  { %4170 = vmatpush3.bf16.msra.mxu0 %v4810_v60 }
  0x34   :  { %4171 = vmatprep.subr.bf16.mxu0 %v4812_v63 }
  0x37   :  { %4172 = vmatpush3.bf16.msra.mxu0 %v4812_v63 }
  0x38   :  { %4173 = vmatprep.subr.bf16.mxu0 %v4814_v1 }
  0x3b   :  { %4174 = vmatpush3.bf16.msra.mxu0 %v4814_v1 }
  0x3c   :  { %4175 = vmatprep.subr.bf16.mxu0 %v4816_v3 }
  0x3f   :  { %4176 = vmatpush3.bf16.msra.mxu0 %v4816_v3 }
  0x40   :  { %4201 = vmatprep.subr.bf16.mxu0 %v5229_v5 }
  0xe2   :  { %v3801_v21 = vpop.f32.mrf.mxu0 }
  0xe4   :  { %v3802_v22 = vpop.f32.mrf.mxu0 }
  0xe5   :  { %v5108_v23 = vadd.f32 %v3802_v22, %v3801_v21 }
  0xe6   :  { %v3804_v24 = vpop.f32.mrf.mxu0 }
  0xe7   :  { %237 = vadd.xlane.f32.xlu0 %v5108_v23  ;;  %v249_v27 = vmul.f32 %v5108_v23, %v5108_v23 }
  0xe8   :  { %v3805_v25 = vpop.f32.mrf.mxu0 }
  0xe9   :  { %v5111_v26 = vadd.f32 %v3805_v25, %v3804_v24 }
  0xea   :  { %v3807_v28 = vpop.f32.mrf.mxu0 }
  0xeb   :  { %253 = vadd.xlane.f32.xlu0 %v249_v27  ;;  %v250_v29 = vmul.f32 %v5111_v26, %v5111_v26 }
  0xec   :  { %v3808_v30 = vpop.f32.mrf.mxu0 }
  0xed   :  { %v5117_v31 = vadd.f32 %v3808_v30, %v3807_v28  ;;  %255 = vadd.xlane.f32.xlu1 %v250_v29 }
  0xee   :  { %v3810_v43 = vpop.f32.mrf.mxu0 }
  0xef   :  { %239 = vadd.xlane.f32.xlu0 %v5111_v26  ;;  %v251_v32 = vmul.f32 %v5117_v31, %v5117_v31 }
  0xf0   :  { %v3811_v44 = vpop.f32.mrf.mxu0 }
  0xf1   :  { %241 = vadd.xlane.f32.xlu1 %v5117_v31  ;;  %v5153_v45 = vadd.f32 %v3811_v44, %v3810_v43 }
  0xf3   :  { %257 = vadd.xlane.f32.xlu0 %v251_v32  ;;  %v252_v46 = vmul.f32 %v5153_v45, %v5153_v45 }
 0x102   :  { %304 = vperm.xlu1 %4478, %v294_v33  }
 0x106   :  { %309 = vperm.xlu1 %4478, %v295_v34  }
 0x109   :  { %299 = vperm.xlu0 %4477, %v293_v35  }
 0x10a   :  { %314 = vperm.xlu1 %4478, %v296_v36  }
 0x10d   :  { %2613 = vperm.xlu0 %4477, %v2579_v37  }
 0x10e   :  { %327 = vperm.xlu1 %4478, %v321_v38  }
 0x111   :  { %2674 = vperm.xlu0 %4477, %v2636_v39  }
 0x112   :  { %332 = vperm.xlu1 %4478, %v322_v40  }
 0x115   :  { %2608 = vperm.xlu0 %4477, %v2578_v41  }
 0x116   :  { %337 = vperm.xlu1 %4478, %v323_v42  }
 0x13a   :  { %243 = vadd.xlane.f32.xlu1 %v5153_v45 }
 0x13e   :  { %259 = vadd.xlane.f32.xlu1 %v252_v46 }
 0x14f   :  { %342 = vperm.xlu1 %4478, %v324_v49  }
 0x153   :  { %2618 = vperm.xlu1 %4478, %v2580_v52  }
 0x157   :  { %2669 = vperm.xlu1 %4478, %v2635_v55  }
 0x15b   :  { %2603 = vperm.xlu1 %4478, %v2577_v58  }
 0x15f   :  { %2659 = vperm.xlu1 %4478, %v2633_v61  }
 0x170   :  { %v238_v6 = vpop.xlane.xlu0 %237 }
 0x171   :  { %v245_v7 = vmul.f32 0.0078125, %v238_v6 }
 0x173   :  { %v265_v9 = vmul.f32 %v245_v7, %v245_v7  ;;  %v277_v29 = vsub.f32 %v5108_v23, %v245_v7 }
 0x174   :  { %v254_v8 = vpop.xlane.xlu0 %253 }
 0x175   :  { %v261_v10 = vmul.f32 0.0078125, %v254_v8 }
 0x176   :  { %v256_v11 = vpop.xlane.xlu1 %255 }
 0x177   :  { %v269_v12 = vsub.f32 %v261_v10, %v265_v9  ;;  %v262_v18 = vmul.f32 0.0078125, %v256_v11 }
 0x178   :  { %v240_v13 = vpop.xlane.xlu0 %239 }
 0x179   :  { %v273_v14 = vmax.f32 %v269_v12, 0.0  ;;  %v246_v15 = vmul.f32 0.0078125, %v240_v13 }
 0x17a   :  { %v242_v16 = vpop.xlane.xlu1 %241 }
 0x17b   :  { %v281_v17 = vadd.f32 1e-05, %v273_v14  ;;  %v266_v19 = vmul.f32 %v246_v15, %v246_v15  ;;  %v278_v36 = vsub.f32 %v5111_v26, %v246_v15  ;;  %v247_v48 = vmul.f32 0.0078125, %v242_v16  ;;  %v4821_v16 = vld [vmem:[%s6124_s5 + $0xa8] sm:$0xff]  }
 0x17c   :  { %v258_v27 = vpop.xlane.xlu0 %257 }
 0x17d   :  { %4953 = vrsqrt.f32 %v281_v17  ;;  %v270_v20 = vsub.f32 %v262_v18, %v266_v19  ;;  %v267_v26 = vmul.f32 %v247_v48, %v247_v48  ;;  %v263_v49 = vmul.f32 0.0078125, %v258_v27  ;;  %v4822_v17 = vld [vmem:[%s6124_s5 + $0xe8] sm:$0xff]   ;;  %v4825_v18 = vld [vmem:[%s6124_s5 + $0x98] sm:$0xff]   ;;  %v4832_v27 = vld [vmem:[%s6124_s5 + $0xc0] sm:$0xff]  }
 0x17e   :  { %v305_v21 = vpop.permute.xlu1 %304  ;;  %v279_v63 = vsub.f32 %v5117_v31, %v247_v48  ;;  %v4819_v31 = vld [vmem:[%s6124_s5 + $0xb0] sm:$0xff]   ;;  %v4826_v19 = vld [vmem:[%s6124_s5 + $0xd8] sm:$0xff]  }
 0x17f   :  { %v274_v22 = vmax.f32 %v270_v20, 0.0  ;;  %v271_v50 = vsub.f32 %v263_v49, %v267_v26  ;;  %v4827_v20 = vld [vmem:[%s6124_s5 + $0x90] sm:$0xff]   ;;  %v4853_v49 = vld [vmem:[%s6124_s5 + $0x1a8] sm:$0xff]  }
 0x180   :  { %v4851_v48 = vld [vmem:[%s6124_s5 + $0x1b0] sm:$0xff]  }
 0x181   :  { %v282_v24 = vadd.f32 1e-05, %v274_v22  ;;  %v275_v51 = vmax.f32 %v271_v50, 0.0  ;;  %v4829_v22 = vld [vmem:[%s6124_s5 + $0x88] sm:$0xff]   ;;  %v4852_v26 = vld [vmem:[%s6124_s5 + $0x1f0] sm:$0xff]  }
 0x182   :  { %v310_v25 = vpop.permute.xlu1 %309  ;;  %v4854_v50 = vld [vmem:[%s6124_s5 + $0x1e8] sm:$0xff]  }
 0x183   :  { %4955 = vrsqrt.f32 %v282_v24  ;;  %v283_v53 = vadd.f32 1e-05, %v275_v51  ;;  %v4830_v24 = vld [vmem:[%s6124_s5 + $0xc8] sm:$0xff]   ;;  %v4855_v51 = vld [vmem:[%s6124_s5 + $0x1a0] sm:$0xff]  }
 0x184   :  { %v300_v32 = vpop.permute.xlu0 %299 }
 0x185   :  { %4957 = vrsqrt.f32 %v283_v53  ;;  %v4857_v53 = vld [vmem:[%s6124_s5 + $0x198] sm:$0xff]  }
 0x186   :  { %v315_v28 = vpop.permute.xlu1 %314 }
 0x18a   :  { %v4954_v30 = vpop.eup %4953  ;;  %v328_v35 = vpop.permute.xlu1 %327 }
 0x18b   :  { %v289_v33 = vmul.f32 %v4954_v30, %v277_v29  ;;  %v4834_v29 = vld [vmem:[%s6124_s5 + $0x178] sm:$0xff]   ;;  %v4835_v30 = vld [vmem:[%s6124_s5 + $0x130] sm:$0xff]  }
 0x18d   :  { %v317_v34 = vmul.f32 %v300_v32, %v289_v33  ;;  %v4836_v32 = vld [vmem:[%s6124_s5 + $0x170] sm:$0xff]   ;;  %v4837_v33 = vld [vmem:[%s6124_s5 + $0x128] sm:$0xff]  }
 0x18e   :  { %v333_v42 = vpop.permute.xlu1 %332 }
 0x18f   :  { %v345_v37 = vadd.f32 %v328_v35, %v317_v34  ;;  %v4838_v34 = vld [vmem:[%s6124_s5 + $0x168] sm:$0xff]   ;;  %v4839_v35 = vld [vmem:[%s6124_s5 + $0x120] sm:$0xff]  }
 0x190   :  { %v4956_v38 = vpop.eup %4955 }
 0x191   :  { %v290_v39 = vmul.f32 %v4956_v38, %v278_v36  ;;  %vm349_vm0 = vcmp.ge.f32.partialorder %v345_v37, 0.0  ;;  %v353_v41 = vmul.f32 0.2, %v345_v37  ;;  %v4840_v36 = vld [vmem:[%s6124_s5 + $0x160] sm:$0xff]   ;;  %v4842_v38 = vld [vmem:[%s6124_s5 + $0x158] sm:$0xff]  }
 0x192   :  { %v338_v52 = vpop.permute.xlu1 %337  ;;  %v4958_v62 = vpop.eup %4957 }
 0x193   :  { %v318_v40 = vmul.f32 %v305_v21, %v290_v39  ;;  %v357_v46 = vsel %vm349_vm0, %v345_v37, %v353_v41  ;;  %v291_v0 = vmul.f32 %v4958_v62, %v279_v63  ;;  %v4828_v21 = vld [vmem:[%s6124_s5 + $0xd0] sm:$0xff]   ;;  %v4841_v37 = vld [vmem:[%s6124_s5 + $0x118] sm:$0xff]   ;;  %v4845_v41 = vld [vmem:[%s6124_s5 + $0x108] sm:$0xff]  }
 0x194   :  { %v4843_v39 = vld [vmem:[%s6124_s5 + $0x110] sm:$0xff]   ;;  %v4866_v62 = vld [vmem:[%s6124_s5 + $0x278] sm:$0xff]  }
 0x195   :  { %v346_v43 = vadd.f32 %v333_v42, %v318_v40  ;;  %v319_v1 = vmul.f32 %v310_v25, %v291_v0  ;;  %v4831_v25 = vld [vmem:[%s6124_s5 + $0x80] sm:$0xff]   ;;  %v4844_v40 = vld [vmem:[%s6124_s5 + $0x150] sm:$0xff]   ;;  %v4846_v42 = vld [vmem:[%s6124_s5 + $0x148] sm:$0xff]  }
 0x196   :  { %v4867_v63 = vld [vmem:[%s6124_s5 + $0x230] sm:$0xff]  }
 0x197   :  { %vm350_vm1 = vcmp.ge.f32.partialorder %v346_v43, 0.0  ;;  %v354_v44 = vmul.f32 0.2, %v346_v43  ;;  %v347_v6 = vadd.f32 %v338_v52, %v319_v1  ;;  %v4856_v52 = vld [vmem:[%s6124_s5 + $0x1e0] sm:$0xff]   ;;  %v4868_v0 = vld [vmem:[%s6124_s5 + $0x270] sm:$0xff]   ;;  %v4869_v1 = vld [vmem:[%s6124_s5 + $0x228] sm:$0xff]  }
 0x199   :  { %v358_v47 = vsel %vm350_vm1, %v346_v43, %v354_v44  ;;  %v355_v10 = vmul.f32 0.2, %v347_v6  ;;  %vm351_vm2 = vcmp.ge.f32.partialorder %v347_v6, 0.0  ;;  %v4847_v43 = vld [vmem:[%s6124_s5 + $0x100] sm:$0xff]  }
 0x19a   :  { %v5235_v23 = vpack.c.bf16 %v358_v47, %v357_v46  ;;  %v4848_v44 = vld [vmem:[%s6124_s5 + $0x140] sm:$0xff]   ;;  %v4849_v46 = vld [vmem:[%s6124_s5 + $0x1b8] sm:$0xff]  }
 0x19b   :  { %v359_v13 = vsel %vm351_vm2, %v347_v6, %v355_v10  ;;  %v4850_v47 = vld [vmem:[%s6124_s5 + $0x1f8] sm:$0xff]   ;;  %v4872_v6 = vld [vmem:[%s6124_s5 + $0x260] sm:$0xff]   ;;  %v4876_v10 = vld [vmem:[%s6124_s5 + $0x250] sm:$0xff]  }
 0x19c   :  { %4157 = vmatprep.mubr.bf16.mxu1 %v5235_v23  ;;  %4177 = vmatprep.mubr.bf16.mxu0 %v5235_v23 }
 0x1c3   :  { %v244_v54 = vpop.xlane.xlu1 %243 }
 0x1c4   :  { %v248_v55 = vmul.f32 0.0078125, %v244_v54  ;;  %v4858_v54 = vld [vmem:[%s6124_s5 + $0x1d8] sm:$0xff]  }
 0x1c6   :  { %v268_v57 = vmul.f32 %v248_v55, %v248_v55  ;;  %v280_v2 = vsub.f32 %v5153_v45, %v248_v55  ;;  %v4820_v45 = vld [vmem:[%s6124_s5 + $0xf0] sm:$0xff]  }
 0x1c7   :  { %v260_v56 = vpop.xlane.xlu1 %259  ;;  %v4859_v55 = vld [vmem:[%s6124_s5 + $0x190] sm:$0xff]  }
 0x1c8   :  { %v264_v58 = vmul.f32 0.0078125, %v260_v56  ;;  %v4860_v56 = vld [vmem:[%s6124_s5 + $0x1d0] sm:$0xff]  }
 0x1ca   :  { %v272_v59 = vsub.f32 %v264_v58, %v268_v57  ;;  %v4861_v57 = vld [vmem:[%s6124_s5 + $0x188] sm:$0xff]  }
 0x1cb   :  { %v343_v9 = vpop.permute.xlu1 %342  ;;  %v4862_v58 = vld [vmem:[%s6124_s5 + $0x1c8] sm:$0xff]  }
 0x1cc   :  { %v276_v60 = vmax.f32 %v272_v59, 0.0  ;;  %v4863_v59 = vld [vmem:[%s6124_s5 + $0x180] sm:$0xff]  }
 0x1ce   :  { %v284_v61 = vadd.f32 1e-05, %v276_v60  ;;  %v4864_v60 = vld [vmem:[%s6124_s5 + $0x1c0] sm:$0xff]  }
 0x1d0   :  { %4959 = vrsqrt.f32 %v284_v61  ;;  %v4865_v61 = vld [vmem:[%s6124_s5 + $0x238] sm:$0xff]  }
 0x1dd   :  { %v4960_v3 = vpop.eup %4959 }
 0x1de   :  { %v292_v7 = vmul.f32 %v4960_v3, %v280_v2  ;;  %v4870_v2 = vld [vmem:[%s6124_s5 + $0x268] sm:$0xff]   ;;  %v4871_v3 = vld [vmem:[%s6124_s5 + $0x220] sm:$0xff]  }
 0x1e0   :  { %v320_v8 = vmul.f32 %v315_v28, %v292_v7  ;;  %v4833_v28 = vld [vmem:[%s6124_s5 + $0x138] sm:$0xff]  }
 0x1e1   :  { %v4873_v7 = vld [vmem:[%s6124_s5 + $0x218] sm:$0xff]  }
 0x1e2   :  { %v348_v11 = vadd.f32 %v343_v9, %v320_v8  ;;  %v4874_v8 = vld [vmem:[%s6124_s5 + $0x258] sm:$0xff]   ;;  %v4875_v9 = vld [vmem:[%s6124_s5 + $0x210] sm:$0xff]  }
 0x1e4   :  { %vm352_vm3 = vcmp.ge.f32.partialorder %v348_v11, 0.0  ;;  %v356_v12 = vmul.f32 0.2, %v348_v11 }
 0x1e6   :  { %v360_v14 = vsel %vm352_vm3, %v348_v11, %v356_v12  ;;  %v4877_v11 = vld [vmem:[%s6124_s5 + $0x208] sm:$0xff]  }
 0x1e7   :  { %v5241_v15 = vpack.c.bf16 %v360_v14, %v359_v13  ;;  %v4878_v12 = vld [vmem:[%s6124_s5 + $0x248] sm:$0xff]   ;;  %v4879_v13 = vld [vmem:[%s6124_s5 + $0x200] sm:$0xff]  }
 0x1e8   :  { %v4880_v14 = vld [vmem:[%s6124_s5 + $0x240] sm:$0xff]  }
 0x1e9   :  { %4158 = vmatmul.mubr.bf16.vlgmr.msra.gmra.mxu1 %v5241_v15  ;;  %4178 = vmatmul.mubr.bf16.vlgmr.msra.gmra.mxu0 %v5241_v15 }
 0x1ea   :  { %4182 = vmatpush3.bf16.msra.mxu1 %v5224_v4  ;;  %4202 = vmatpush3.bf16.msra.mxu0 %v5229_v5  ;;  %v4823_v4 = vld [vmem:[%s6124_s5 + $0xa0] sm:$0xff]  }
 0x1eb   :  { %4197 = vmatprep.mubr.bf16.mxu1 %v5235_v23  ;;  %4217 = vmatprep.mubr.bf16.mxu0 %v5235_v23  ;;  %v4824_v5 = vld [vmem:[%s6124_s5 + $0xe0] sm:$0xff]  }
 0x1ec   :  { %4183 = vmatprep.subr.bf16.mxu1 %v4819_v31  ;;  %4203 = vmatprep.subr.bf16.mxu0 %v4820_v45 }
 0x1ee   :  { %4184 = vmatpush3.bf16.msra.mxu1 %v4819_v31  ;;  %4204 = vmatpush3.bf16.msra.mxu0 %v4820_v45  ;;  %v4881_v31 = vld [vmem:[%s6124_s5 + $0x2b8] sm:$0xff]  }
 0x1ef   :  { %4185 = vmatprep.subr.bf16.mxu1 %v4821_v16  ;;  %4205 = vmatprep.subr.bf16.mxu0 %v4822_v17  ;;  %v4882_v45 = vld [vmem:[%s6124_s5 + $0x2f8] sm:$0xff]  }
 0x1f2   :  { %4186 = vmatpush3.bf16.msra.mxu1 %v4821_v16  ;;  %4206 = vmatpush3.bf16.msra.mxu0 %v4822_v17  ;;  %v4883_v16 = vld [vmem:[%s6124_s5 + $0x2b0] sm:$0xff]  }
 0x1f3   :  { %4187 = vmatprep.subr.bf16.mxu1 %v4823_v4  ;;  %4207 = vmatprep.subr.bf16.mxu0 %v4824_v5  ;;  %v4884_v17 = vld [vmem:[%s6124_s5 + $0x2f0] sm:$0xff]  }
 0x1f6   :  { %4188 = vmatpush3.bf16.msra.mxu1 %v4823_v4  ;;  %4208 = vmatpush3.bf16.msra.mxu0 %v4824_v5  ;;  %v4885_v4 = vld [vmem:[%s6124_s5 + $0x2a8] sm:$0xff]  }
 0x1f7   :  { %4189 = vmatprep.subr.bf16.mxu1 %v4825_v18  ;;  %4209 = vmatprep.subr.bf16.mxu0 %v4826_v19  ;;  %v4886_v5 = vld [vmem:[%s6124_s5 + $0x2e8] sm:$0xff]  }
 0x1fa   :  { %4190 = vmatpush3.bf16.msra.mxu1 %v4825_v18  ;;  %4210 = vmatpush3.bf16.msra.mxu0 %v4826_v19  ;;  %v4887_v18 = vld [vmem:[%s6124_s5 + $0x2a0] sm:$0xff]  }
 0x1fb   :  { %4191 = vmatprep.subr.bf16.mxu1 %v4827_v20  ;;  %4211 = vmatprep.subr.bf16.mxu0 %v4828_v21  ;;  %v4888_v19 = vld [vmem:[%s6124_s5 + $0x2e0] sm:$0xff]  }
 0x1fe   :  { %4192 = vmatpush3.bf16.msra.mxu1 %v4827_v20  ;;  %4212 = vmatpush3.bf16.msra.mxu0 %v4828_v21  ;;  %v4889_v20 = vld [vmem:[%s6124_s5 + $0x298] sm:$0xff]  }
 0x1ff   :  { %4193 = vmatprep.subr.bf16.mxu1 %v4829_v22  ;;  %4213 = vmatprep.subr.bf16.mxu0 %v4830_v24  ;;  %v4890_v21 = vld [vmem:[%s6124_s5 + $0x2d8] sm:$0xff]  }
 0x202   :  { %4194 = vmatpush3.bf16.msra.mxu1 %v4829_v22  ;;  %4214 = vmatpush3.bf16.msra.mxu0 %v4830_v24  ;;  %v4891_v22 = vld [vmem:[%s6124_s5 + $0x290] sm:$0xff]  }
 0x203   :  { %4195 = vmatprep.subr.bf16.mxu1 %v4831_v25  ;;  %4215 = vmatprep.subr.bf16.mxu0 %v4832_v27  ;;  %v4892_v24 = vld [vmem:[%s6124_s5 + $0x2d0] sm:$0xff]  }
 0x206   :  { %4196 = vmatpush3.bf16.msra.mxu1 %v4831_v25  ;;  %4216 = vmatpush3.bf16.msra.mxu0 %v4832_v27  ;;  %v4893_v25 = vld [vmem:[%s6124_s5 + $0x288] sm:$0xff]  }
 0x207   :  { %4221 = vmatprep.subr.bf16.mxu1 %v4833_v28  ;;  %4241 = vmatprep.subr.bf16.mxu0 %v4834_v29  ;;  %v4894_v27 = vld [vmem:[%s6124_s5 + $0x2c8] sm:$0xff]  }
 0x209   :  { %4198 = vmatmul.mubr.bf16.vlgmr.msra.gmra.mxu1 %v5241_v15  ;;  %4218 = vmatmul.mubr.bf16.vlgmr.msra.gmra.mxu0 %v5241_v15 }
 0x20a   :  { %4222 = vmatpush3.bf16.msra.mxu1 %v4833_v28  ;;  %4237 = vmatprep.mubr.bf16.mxu1 %v5235_v23  ;;  %v4895_v28 = vld [vmem:[%s6124_s5 + $0x280] sm:$0xff]  }
 0x20b   :  { %4242 = vmatpush3.bf16.msra.mxu0 %v4834_v29  ;;  %4257 = vmatprep.mubr.bf16.mxu0 %v5235_v23  ;;  %v4896_v29 = vld [vmem:[%s6124_s5 + $0x2c0] sm:$0xff]  }
 0x20c   :  { %4223 = vmatprep.subr.bf16.mxu1 %v4835_v30  ;;  %4243 = vmatprep.subr.bf16.mxu0 %v4836_v32 }
 0x20e   :  { %4224 = vmatpush3.bf16.msra.mxu1 %v4835_v30  ;;  %v4897_v30 = vld [vmem:[%s6124_s5 + $0x338] sm:$0xff]  }
 0x20f   :  { %4244 = vmatpush3.bf16.msra.mxu0 %v4836_v32  ;;  %4225 = vmatprep.subr.bf16.mxu1 %v4837_v33  ;;  %v4898_v32 = vld [vmem:[%s6124_s5 + $0x378] sm:$0xff]  }
 0x210   :  { %4245 = vmatprep.subr.bf16.mxu0 %v4838_v34 }
 0x212   :  { %4226 = vmatpush3.bf16.msra.mxu1 %v4837_v33  ;;  %v4899_v33 = vld [vmem:[%s6124_s5 + $0x330] sm:$0xff]  }
 0x213   :  { %4246 = vmatpush3.bf16.msra.mxu0 %v4838_v34  ;;  %4227 = vmatprep.subr.bf16.mxu1 %v4839_v35  ;;  %v4900_v34 = vld [vmem:[%s6124_s5 + $0x370] sm:$0xff]  }
 0x214   :  { %4247 = vmatprep.subr.bf16.mxu0 %v4840_v36 }
 0x216   :  { %4228 = vmatpush3.bf16.msra.mxu1 %v4839_v35  ;;  %v4901_v35 = vld [vmem:[%s6124_s5 + $0x328] sm:$0xff]  }
 0x217   :  { %4248 = vmatpush3.bf16.msra.mxu0 %v4840_v36  ;;  %4229 = vmatprep.subr.bf16.mxu1 %v4841_v37  ;;  %v4902_v36 = vld [vmem:[%s6124_s5 + $0x368] sm:$0xff]  }
 0x218   :  { %4249 = vmatprep.subr.bf16.mxu0 %v4842_v38 }
 0x21a   :  { %4230 = vmatpush3.bf16.msra.mxu1 %v4841_v37  ;;  %v4903_v37 = vld [vmem:[%s6124_s5 + $0x320] sm:$0xff]  }
 0x21b   :  { %4250 = vmatpush3.bf16.msra.mxu0 %v4842_v38  ;;  %4231 = vmatprep.subr.bf16.mxu1 %v4843_v39  ;;  %v4904_v38 = vld [vmem:[%s6124_s5 + $0x360] sm:$0xff]  }
 0x21c   :  { %4251 = vmatprep.subr.bf16.mxu0 %v4844_v40 }
 0x21e   :  { %4232 = vmatpush3.bf16.msra.mxu1 %v4843_v39  ;;  %v4905_v39 = vld [vmem:[%s6124_s5 + $0x318] sm:$0xff]  }
 0x21f   :  { %4252 = vmatpush3.bf16.msra.mxu0 %v4844_v40  ;;  %4233 = vmatprep.subr.bf16.mxu1 %v4845_v41  ;;  %v4906_v40 = vld [vmem:[%s6124_s5 + $0x358] sm:$0xff]  }
 0x220   :  { %4253 = vmatprep.subr.bf16.mxu0 %v4846_v42 }
 0x222   :  { %4234 = vmatpush3.bf16.msra.mxu1 %v4845_v41  ;;  %v4907_v41 = vld [vmem:[%s6124_s5 + $0x310] sm:$0xff]  }
 0x223   :  { %4254 = vmatpush3.bf16.msra.mxu0 %v4846_v42  ;;  %4235 = vmatprep.subr.bf16.mxu1 %v4847_v43  ;;  %v4908_v42 = vld [vmem:[%s6124_s5 + $0x350] sm:$0xff]  }
 0x224   :  { %4255 = vmatprep.subr.bf16.mxu0 %v4848_v44 }
 0x226   :  { %4236 = vmatpush3.bf16.msra.mxu1 %v4847_v43  ;;  %v4909_v43 = vld [vmem:[%s6124_s5 + $0x308] sm:$0xff]  }
 0x227   :  { %4256 = vmatpush3.bf16.msra.mxu0 %v4848_v44  ;;  %4261 = vmatprep.subr.bf16.mxu1 %v4849_v46  ;;  %v4910_v44 = vld [vmem:[%s6124_s5 + $0x348] sm:$0xff]  }
 0x228   :  { %4281 = vmatprep.subr.bf16.mxu0 %v4850_v47 }
 0x229   :  { %4238 = vmatmul.mubr.bf16.vlgmr.msra.gmra.mxu1 %v5241_v15 }
 0x22a   :  { %4258 = vmatmul.mubr.bf16.vlgmr.msra.gmra.mxu0 %v5241_v15  ;;  %4262 = vmatpush3.bf16.msra.mxu1 %v4849_v46  ;;  %v4911_v46 = vld [vmem:[%s6124_s5 + $0x300] sm:$0xff]  }
 0x22b   :  { %4277 = vmatprep.mubr.bf16.mxu1 %v5235_v23  ;;  %4282 = vmatpush3.bf16.msra.mxu0 %v4850_v47  ;;  %v4912_v47 = vld [vmem:[%s6124_s5 + $0x340] sm:$0xff]  }
 0x22c   :  { %4297 = vmatprep.mubr.bf16.mxu0 %v5235_v23  ;;  %4263 = vmatprep.subr.bf16.mxu1 %v4851_v48 }
 0x22d   :  { %4283 = vmatprep.subr.bf16.mxu0 %v4852_v26 }
 0x22e   :  { %4264 = vmatpush3.bf16.msra.mxu1 %v4851_v48  ;;  %v4913_v48 = vld [vmem:[%s6124_s5 + $0x3b8] sm:$0xff]  }
 0x22f   :  { %4284 = vmatpush3.bf16.msra.mxu0 %v4852_v26  ;;  %4265 = vmatprep.subr.bf16.mxu1 %v4853_v49  ;;  %v4914_v26 = vld [vmem:[%s6124_s5 + $0x3f8] sm:$0xff]  }
 0x230   :  { %4285 = vmatprep.subr.bf16.mxu0 %v4854_v50 }
 0x232   :  { %4266 = vmatpush3.bf16.msra.mxu1 %v4853_v49  ;;  %v4915_v49 = vld [vmem:[%s6124_s5 + $0x3b0] sm:$0xff]  }
 0x233   :  { %4286 = vmatpush3.bf16.msra.mxu0 %v4854_v50  ;;  %4267 = vmatprep.subr.bf16.mxu1 %v4855_v51  ;;  %v4916_v50 = vld [vmem:[%s6124_s5 + $0x3f0] sm:$0xff]  }
 0x234   :  { %4287 = vmatprep.subr.bf16.mxu0 %v4856_v52 }
 0x236   :  { %4268 = vmatpush3.bf16.msra.mxu1 %v4855_v51  ;;  %v4917_v51 = vld [vmem:[%s6124_s5 + $0x3a8] sm:$0xff]  }
 0x237   :  { %4288 = vmatpush3.bf16.msra.mxu0 %v4856_v52  ;;  %4269 = vmatprep.subr.bf16.mxu1 %v4857_v53  ;;  %v4918_v52 = vld [vmem:[%s6124_s5 + $0x3e8] sm:$0xff]  }
 0x238   :  { %4289 = vmatprep.subr.bf16.mxu0 %v4858_v54 }
 0x23a   :  { %4270 = vmatpush3.bf16.msra.mxu1 %v4857_v53  ;;  %v4919_v53 = vld [vmem:[%s6124_s5 + $0x3a0] sm:$0xff]  }
 0x23b   :  { %4290 = vmatpush3.bf16.msra.mxu0 %v4858_v54  ;;  %4271 = vmatprep.subr.bf16.mxu1 %v4859_v55  ;;  %v4920_v54 = vld [vmem:[%s6124_s5 + $0x3e0] sm:$0xff]  }
 0x23c   :  { %4291 = vmatprep.subr.bf16.mxu0 %v4860_v56 }
 0x23e   :  { %4272 = vmatpush3.bf16.msra.mxu1 %v4859_v55  ;;  %v4922_v55 = vld [vmem:[%s6124_s5 + $0x3d8] sm:$0xff]  }
 0x23f   :  { %4292 = vmatpush3.bf16.msra.mxu0 %v4860_v56  ;;  %4273 = vmatprep.subr.bf16.mxu1 %v4861_v57  ;;  %v4923_v56 = vld [vmem:[%s6124_s5 + $0x390] sm:$0xff]  }
 0x240   :  { %4293 = vmatprep.subr.bf16.mxu0 %v4862_v58 }
 0x242   :  { %4274 = vmatpush3.bf16.msra.mxu1 %v4861_v57  ;;  %v4924_v57 = vld [vmem:[%s6124_s5 + $0x3d0] sm:$0xff]  }
 0x243   :  { %4294 = vmatpush3.bf16.msra.mxu0 %v4862_v58  ;;  %4275 = vmatprep.subr.bf16.mxu1 %v4863_v59  ;;  %v4925_v58 = vld [vmem:[%s6124_s5 + $0x388] sm:$0xff]  }
 0x244   :  { %4295 = vmatprep.subr.bf16.mxu0 %v4864_v60 }
 0x246   :  { %4276 = vmatpush3.bf16.msra.mxu1 %v4863_v59  ;;  %v4926_v59 = vld [vmem:[%s6124_s5 + $0x3c8] sm:$0xff]  }
 0x247   :  { %4296 = vmatpush3.bf16.msra.mxu0 %v4864_v60  ;;  %4301 = vmatprep.subr.bf16.mxu1 %v4865_v61  ;;  %v4927_v60 = vld [vmem:[%s6124_s5 + $0x380] sm:$0xff]  }
 0x248   :  { %4321 = vmatprep.subr.bf16.mxu0 %v4866_v62 }
 0x249   :  { %4278 = vmatmul.mubr.bf16.vlgmr.msra.gmra.mxu1 %v5241_v15 }
 0x24a   :  { %4298 = vmatmul.mubr.bf16.vlgmr.msra.gmra.mxu0 %v5241_v15  ;;  %4302 = vmatpush3.bf16.msra.mxu1 %v4865_v61  ;;  %v4928_v61 = vld [vmem:[%s6124_s5 + $0x3c0] sm:$0xff]  }
 0x24b   :  { %4317 = vmatprep.mubr.bf16.mxu1 %v5235_v23  ;;  %4322 = vmatpush3.bf16.msra.mxu0 %v4866_v62 }
 0x24c   :  { %4337 = vmatprep.mubr.bf16.mxu0 %v5235_v23  ;;  %4303 = vmatprep.subr.bf16.mxu1 %v4867_v63 }
 0x24d   :  { %4323 = vmatprep.subr.bf16.mxu0 %v4868_v0 }
 0x24e   :  { %4304 = vmatpush3.bf16.msra.mxu1 %v4867_v63 }
 0x24f   :  { %4324 = vmatpush3.bf16.msra.mxu0 %v4868_v0  ;;  %4305 = vmatprep.subr.bf16.mxu1 %v4869_v1 }
 0x250   :  { %4325 = vmatprep.subr.bf16.mxu0 %v4870_v2 }
 0x252   :  { %4306 = vmatpush3.bf16.msra.mxu1 %v4869_v1 }
 0x253   :  { %4326 = vmatpush3.bf16.msra.mxu0 %v4870_v2  ;;  %4307 = vmatprep.subr.bf16.mxu1 %v4871_v3 }
 0x254   :  { %4327 = vmatprep.subr.bf16.mxu0 %v4872_v6 }
 0x256   :  { %4308 = vmatpush3.bf16.msra.mxu1 %v4871_v3 }
 0x257   :  { %4328 = vmatpush3.bf16.msra.mxu0 %v4872_v6  ;;  %4309 = vmatprep.subr.bf16.mxu1 %v4873_v7 }
 0x258   :  { %4329 = vmatprep.subr.bf16.mxu0 %v4874_v8 }
 0x25a   :  { %4310 = vmatpush3.bf16.msra.mxu1 %v4873_v7 }
 0x25b   :  { %4330 = vmatpush3.bf16.msra.mxu0 %v4874_v8  ;;  %4311 = vmatprep.subr.bf16.mxu1 %v4875_v9 }
 0x25c   :  { %4331 = vmatprep.subr.bf16.mxu0 %v4876_v10 }
 0x25e   :  { %4312 = vmatpush3.bf16.msra.mxu1 %v4875_v9 }
 0x25f   :  { %4332 = vmatpush3.bf16.msra.mxu0 %v4876_v10  ;;  %4313 = vmatprep.subr.bf16.mxu1 %v4877_v11 }
 0x260   :  { %4333 = vmatprep.subr.bf16.mxu0 %v4878_v12 }
 0x262   :  { %4314 = vmatpush3.bf16.msra.mxu1 %v4877_v11 }
 0x263   :  { %4334 = vmatpush3.bf16.msra.mxu0 %v4878_v12  ;;  %4315 = vmatprep.subr.bf16.mxu1 %v4879_v13 }
 0x264   :  { %4335 = vmatprep.subr.bf16.mxu0 %v4880_v14 }
 0x266   :  { %4316 = vmatpush3.bf16.msra.mxu1 %v4879_v13 }
 0x267   :  { %4336 = vmatpush3.bf16.msra.mxu0 %v4880_v14  ;;  %4341 = vmatprep.subr.bf16.mxu1 %v4881_v31 }
 0x268   :  { %4361 = vmatprep.subr.bf16.mxu0 %v4882_v45 }
 0x269   :  { %4318 = vmatmul.mubr.bf16.vlgmr.msra.gmra.mxu1 %v5241_v15 }
 0x26a   :  { %4338 = vmatmul.mubr.bf16.vlgmr.msra.gmra.mxu0 %v5241_v15  ;;  %4342 = vmatpush3.bf16.msra.mxu1 %v4881_v31 }
 0x26b   :  { %4357 = vmatprep.mubr.bf16.mxu1 %v5235_v23  ;;  %4362 = vmatpush3.bf16.msra.mxu0 %v4882_v45 }
 0x26c   :  { %4377 = vmatprep.mubr.bf16.mxu0 %v5235_v23  ;;  %4343 = vmatprep.subr.bf16.mxu1 %v4883_v16 }
 0x26d   :  { %4363 = vmatprep.subr.bf16.mxu0 %v4884_v17 }
 0x26e   :  { %4344 = vmatpush3.bf16.msra.mxu1 %v4883_v16 }
 0x26f   :  { %4364 = vmatpush3.bf16.msra.mxu0 %v4884_v17  ;;  %4345 = vmatprep.subr.bf16.mxu1 %v4885_v4 }
 0x270   :  { %4365 = vmatprep.subr.bf16.mxu0 %v4886_v5 }
 0x272   :  { %4346 = vmatpush3.bf16.msra.mxu1 %v4885_v4 }
 0x273   :  { %4366 = vmatpush3.bf16.msra.mxu0 %v4886_v5  ;;  %4347 = vmatprep.subr.bf16.mxu1 %v4887_v18 }
 0x274   :  { %4367 = vmatprep.subr.bf16.mxu0 %v4888_v19 }
 0x276   :  { %4348 = vmatpush3.bf16.msra.mxu1 %v4887_v18 }
 0x277   :  { %4368 = vmatpush3.bf16.msra.mxu0 %v4888_v19  ;;  %4349 = vmatprep.subr.bf16.mxu1 %v4889_v20 }
 0x278   :  { %4369 = vmatprep.subr.bf16.mxu0 %v4890_v21 }
 0x27a   :  { %4350 = vmatpush3.bf16.msra.mxu1 %v4889_v20 }
 0x27b   :  { %4370 = vmatpush3.bf16.msra.mxu0 %v4890_v21  ;;  %4351 = vmatprep.subr.bf16.mxu1 %v4891_v22 }
 0x27c   :  { %4371 = vmatprep.subr.bf16.mxu0 %v4892_v24 }
 0x27e   :  { %4352 = vmatpush3.bf16.msra.mxu1 %v4891_v22 }
 0x27f   :  { %4372 = vmatpush3.bf16.msra.mxu0 %v4892_v24  ;;  %4353 = vmatprep.subr.bf16.mxu1 %v4893_v25 }
 0x280   :  { %4373 = vmatprep.subr.bf16.mxu0 %v4894_v27 }
 0x282   :  { %4354 = vmatpush3.bf16.msra.mxu1 %v4893_v25 }
 0x283   :  { %4374 = vmatpush3.bf16.msra.mxu0 %v4894_v27  ;;  %4355 = vmatprep.subr.bf16.mxu1 %v4895_v28 }
 0x284   :  { %4375 = vmatprep.subr.bf16.mxu0 %v4896_v29 }
 0x286   :  { %4356 = vmatpush3.bf16.msra.mxu1 %v4895_v28 }
 0x287   :  { %4376 = vmatpush3.bf16.msra.mxu0 %v4896_v29  ;;  %4381 = vmatprep.subr.bf16.mxu1 %v4897_v30 }
 0x288   :  { %4401 = vmatprep.subr.bf16.mxu0 %v4898_v32 }
 0x289   :  { %4358 = vmatmul.mubr.bf16.vlgmr.msra.gmra.mxu1 %v5241_v15 }
 0x28a   :  { %4378 = vmatmul.mubr.bf16.vlgmr.msra.gmra.mxu0 %v5241_v15  ;;  %4382 = vmatpush3.bf16.msra.mxu1 %v4897_v30 }
 0x28b   :  { %4397 = vmatprep.mubr.bf16.mxu1 %v5235_v23  ;;  %4402 = vmatpush3.bf16.msra.mxu0 %v4898_v32 }
 0x28c   :  { %4417 = vmatprep.mubr.bf16.mxu0 %v5235_v23  ;;  %4383 = vmatprep.subr.bf16.mxu1 %v4899_v33 }
 0x28d   :  { %4403 = vmatprep.subr.bf16.mxu0 %v4900_v34 }
 0x28e   :  { %4384 = vmatpush3.bf16.msra.mxu1 %v4899_v33 }
 0x28f   :  { %4404 = vmatpush3.bf16.msra.mxu0 %v4900_v34  ;;  %4385 = vmatprep.subr.bf16.mxu1 %v4901_v35 }
 0x290   :  { %4405 = vmatprep.subr.bf16.mxu0 %v4902_v36 }
 0x292   :  { %4386 = vmatpush3.bf16.msra.mxu1 %v4901_v35 }
 0x293   :  { %4406 = vmatpush3.bf16.msra.mxu0 %v4902_v36  ;;  %4387 = vmatprep.subr.bf16.mxu1 %v4903_v37 }
 0x294   :  { %4407 = vmatprep.subr.bf16.mxu0 %v4904_v38 }
 0x296   :  { %4388 = vmatpush3.bf16.msra.mxu1 %v4903_v37 }
 0x297   :  { %4408 = vmatpush3.bf16.msra.mxu0 %v4904_v38  ;;  %4389 = vmatprep.subr.bf16.mxu1 %v4905_v39 }
 0x298   :  { %4409 = vmatprep.subr.bf16.mxu0 %v4906_v40 }
 0x29a   :  { %4390 = vmatpush3.bf16.msra.mxu1 %v4905_v39 }
 0x29b   :  { %4410 = vmatpush3.bf16.msra.mxu0 %v4906_v40  ;;  %4391 = vmatprep.subr.bf16.mxu1 %v4907_v41 }
 0x29c   :  { %4411 = vmatprep.subr.bf16.mxu0 %v4908_v42 }
 0x29e   :  { %4392 = vmatpush3.bf16.msra.mxu1 %v4907_v41 }
 0x29f   :  { %4412 = vmatpush3.bf16.msra.mxu0 %v4908_v42  ;;  %4393 = vmatprep.subr.bf16.mxu1 %v4909_v43 }
 0x2a0   :  { %4413 = vmatprep.subr.bf16.mxu0 %v4910_v44 }
 0x2a2   :  { %4394 = vmatpush3.bf16.msra.mxu1 %v4909_v43 }
 0x2a3   :  { %4414 = vmatpush3.bf16.msra.mxu0 %v4910_v44  ;;  %4395 = vmatprep.subr.bf16.mxu1 %v4911_v46 }
 0x2a4   :  { %4415 = vmatprep.subr.bf16.mxu0 %v4912_v47 }
 0x2a6   :  { %4396 = vmatpush3.bf16.msra.mxu1 %v4911_v46 }
 0x2a7   :  { %4416 = vmatpush3.bf16.msra.mxu0 %v4912_v47  ;;  %4421 = vmatprep.subr.bf16.mxu1 %v4913_v48  ;;  %v4931_v47 = vld [vmem:[%s6125_s4 + $0x4] ss:$16 sps:$4 sm:$0xff]  }
 0x2a8   :  { %4441 = vmatprep.subr.bf16.mxu0 %v4914_v26 }
 0x2a9   :  { %4398 = vmatmul.mubr.bf16.vlgmr.msra.gmra.mxu1 %v5241_v15  ;;  %v4159_v62 = vpop.f32.mrf.mxu1  ;;  %v4179_v63 = vpop.f32.mrf.mxu0 }
 0x2aa   :  { %4418 = vmatmul.mubr.bf16.vlgmr.msra.gmra.mxu0 %v5241_v15  ;;  %4422 = vmatpush3.bf16.msra.mxu1 %v4913_v48  ;;  %v4929_v48 = vld [vmem:[%s6125_s4] ss:$16 sps:$4 sm:$0xff]  }
 0x2ab   :  { %4437 = vmatprep.mubr.bf16.mxu1 %v5235_v23  ;;  %4442 = vmatpush3.bf16.msra.mxu0 %v4914_v26  ;;  %v5605_v0 = vpop.f32.mrf.mxu1  ;;  %v577_v1 = vpop.f32.mrf.mxu0 }
 0x2ac   :  { %4457 = vmatprep.mubr.bf16.mxu0 %v5235_v23  ;;  %4423 = vmatprep.subr.bf16.mxu1 %v4915_v49  ;;  %v4921_v23 = vld [vmem:[%s6124_s5 + $0x398] sm:$0xff]   ;;  %s4981_s5 = smov 114  }
 0x2ad   :  { %4443 = vmatprep.subr.bf16.mxu0 %v4916_v50  ;;  %v4160_v2 = vpop.f32.mrf.mxu1  ;;  %v4180_v3 = vpop.f32.mrf.mxu0 }
 0x2ae   :  { %4424 = vmatpush3.bf16.msra.mxu1 %v4915_v49  ;;  %v593_v40 = vpack.c.bf16 %v4180_v3, %v4179_v63  ;;  %v477_v44 = vpack.c.bf16 %v4160_v2, %v4159_v62  ;;  %v4934_v49 = vld [vmem:[%s6125_s4 + $0xc] ss:$16 sps:$4 sm:$0xff]  }
 0x2af   :  { %4444 = vmatpush3.bf16.msra.mxu0 %v4916_v50  ;;  %4425 = vmatprep.subr.bf16.mxu1 %v4917_v51  ;;  %v464_v6 = vpop.f32.mrf.mxu1  ;;  %v580_v7 = vpop.f32.mrf.mxu0  ;;  %v4935_v50 = vld [vmem:[%s6125_s4 + $0x24] ss:$16 sps:$4 sm:$0xff]  }
 0x2b0   :  { %4445 = vmatprep.subr.bf16.mxu0 %v4918_v52  ;;  %v592_v42 = vpack.c.bf16 %v580_v7, %v577_v1  ;;  %v476_v26 = vpack.c.bf16 %v464_v6, %v5605_v0 }
 0x2b2   :  { %4426 = vmatpush3.bf16.msra.mxu1 %v4917_v51  ;;  %v4937_v51 = vld [vmem:[%s6125_s4 + $0x20] ss:$16 sps:$4 sm:$0xff]  }
 0x2b3   :  { %4446 = vmatpush3.bf16.msra.mxu0 %v4918_v52  ;;  %4427 = vmatprep.subr.bf16.mxu1 %v4919_v53  ;;  %v4941_v52 = vld [vmem:[%s6125_s4 + $0x44] ss:$16 sps:$4 sm:$0xff]  }
 0x2b4   :  { %4447 = vmatprep.subr.bf16.mxu0 %v4920_v54 }
 0x2b6   :  { %4428 = vmatpush3.bf16.msra.mxu1 %v4919_v53  ;;  %v4943_v53 = vld [vmem:[%s6125_s4 + $0x40] ss:$16 sps:$4 sm:$0xff]  }
 0x2b7   :  { %4448 = vmatpush3.bf16.msra.mxu0 %v4920_v54  ;;  %4429 = vmatprep.subr.bf16.mxu1 %v4921_v23  ;;  %v4947_v54 = vld [vmem:[%s6125_s4 + $0x64] ss:$16 sps:$4 sm:$0xff]  }
 0x2b8   :  { %4449 = vmatprep.subr.bf16.mxu0 %v4922_v55 }
 0x2ba   :  { %4430 = vmatpush3.bf16.msra.mxu1 %v4921_v23  ;;  %v4949_v23 = vld [vmem:[%s6125_s4 + $0x60] ss:$16 sps:$4 sm:$0xff]  }
 0x2bb   :  { %4450 = vmatpush3.bf16.msra.mxu0 %v4922_v55  ;;  %4431 = vmatprep.subr.bf16.mxu1 %v4923_v56 }
 0x2bc   :  { %4451 = vmatprep.subr.bf16.mxu0 %v4924_v57 }
 0x2be   :  { %4432 = vmatpush3.bf16.msra.mxu1 %v4923_v56 }
 0x2bf   :  { %4452 = vmatpush3.bf16.msra.mxu0 %v4924_v57  ;;  %4433 = vmatprep.subr.bf16.mxu1 %v4925_v58 }
 0x2c0   :  { %4453 = vmatprep.subr.bf16.mxu0 %v4926_v59 }
 0x2c2   :  { %4434 = vmatpush3.bf16.msra.mxu1 %v4925_v58 }
 0x2c3   :  { %4454 = vmatpush3.bf16.msra.mxu0 %v4926_v59  ;;  %4435 = vmatprep.subr.bf16.mxu1 %v4927_v60 }
 0x2c4   :  { %4455 = vmatprep.subr.bf16.mxu0 %v4928_v61 }
 0x2c6   :  { %4436 = vmatpush3.bf16.msra.mxu1 %v4927_v60 }
 0x2c7   :  { %4456 = vmatpush3.bf16.msra.mxu0 %v4928_v61 }
 0x2c9   :  { %4438 = vmatmul.mubr.bf16.vlgmr.msra.gmra.mxu1 %v5241_v15  ;;  %v4199_v8 = vpop.f32.mrf.mxu1  ;;  %v4219_v9 = vpop.f32.mrf.mxu0 }
 0x2ca   :  { %4458 = vmatmul.mubr.bf16.vlgmr.msra.gmra.mxu0 %v5241_v15  ;;  %2346 = vmatprep.mubr.bf16.mxu1 %v4931_v47  ;;  %v4952_v47 = vld [vmem:[%s6125_s4 + $0x68] ss:$16 sps:$4 sm:$0xff]  }
 0x2cb   :  { %v693_v10 = vpop.f32.mrf.mxu1  ;;  %v809_v11 = vpop.f32.mrf.mxu0  ;;  %2411 = vmatprep.mubr.bf16.mxu0 %v4934_v49 }
 0x2cd   :  { %v4200_v12 = vpop.f32.mrf.mxu1  ;;  %v4220_v13 = vpop.f32.mrf.mxu0 }
 0x2ce   :  { %v825_v28 = vpack.c.bf16 %v4220_v13, %v4219_v9  ;;  %v709_v36 = vpack.c.bf16 %v4200_v12, %v4199_v8 }
 0x2cf   :  { %v696_v14 = vpop.f32.mrf.mxu1  ;;  %v812_v31 = vpop.f32.mrf.mxu0 }
 0x2d0   :  { %v824_v33 = vpack.c.bf16 %v812_v31, %v809_v11  ;;  %v708_v38 = vpack.c.bf16 %v696_v14, %v693_v10 }
 0x2e9   :  { %v4239_v45 = vpop.f32.mrf.mxu1 }
 0x2ea   :  { %v4259_v16 = vpop.f32.mrf.mxu0 }
 0x2eb   :  { %v925_v15 = vpop.f32.mrf.mxu1 }
 0x2ec   :  { %v1041_v17 = vpop.f32.mrf.mxu0 }
 0x2ed   :  { %v4240_v4 = vpop.f32.mrf.mxu1 }
 0x2ee   :  { %v4260_v5 = vpop.f32.mrf.mxu0  ;;  %v941_v43 = vpack.c.bf16 %v4240_v4, %v4239_v45 }
 0x2ef   :  { %v928_v18 = vpop.f32.mrf.mxu1  ;;  %v1057_v39 = vpack.c.bf16 %v4260_v5, %v4259_v16 }
 0x2f0   :  { %v1044_v19 = vpop.f32.mrf.mxu0  ;;  %v940_v46 = vpack.c.bf16 %v928_v18, %v925_v15 }
 0x2f1   :  { %v1056_v41 = vpack.c.bf16 %v1044_v19, %v1041_v17 }
 0x309   :  { %v4279_v20 = vpop.f32.mrf.mxu1 }
 0x30a   :  { %v4299_v21 = vpop.f32.mrf.mxu0 }
 0x30b   :  { %v1157_v24 = vpop.f32.mrf.mxu1 }
 0x30c   :  { %v1273_v22 = vpop.f32.mrf.mxu0 }
 0x30d   :  { %v4280_v32 = vpop.f32.mrf.mxu1 }
 0x30e   :  { %v4300_v25 = vpop.f32.mrf.mxu0  ;;  %v1173_v34 = vpack.c.bf16 %v4280_v32, %v4279_v20 }
 0x30f   :  { %v1289_v27 = vpack.c.bf16 %v4300_v25, %v4299_v21  ;;  %v1160_v35 = vpop.f32.mrf.mxu1 }
 0x310   :  { %v1276_v29 = vpop.f32.mrf.mxu0  ;;  %v1172_v37 = vpack.c.bf16 %v1160_v35, %v1157_v24 }
 0x311   :  { %v1288_v30 = vpack.c.bf16 %v1276_v29, %v1273_v22  ;;  %3973 = vmatprep.subr.bf16.mxu1 %v1289_v27 }
 0x312   :  { %3974 = vmatpush3.bf16.msra.mxu1 %v825_v28 }
 0x313   :  { %3975 = vmatprep.subr.bf16.mxu1 %v1288_v30 }
 0x316   :  { %3976 = vmatpush3.bf16.msra.mxu1 %v824_v33 }
 0x317   :  { %3977 = vmatprep.subr.bf16.mxu1 %v1173_v34 }
 0x31a   :  { %3978 = vmatpush3.bf16.msra.mxu1 %v709_v36 }
 0x31b   :  { %3979 = vmatprep.subr.bf16.mxu1 %v1172_v37 }
 0x31e   :  { %3980 = vmatpush3.bf16.msra.mxu1 %v708_v38 }
 0x31f   :  { %3981 = vmatprep.subr.bf16.mxu1 %v1057_v39 }
 0x322   :  { %3982 = vmatpush3.bf16.msra.mxu1 %v593_v40  ;;  %v4932_v40 = vld [vmem:[%s6125_s4 + $0x8] ss:$16 sps:$4 sm:$0xff]  }
 0x323   :  { %3983 = vmatprep.subr.bf16.mxu1 %v1056_v41  ;;  %v4938_v41 = vld [vmem:[%s6125_s4 + $0x2c] ss:$16 sps:$4 sm:$0xff]  }
 0x326   :  { %3984 = vmatpush3.bf16.msra.mxu1 %v592_v42  ;;  %v4940_v42 = vld [vmem:[%s6125_s4 + $0x28] ss:$16 sps:$4 sm:$0xff]  }
 0x327   :  { %3985 = vmatprep.subr.bf16.mxu1 %v941_v43  ;;  %v4944_v43 = vld [vmem:[%s6125_s4 + $0x4c] ss:$16 sps:$4 sm:$0xff]  }
 0x329   :  { %v4319_v55 = vpop.f32.mrf.mxu1 }
 0x32a   :  { %3986 = vmatpush3.bf16.msra.mxu1 %v477_v44  ;;  %v4339_v56 = vpop.f32.mrf.mxu0  ;;  %v4946_v44 = vld [vmem:[%s6125_s4 + $0x48] ss:$16 sps:$4 sm:$0xff]  }
 0x32b   :  { %3987 = vmatprep.subr.bf16.mxu1 %v940_v46  ;;  %v1389_v57 = vpop.f32.mrf.mxu1  ;;  %v4950_v46 = vld [vmem:[%s6125_s4 + $0x6c] ss:$16 sps:$4 sm:$0xff]   ;;  %s4988_s4 = smov 98  }
 0x32c   :  { %v1505_v58 = vpop.f32.mrf.mxu0 }
 0x32d   :  { %v4320_v59 = vpop.f32.mrf.mxu1 }
 0x32e   :  { %3988 = vmatpush3.bf16.msra.mxu1 %v476_v26  ;;  %v4340_v60 = vpop.f32.mrf.mxu0  ;;  %v1405_v37 = vpack.c.bf16 %v4320_v59, %v4319_v55 }
 0x32f   :  { %v1392_v61 = vpop.f32.mrf.mxu1  ;;  %v1521_v33 = vpack.c.bf16 %v4340_v60, %v4339_v56 }
 0x330   :  { %v1508_v62 = vpop.f32.mrf.mxu0  ;;  %v1404_v39 = vpack.c.bf16 %v1392_v61, %v1389_v57 }
 0x331   :  { %2347 = vmatmul.mubr.bf16.vlgmr.msra.gmra.mxu1 %v4929_v48  ;;  %v1520_v35 = vpack.c.bf16 %v1508_v62, %v1505_v58 }
 0x332   :  { %2354 = vmatprep.mubr.bf16.mxu1 %v4935_v50 }
 0x339   :  { %2355 = vmatmul.mubr.bf16.gmra.mxu1 %v4937_v51 }
 0x33a   :  { %2362 = vmatprep.mubr.bf16.mxu1 %v4941_v52 }
 0x341   :  { %2363 = vmatmul.mubr.bf16.gmra.mxu1 %v4943_v53 }
 0x342   :  { %2370 = vmatprep.mubr.bf16.mxu1 %v4947_v54 }
 0x349   :  { %2371 = vmatmul.mubr.bf16.gmra.mxu1 %v4949_v23  ;;  %v4359_v63 = vpop.f32.mrf.mxu1 }
 0x34a   :  { %v4379_v0 = vpop.f32.mrf.mxu0 }
 0x34b   :  { %v1621_v1 = vpop.f32.mrf.mxu1 }
 0x34c   :  { %v1737_v2 = vpop.f32.mrf.mxu0 }
 0x34d   :  { %v4360_v3 = vpop.f32.mrf.mxu1 }
 0x34e   :  { %v4380_v6 = vpop.f32.mrf.mxu0  ;;  %v1637_v28 = vpack.c.bf16 %v4360_v3, %v4359_v63 }
 0x34f   :  { %v1624_v7 = vpop.f32.mrf.mxu1  ;;  %v1753_v19 = vpack.c.bf16 %v4380_v6, %v4379_v0 }
 0x350   :  { %v1740_v8 = vpop.f32.mrf.mxu0  ;;  %v1636_v30 = vpack.c.bf16 %v1624_v7, %v1621_v1 }
 0x351   :  { %v1752_v24 = vpack.c.bf16 %v1740_v8, %v1737_v2 }
 0x369   :  { %v4399_v9 = vpop.f32.mrf.mxu1 }
 0x36a   :  { %v4419_v10 = vpop.f32.mrf.mxu0 }
 0x36b   :  { %v1853_v11 = vpop.f32.mrf.mxu1 }
 0x36c   :  { %v1969_v12 = vpop.f32.mrf.mxu0 }
 0x36d   :  { %v4400_v13 = vpop.f32.mrf.mxu1 }
 0x36e   :  { %v4420_v14 = vpop.f32.mrf.mxu0  ;;  %v1869_v36 = vpack.c.bf16 %v4400_v13, %v4399_v9 }
 0x36f   :  { %v1856_v31 = vpop.f32.mrf.mxu1  ;;  %v1985_v32 = vpack.c.bf16 %v4420_v14, %v4419_v10 }
 0x370   :  { %v1972_v45 = vpop.f32.mrf.mxu0  ;;  %v1868_v38 = vpack.c.bf16 %v1856_v31, %v1853_v11 }
 0x371   :  { %v1984_v34 = vpack.c.bf16 %v1972_v45, %v1969_v12 }
 0x389   :  { %v4439_v16 = vpop.f32.mrf.mxu1 }
 0x38a   :  { %v4459_v15 = vpop.f32.mrf.mxu0 }
 0x38b   :  { %v2085_v4 = vpop.f32.mrf.mxu1 }
 0x38c   :  { %v2201_v17 = vpop.f32.mrf.mxu0 }
 0x38d   :  { %v4440_v22 = vpop.f32.mrf.mxu1 }
 0x38e   :  { %v4460_v5 = vpop.f32.mrf.mxu0  ;;  %v2101_v25 = vpack.c.bf16 %v4440_v22, %v4439_v16 }
 0x38f   :  { %v2217_v18 = vpack.c.bf16 %v4460_v5, %v4459_v15  ;;  %v2088_v27 = vpop.f32.mrf.mxu1 }
 0x390   :  { %v2204_v20 = vpop.f32.mrf.mxu0  ;;  %v2100_v29 = vpack.c.bf16 %v2088_v27, %v2085_v4 }
 0x391   :  { %v2216_v21 = vpack.c.bf16 %v2204_v20, %v2201_v17  ;;  %4013 = vmatprep.subr.bf16.mxu0 %v2217_v18 }
 0x392   :  { %4014 = vmatpush3.bf16.msra.mxu0 %v1753_v19 }
 0x393   :  { %4015 = vmatprep.subr.bf16.mxu0 %v2216_v21 }
 0x396   :  { %4016 = vmatpush3.bf16.msra.mxu0 %v1752_v24 }
 0x397   :  { %4017 = vmatprep.subr.bf16.mxu0 %v2101_v25 }
 0x39a   :  { %4018 = vmatpush3.bf16.msra.mxu0 %v1637_v28 }
 0x39b   :  { %4019 = vmatprep.subr.bf16.mxu0 %v2100_v29 }
 0x39e   :  { %4020 = vmatpush3.bf16.msra.mxu0 %v1636_v30 }
 0x39f   :  { %4021 = vmatprep.subr.bf16.mxu0 %v1985_v32 }
 0x3a2   :  { %4022 = vmatpush3.bf16.msra.mxu0 %v1521_v33 }
 0x3a3   :  { %4023 = vmatprep.subr.bf16.mxu0 %v1984_v34 }
 0x3a6   :  { %4024 = vmatpush3.bf16.msra.mxu0 %v1520_v35 }
 0x3a7   :  { %4025 = vmatprep.subr.bf16.mxu0 %v1869_v36 }
 0x3aa   :  { %4026 = vmatpush3.bf16.msra.mxu0 %v1405_v37 }
 0x3ab   :  { %4027 = vmatprep.subr.bf16.mxu0 %v1868_v38 }
 0x3ae   :  { %4028 = vmatpush3.bf16.msra.mxu0 %v1404_v39 }
 0x3b1   :  { %2412 = vmatmul.mubr.bf16.vlgmr.msra.gmra.mxu0 %v4932_v40 }
 0x3b2   :  { %2419 = vmatprep.mubr.bf16.mxu0 %v4938_v41 }
 0x3b9   :  { %2420 = vmatmul.mubr.bf16.gmra.mxu0 %v4940_v42 }
 0x3ba   :  { %2427 = vmatprep.mubr.bf16.mxu0 %v4944_v43 }
 0x3c1   :  { %2428 = vmatmul.mubr.bf16.gmra.mxu0 %v4946_v44 }
 0x3c2   :  { %2435 = vmatprep.mubr.bf16.mxu0 %v4950_v46 }
 0x3c9   :  { %2436 = vmatmul.mubr.bf16.gmra.mxu0 %v4952_v47 }
 0x3f1   :  { %v3989_v48 = vpop.f32.mrf.mxu1 }
 0x3f3   :  { %v3990_v26 = vpop.f32.mrf.mxu1 }
 0x3f4   :  { %v3991_v57 = vadd.f32 %v3990_v26, %v3989_v48 }
 0x3f5   :  { %v3992_v49 = vpop.f32.mrf.mxu1 }
 0x3f7   :  { %v3993_v50 = vpop.f32.mrf.mxu1 }
 0x3f8   :  { %v3994_v63 = vadd.f32 %v3993_v50, %v3992_v49 }
 0x3f9   :  { %v3995_v51 = vpop.f32.mrf.mxu1 }
 0x3fb   :  { %v3996_v52 = vpop.f32.mrf.mxu1 }
 0x3fc   :  { %v3997_v7 = vadd.f32 %v3996_v52, %v3995_v51 }
 0x3fd   :  { %v3998_v53 = vpop.f32.mrf.mxu1 }
 0x3ff   :  { %v3999_v54 = vpop.f32.mrf.mxu1 }
 0x400   :  { %v4000_v45 = vadd.f32 %v3999_v54, %v3998_v53 }
 0x401   :  { %v4001_v56 = vpop.f32.mrf.mxu1 }
 0x403   :  { %v4002_v62 = vpop.f32.mrf.mxu1 }
 0x404   :  { %v4003_v22 = vadd.f32 %v4002_v62, %v4001_v56  ;;  %v2634_v62 = vld [vmem:[%s6123_s7 + $0x28] sm:$0xff] }
 0x405   :  { %v4004_v9 = vpop.f32.mrf.mxu1 }
 0x407   :  { %v4005_v15 = vpop.f32.mrf.mxu1 }
 0x408   :  { %v4006_v34 = vadd.f32 %v4005_v15, %v4004_v9  ;;  %v2573_v9 = vld [vmem:[%s6122_s6] sm:$0xff] }
 0x409   :  { %v4007_v20 = vpop.f32.mrf.mxu1 }
 0x40b   :  { %v4008_v32 = vpop.f32.mrf.mxu1 }
 0x40c   :  { %v4009_v43 = vadd.f32 %v4008_v32, %v4007_v20 }
 0x40d   :  { %v4010_v41 = vpop.f32.mrf.mxu1 }
 0x40f   :  { %v4011_v49 = vpop.f32.mrf.mxu1 }
 0x410   :  { %v4012_v53 = vadd.f32 %v4011_v49, %v4010_v41 }
 0x471   :  { %v4029_v23 = vpop.f32.mrf.mxu0 }
 0x473   :  { %v4030_v55 = vpop.f32.mrf.mxu0 }
 0x474   :  { %v4031_v58 = vadd.f32 %v4030_v55, %v4029_v23 }
 0x475   :  { %v4032_v59 = vpop.f32.mrf.mxu0 }
 0x476   :  { %v5656_v60 = vadd.f32 %v4031_v58, %v3991_v57 }
 0x477   :  { %v4033_v61 = vpop.f32.mrf.mxu0 }
 0x478   :  { %v4034_v0 = vadd.f32 %v4033_v61, %v4032_v59  ;;  %v2445_v1 = vsel %vm2444_vm4, %v5656_v60, 0.0  ;;  %v2477_v2 = vmul.f32 %v5656_v60, %v5656_v60  ;;  %v2575_v61 = vld [vmem:[%s6122_s6 + $0x10] sm:$0xff] }
 0x479   :  { %v4035_v3 = vpop.f32.mrf.mxu0  ;;  %2446 = vadd.xlane.f32.xlu0 %v2445_v1  ;;  %v2574_v1 = vld [vmem:[%s6122_s6 + $0x8] sm:$0xff] }
 0x47a   :  { %v5662_v6 = vadd.f32 %v4034_v0, %v3994_v63  ;;  %v2485_v12 = vsel %vm2444_vm4, %v2477_v2, 0.0  ;;  %v2576_v63 = vld [vmem:[%s6122_s6 + $0x18] sm:$0xff]  ;;  %v2630_v2 = vld [vmem:[%s6123_s7 + $0x8] sm:$0xff]  ;;  %s4978_s6 = smov 126  }
 0x47b   :  { %v4036_v8 = vpop.f32.mrf.mxu0  ;;  %v2632_v0 = vld [vmem:[%s6123_s7 + $0x18] sm:$0xff] }
 0x47c   :  { %v4037_v10 = vadd.f32 %v4036_v8, %v4035_v3  ;;  %v2448_v11 = vsel %vm2444_vm4, %v5662_v6, 0.0  ;;  %v2478_v13 = vmul.f32 %v5662_v6, %v5662_v6  ;;  %v2631_v8 = vld [vmem:[%s6123_s7 + $0x10] sm:$0xff] }
 0x47d   :  { %v4038_v14 = vpop.f32.mrf.mxu0  ;;  %2449 = vadd.xlane.f32.xlu1 %v2448_v11  ;;  %2486 = vadd.xlane.f32.xlu0 %v2485_v12  ;;  %v5739_v11 = vpop.permute.xlu1 %2618 }
 0x47e   :  { %v5669_v31 = vadd.f32 %v4037_v10, %v3997_v7  ;;  %v2488_v4 = vsel %vm2444_vm4, %v2478_v13, 0.0  ;;  %v2629_v10 = vld [vmem:[%s6123_s7] sm:$0xff]  ;;  %v5741_v12 = vpop.permute.xlu0 %2613  ;;  %s4979_s7 = smov 122  }
 0x47f   :  { %v4039_v16 = vpop.f32.mrf.mxu0 }
 0x480   :  { %v4040_v17 = vadd.f32 %v4039_v16, %v4038_v14  ;;  %v2451_v5 = vsel %vm2444_vm4, %v5669_v31, 0.0  ;;  %v2479_v18 = vmul.f32 %v5669_v31, %v5669_v31 }
 0x481   :  { %v4041_v19 = vpop.f32.mrf.mxu0  ;;  %2489 = vadd.xlane.f32.xlu1 %v2488_v4  ;;  %2452 = vadd.xlane.f32.xlu0 %v2451_v5  ;;  %v5743_v13 = vpop.permute.xlu1 %2669 }
 0x482   :  { %v5676_v21 = vadd.f32 %v4040_v17, %v4000_v45  ;;  %v2491_v28 = vsel %vm2444_vm4, %v2479_v18, 0.0  ;;  %v5745_v14 = vpop.permute.xlu0 %2674 }
 0x483   :  { %v4042_v24 = vpop.f32.mrf.mxu0 }
 0x484   :  { %v4043_v25 = vadd.f32 %v4042_v24, %v4041_v19  ;;  %v2454_v27 = vsel %vm2444_vm4, %v5676_v21, 0.0  ;;  %v2480_v29 = vmul.f32 %v5676_v21, %v5676_v21 }
 0x485   :  { %v4044_v30 = vpop.f32.mrf.mxu0  ;;  %2455 = vadd.xlane.f32.xlu1 %v2454_v27  ;;  %2492 = vadd.xlane.f32.xlu0 %v2491_v28  ;;  %v2604_v45 = vpop.permute.xlu1 %2603 }
 0x486   :  { %v5683_v33 = vadd.f32 %v4043_v25, %v4003_v22  ;;  %v2494_v37 = vsel %vm2444_vm4, %v2480_v29, 0.0  ;;  %v2609_v16 = vpop.permute.xlu0 %2608 }
 0x487   :  { %v4045_v35 = vpop.f32.mrf.mxu0 }
 0x488   :  { %v4046_v36 = vadd.f32 %v4045_v35, %v4044_v30  ;;  %v2457_v38 = vsel %vm2444_vm4, %v5683_v33, 0.0  ;;  %v2481_v39 = vmul.f32 %v5683_v33, %v5683_v33 }
 0x489   :  { %v4047_v40 = vpop.f32.mrf.mxu0  ;;  %2495 = vadd.xlane.f32.xlu1 %v2494_v37  ;;  %2458 = vadd.xlane.f32.xlu0 %v2457_v38  ;;  %v2660_v15 = vpop.permute.xlu1 %2659 }
 0x48a   :  { %v5690_v42 = vadd.f32 %v4046_v36, %v4006_v34  ;;  %v2497_v48 = vsel %vm2444_vm4, %v2481_v39, 0.0 }
 0x48b   :  { %v4048_v44 = vpop.f32.mrf.mxu0 }
 0x48c   :  { %v4049_v46 = vadd.f32 %v4048_v44, %v4047_v40  ;;  %v2460_v47 = vsel %vm2444_vm4, %v5690_v42, 0.0  ;;  %v2482_v26 = vmul.f32 %v5690_v42, %v5690_v42 }
 0x48d   :  { %v4050_v50 = vpop.f32.mrf.mxu0  ;;  %2461 = vadd.xlane.f32.xlu1 %v2460_v47  ;;  %2498 = vadd.xlane.f32.xlu0 %v2497_v48 }
 0x48e   :  { %v5697_v51 = vadd.f32 %v4049_v46, %v4009_v43  ;;  %v2500_v23 = vsel %vm2444_vm4, %v2482_v26, 0.0 }
 0x48f   :  { %v4051_v52 = vpop.f32.mrf.mxu0 }
 0x490   :  { %v4052_v54 = vadd.f32 %v4051_v52, %v4050_v50  ;;  %v2483_v55 = vmul.f32 %v5697_v51, %v5697_v51  ;;  %v2463_v58 = vsel %vm2444_vm4, %v5697_v51, 0.0 }
 0x491   :  { %2501 = vadd.xlane.f32.xlu1 %v2500_v23 }
 0x492   :  { %v5702_v56 = vadd.f32 %v4052_v54, %v4012_v53  ;;  %v2503_v57 = vsel %vm2444_vm4, %v2483_v55, 0.0 }
 0x493   :  { %2504 = vadd.xlane.f32.xlu0 %v2503_v57 }
 0x494   :  { %v2466_v59 = vsel %vm2444_vm4, %v5702_v56, 0.0  ;;  %v2484_v3 = vmul.f32 %v5702_v56, %v5702_v56 }
 0x495   :  { %2464 = vadd.xlane.f32.xlu1 %v2463_v58 }
 0x496   :  { %v2506_v7 = vsel %vm2444_vm4, %v2484_v3, 0.0 }
 0x497   :  { %2467 = vadd.xlane.f32.xlu0 %v2466_v59 }
 0x4a6   :  { %2593 = vperm.xlu1 %4478, %v2575_v61  }
 0x4ad   :  { %2664 = vperm.xlu0 %4477, %v2634_v62  }
 0x4b1   :  { %2598 = vperm.xlu0 %4477, %v2576_v63  }
 0x4b5   :  { %2654 = vperm.xlu0 %4477, %v2632_v0  }
 0x4b9   :  { %2588 = vperm.xlu0 %4477, %v2574_v1  }
 0x4bd   :  { %2644 = vperm.xlu0 %4477, %v2630_v2  }
 0x4ca   :  { %2507 = vadd.xlane.f32.xlu1 %v2506_v7 }
 0x4db   :  { %2649 = vperm.xlu1 %4478, %v2631_v8  }
 0x4df   :  { %2583 = vperm.xlu1 %4478, %v2573_v9  }
 0x4e3   :  { %2639 = vperm.xlu1 %4478, %v2629_v10  }
 0x502   :  { %v2447_v17 = vpop.xlane.xlu0 %2446 }
 0x503   :  { %v5749_v9 = vmul.f32 0.03125, %v2447_v17 }
 0x506   :  { %v2450_v4 = vpop.xlane.xlu1 %2449  ;;  %v2487_v5 = vpop.xlane.xlu0 %2486 }
 0x507   :  { %v2470_v0 = vmul.f32 0.03125, %v2450_v4  ;;  %v2509_v4 = vmul.f32 0.03125, %v2487_v5 }
 0x509   :  { %v2518_v10 = vmul.f32 %v2470_v0, %v2470_v0 }
 0x50a   :  { %v2490_v18 = vpop.xlane.xlu1 %2489  ;;  %v2453_v19 = vpop.xlane.xlu0 %2452 }
 0x50b   :  { %v2471_v49 = vmul.f32 0.03125, %v2453_v19  ;;  %v2510_v8 = vmul.f32 0.03125, %v2490_v18  ;;  %v2517_v18 = vmul.f32 %v5749_v9, %v5749_v9 }
 0x50d   :  { %v2519_v61 = vmul.f32 %v2471_v49, %v2471_v49 }
 0x50e   :  { %v2456_v20 = vpop.xlane.xlu1 %2455  ;;  %v2493_v22 = vpop.xlane.xlu0 %2492 }
 0x50f   :  { %v2472_v50 = vmul.f32 0.03125, %v2456_v20  ;;  %v2511_v55 = vmul.f32 0.03125, %v2493_v22  ;;  %v2526_v22 = vsub.f32 %v2510_v8, %v2518_v10  ;;  %v2541_v8 = vsub.f32 %v5656_v60, %v5749_v9 }
 0x511   :  { %v2520_v62 = vmul.f32 %v2472_v50, %v2472_v50  ;;  %v2527_v2 = vsub.f32 %v2511_v55, %v2519_v61  ;;  %v2534_v17 = vmax.f32 %v2526_v22, 0.0 }
 0x512   :  { %v2496_v24 = vpop.xlane.xlu1 %2495  ;;  %v2459_v25 = vpop.xlane.xlu0 %2458 }
 0x513   :  { %v2473_v27 = vmul.f32 0.03125, %v2459_v25  ;;  %v2512_v57 = vmul.f32 0.03125, %v2496_v24 }
 0x515   :  { %v2521_v30 = vmul.f32 %v2473_v27, %v2473_v27  ;;  %v2545_v47 = vsub.f32 %v5683_v33, %v2473_v27  ;;  %v2528_v33 = vsub.f32 %v2512_v57, %v2520_v62  ;;  %v2542_v62 = vsub.f32 %v5662_v6, %v2470_v0 }
 0x516   :  { %v2462_v28 = vpop.xlane.xlu1 %2461  ;;  %v2499_v29 = vpop.xlane.xlu0 %2498 }
 0x517   :  { %v2474_v32 = vmul.f32 0.03125, %v2462_v28  ;;  %v2513_v34 = vmul.f32 0.03125, %v2499_v29  ;;  %v2536_v19 = vmax.f32 %v2528_v33, 0.0  ;;  %v2525_v29 = vsub.f32 %v2509_v4, %v2517_v18 }
 0x519   :  { %v2529_v35 = vsub.f32 %v2513_v34, %v2521_v30  ;;  %v2522_v37 = vmul.f32 %v2474_v32, %v2474_v32  ;;  %v2546_v52 = vsub.f32 %v5690_v42, %v2474_v32  ;;  %v2552_v25 = vadd.f32 1e-05, %v2536_v19 }
 0x51a   :  { %v2502_v36 = vpop.xlane.xlu1 %2501  ;;  %v2550_v32 = vadd.f32 1e-05, %v2534_v17  ;;  %v2533_v34 = vmax.f32 %v2525_v29, 0.0 }
 0x51b   :  { %v2537_v38 = vmax.f32 %v2529_v35, 0.0  ;;  %v2514_v39 = vmul.f32 0.03125, %v2502_v36 }
 0x51c   :  { %v2505_v46 = vpop.xlane.xlu0 %2504  ;;  %v2549_v36 = vadd.f32 1e-05, %v2533_v34 }
 0x51d   :  { %v2553_v40 = vadd.f32 1e-05, %v2537_v38  ;;  %v2530_v41 = vsub.f32 %v2514_v39, %v2522_v37  ;;  %v2515_v37 = vmul.f32 0.03125, %v2505_v46 }
 0x51e   :  { %v2465_v27 = vpop.xlane.xlu1 %2464 }
 0x51f   :  { %4961 = vrsqrt.f32 %v2553_v40  ;;  %v2538_v43 = vmax.f32 %v2530_v41, 0.0  ;;  %v5763_v30 = vmul.f32 0.03125, %v2465_v27 }
 0x520   :  { %v2468_v23 = vpop.xlane.xlu0 %2467 }
 0x521   :  { %v2554_v44 = vadd.f32 1e-05, %v2538_v43  ;;  %v2523_v5 = vmul.f32 %v5763_v30, %v5763_v30  ;;  %v2547_v29 = vsub.f32 %v5697_v51, %v5763_v30 }
 0x523   :  { %4963 = vrsqrt.f32 %v2554_v44  ;;  %v2531_v38 = vsub.f32 %v2515_v37, %v2523_v5  ;;  %v2544_v44 = vsub.f32 %v5676_v21, %v2472_v50 }
 0x524   :  { %4965 = vrsqrt.f32 %v2552_v25 }
 0x525   :  { %v2539_v41 = vmax.f32 %v2531_v38, 0.0 }
 0x528   :  { %v2665_v1 = vpop.permute.xlu0 %2664 }
 0x52c   :  { %v4962_v48 = vpop.eup %4961  ;;  %v2599_v35 = vpop.permute.xlu0 %2598 }
 0x52d   :  { %v2569_v26 = vmul.f32 %v4962_v48, %v2545_v47  ;;  %v2594_v47 = vpop.permute.xlu1 %2593  ;;  %v2543_v48 = vsub.f32 %v5669_v31, %v2471_v49 }
 0x52f   :  { %v2625_v53 = vmul.f32 %v2604_v45, %v2569_v26  ;;  %v2535_v45 = vmax.f32 %v2527_v2, 0.0  ;;  %v2476_v26 = vmul.f32 0.03125, %v2468_v23 }
 0x530   :  { %v4964_v54 = vpop.eup %4963  ;;  %v2655_v39 = vpop.permute.xlu0 %2654 }
 0x531   :  { %v2681_v58 = vadd.f32 %v2660_v15, %v2625_v53  ;;  %v2570_v59 = vmul.f32 %v4964_v54, %v2546_v52  ;;  %v2551_v24 = vadd.f32 1e-05, %v2535_v45  ;;  %v4966_v40 = vpop.eup %4965  ;;  %v2555_v53 = vadd.f32 1e-05, %v2539_v41 }
 0x532   :  { %v2568_v52 = vmul.f32 %v4966_v40, %v2544_v44  ;;  %v2524_v46 = vmul.f32 %v2476_v26, %v2476_v26  ;;  %v5879_v44 = vld [vmem:[%s6126_s8] sm:$0xff] }
 0x533   :  { %v2626_v63 = vmul.f32 %v2609_v16, %v2570_v59  ;;  %v2697_v3 = vmul.f32 0.2, %v2681_v58  ;;  %vm2689_vm5 = vcmp.ge.f32.partialorder %v2681_v58, 0.0  ;;  %4967 = vrsqrt.f32 %v2551_v24 }
 0x534   :  { %4969 = vrsqrt.f32 %v2550_v32  ;;  %v2589_v55 = vpop.permute.xlu0 %2588  ;;  %v2624_v57 = vmul.f32 %v2599_v35, %v2568_v52  ;;  %v5897_v52 = vld [vmem:[%s6126_s8 + $0x8] sm:$0xff] }
 0x535   :  { %v2682_v7 = vadd.f32 %v2665_v1, %v2626_v63  ;;  %v5751_v15 = vsel %vm2689_vm5, %v2681_v58, %v2697_v3  ;;  %4971 = vrsqrt.f32 %v2549_v36  ;;  %v2548_v36 = vsub.f32 %v5702_v56, %v2476_v26 }
 0x536   :  { %v2680_v63 = vadd.f32 %v2655_v39, %v2624_v57  ;;  %4973 = vrsqrt.f32 %v2555_v53  ;;  %v5902_v53 = vld [vmem:[%s6126_s8 + $0x28] sm:$0x11] }
 0x537   :  { %vm2690_vm6 = vcmp.ge.f32.partialorder %v2682_v7, 0.0  ;;  %v2698_v42 = vmul.f32 0.2, %v2682_v7 }
 0x538   :  { %v2645_v33 = vpop.permute.xlu0 %2644  ;;  %v2696_v3 = vmul.f32 0.2, %v2680_v63  ;;  %vm2688_vm8 = vcmp.ge.f32.partialorder %v2680_v63, 0.0 }
 0x539   :  { %v5753_v20 = vsel %vm2690_vm6, %v2682_v7, %v2698_v42 }
 0x53a   :  { %v5757_v16 = vpack.i.bf16 %v5753_v20, %v5751_v15  ;;  %v3079_v28 = vpack.c.bf16 %v5753_v20, %v5751_v15  ;;  %v5774_v4 = vsel %vm2688_vm8, %v2680_v63, %v2696_v3 }
 0x540   :  { %v4968_v43 = vpop.eup %4967 }
 0x541   :  { %v2567_v54 = vmul.f32 %v4968_v43, %v2543_v48  ;;  %v4970_v59 = vpop.eup %4969 }
 0x542   :  { %v2566_v21 = vmul.f32 %v4970_v59, %v2542_v62  ;;  %v4972_v23 = vpop.eup %4971  ;;  %v3149_v59 = vld [vmem:[%s6127_s9] sm:$0xff] }
 0x543   :  { %v2623_v1 = vmul.f32 %v2594_v47, %v2567_v54  ;;  %v2565_v19 = vmul.f32 %v4972_v23, %v2541_v8  ;;  %v4974_v27 = vpop.eup %4973  ;;  %v5884_v47 = vld [vmem:[%s6126_s8 + $0x20] sm:$0x11] }
 0x544   :  { %v2622_v7 = vmul.f32 %v2589_v55, %v2566_v21  ;;  %v2571_v35 = vmul.f32 %v4974_v27, %v2547_v29  ;;  %v3778_v26 = vcombine.high %v5879_v44, %v5884_v47  ;;  %v3780_v55 = vcombine.high %v5897_v52, %v5902_v53 }
 0x546   :  { %v2678_v6 = vadd.f32 %v2645_v33, %v2622_v7  ;;  %v2627_v37 = vmul.f32 %v5741_v12, %v2571_v35  ;;  %3233 = vmatprep.mubr.bf16.mxu1 %v3778_v26  ;;  %3274 = vmatprep.mubr.bf16.mxu0 %v3780_v55 }
 0x548   :  { %v2694_v18 = vmul.f32 0.2, %v2678_v6  ;;  %vm2686_vm9 = vcmp.ge.f32.partialorder %v2678_v6, 0.0  ;;  %v2683_v39 = vadd.f32 %v5743_v13, %v2627_v37 }
 0x54a   :  { %v5784_v32 = vsel %vm2686_vm9, %v2678_v6, %v2694_v18  ;;  %v2699_v41 = vmul.f32 0.2, %v2683_v39  ;;  %vm2691_vm12 = vcmp.ge.f32.partialorder %v2683_v39, 0.0 }
 0x54c   :  { %v5817_v13 = vsel %vm2691_vm12, %v2683_v39, %v2699_v41 }
 0x553   :  { %v2508_v58 = vpop.xlane.xlu1 %2507 }
 0x554   :  { %v2516_v61 = vmul.f32 0.03125, %v2508_v58 }
 0x556   :  { %v2532_v2 = vsub.f32 %v2516_v61, %v2524_v46 }
 0x557   :  { %v2650_v50 = vpop.permute.xlu1 %2649 }
 0x558   :  { %v2540_v31 = vmax.f32 %v2532_v2, 0.0  ;;  %v2679_v49 = vadd.f32 %v2650_v50, %v2623_v1 }
 0x55a   :  { %v2556_v42 = vadd.f32 1e-05, %v2540_v31  ;;  %vm2687_vm7 = vcmp.ge.f32.partialorder %v2679_v49, 0.0  ;;  %v2695_v10 = vmul.f32 0.2, %v2679_v49 }
 0x55b   :  { %v2584_v0 = vpop.permute.xlu1 %2583 }
 0x55c   :  { %4975 = vrsqrt.f32 %v2556_v42  ;;  %v5772_v45 = vsel %vm2687_vm7, %v2679_v49, %v2695_v10  ;;  %v2621_v22 = vmul.f32 %v2584_v0, %v2565_v19 }
 0x55d   :  { %v5778_v25 = vpack.i.bf16 %v5774_v4, %v5772_v45  ;;  %v3078_v9 = vpack.c.bf16 %v5774_v4, %v5772_v45 }
 0x55f   :  { %v2640_v24 = vpop.permute.xlu1 %2639 }
 0x560   :  { %v2677_v60 = vadd.f32 %v2640_v24, %v2621_v22 }
 0x562   :  { %vm2685_vm10 = vcmp.ge.f32.partialorder %v2677_v60, 0.0  ;;  %v2693_v17 = vmul.f32 0.2, %v2677_v60 }
 0x564   :  { %v5786_v34 = vsel %vm2685_vm10, %v2677_v60, %v2693_v17 }
 0x565   :  { %v5790_v5 = vpack.i.bf16 %v5784_v32, %v5786_v34  ;;  %v3077_v30 = vpack.c.bf16 %v5784_v32, %v5786_v34 }
 0x567   :  { %4485 = vrot.lane.b32.xlu0 %v5790_v5, %s4978_s6  ;;  %4480 = vrot.lane.b32.xlu1 %v5790_v5, %s4979_s7 }
 0x569   :  { %v4976_v51 = vpop.eup %4975 }
 0x56a   :  { %v2572_v38 = vmul.f32 %v4976_v51, %v2548_v36 }
 0x56b   :  { %4495 = vrot.lane.b32.xlu0 %v5790_v5, %s4980_s11  ;;  %4490 = vrot.lane.b32.xlu1 %v5790_v5, %s4981_s5 }
 0x56c   :  { %v2628_v56 = vmul.f32 %v5739_v11, %v2572_v38 }
 0x56e   :  { %v2684_v40 = vadd.f32 %v5745_v14, %v2628_v56 }
 0x56f   :  { %4500 = vrot.lane.b32.xlu0 %v5790_v5, %s4982_s12  ;;  %4505 = vrot.lane.b32.xlu1 %v5790_v5, %s4983_s0 }
 0x570   :  { %v2700_v12 = vmul.f32 0.2, %v2684_v40  ;;  %vm2692_vm11 = vcmp.ge.f32.partialorder %v2684_v40, 0.0 }
 0x572   :  { %v5815_v11 = vsel %vm2692_vm11, %v2684_v40, %v2700_v12 }
 0x573   :  { %4510 = vrot.lane.b32.xlu0 %v5790_v5, %s4984_s1  ;;  %4515 = vrot.lane.b32.xlu1 %v5778_v25, %s4979_s7  ;;  %v3080_v14 = vpack.c.bf16 %v5815_v11, %v5817_v13  ;;  %v4614_v43 = vpack.i.bf16 %v5815_v11, %v5817_v13 }
 0x577   :  { %4520 = vrot.lane.b32.xlu0 %v5778_v25, %s4978_s6  ;;  %4525 = vrot.lane.b32.xlu1 %v5778_v25, %s4981_s5 }
 0x57b   :  { %4530 = vrot.lane.b32.xlu0 %v5778_v25, %s4980_s11  ;;  %4535 = vrot.lane.b32.xlu1 %v5778_v25, %s4982_s12 }
 0x57f   :  { %4540 = vrot.lane.b32.xlu0 %v5778_v25, %s4983_s0  ;;  %4545 = vrot.lane.b32.xlu1 %v5778_v25, %s4984_s1 }
 0x583   :  { %4560 = vrot.lane.b32.xlu0 %v5757_v16, %s4978_s6  ;;  %4550 = vrot.lane.b32.xlu1 %v5778_v25, %s4985_s13 }
 0x587   :  { %4570 = vrot.lane.b32.xlu0 %v5757_v16, %s4980_s11  ;;  %4555 = vrot.lane.b32.xlu1 %v5757_v16, %s4979_s7 }
 0x58b   :  { %4575 = vrot.lane.b32.xlu0 %v5757_v16, %s4982_s12  ;;  %4565 = vrot.lane.b32.xlu1 %v5757_v16, %s4981_s5 }
 0x58f   :  { %4585 = vrot.lane.b32.xlu0 %v5757_v16, %s4984_s1  ;;  %4580 = vrot.lane.b32.xlu1 %v5757_v16, %s4983_s0 }
 0x593   :  { %4595 = vrot.lane.b32.xlu0 %v5757_v16, %s4986_s14  ;;  %4590 = vrot.lane.b32.xlu1 %v5757_v16, %s4985_s13 }
 0x597   :  { %4605 = vrot.lane.b32.xlu0 %v5757_v16, %s4987_s15  ;;  %4600 = vrot.lane.b32.xlu1 %v5757_v16, %s4988_s4 }
 0x59b   :  { %4615 = vrot.lane.b32.xlu0 %v4614_v43, %s4978_s6  ;;  %4610 = vrot.lane.b32.xlu1 %v4614_v43, %s4979_s7 }
 0x59f   :  { %4625 = vrot.lane.b32.xlu0 %v4614_v43, %s4980_s11  ;;  %4620 = vrot.lane.b32.xlu1 %v4614_v43, %s4981_s5 }
 0x5a3   :  { %4630 = vrot.lane.b32.xlu0 %v5778_v25, %s4986_s14  ;;  %4635 = vrot.lane.b32.xlu1 %v5778_v25, %s4988_s4 }
 0x5a7   :  { %4640 = vrot.lane.b32.xlu0 %v5778_v25, %s4987_s15  ;;  %4645 = vrot.lane.b32.xlu1 %v5790_v5, %s4985_s13 }
 0x5ab   :  { %4655 = vrot.lane.b32.xlu0 %v4614_v43, %s4983_s0  ;;  %4650 = vrot.lane.b32.xlu1 %v4614_v43, %s4982_s12 }
 0x5af   :  { %4660 = vrot.lane.b32.xlu0 %v5790_v5, %s4986_s14  ;;  %4665 = vrot.lane.b32.xlu1 %v4614_v43, %s4984_s1 }
 0x5b3   :  { %4675 = vrot.lane.b32.xlu0 %v5790_v5, %s4987_s15  ;;  %4670 = vrot.lane.b32.xlu1 %v5790_v5, %s4988_s4 }
 0x5b7   :  { %4685 = vrot.lane.b32.xlu0 %v5757_v16, %s4989_s23  ;;  %4680 = vrot.lane.b32.xlu1 %v5757_v16, %s4990_s24 }
 0x5bb   :  { %4695 = vrot.lane.b32.xlu0 %v4614_v43, %s4986_s14  ;;  %4690 = vrot.lane.b32.xlu1 %v4614_v43, %s4985_s13 }
 0x5bf   :  { %4710 = vrot.lane.b32.xlu0 %v4614_v43, %s4987_s15  ;;  %4700 = vrot.lane.b32.xlu1 %v4614_v43, %s4988_s4 }
 0x5c3   :  { %4715 = vrot.lane.b32.xlu0 %v5757_v16, %s4991_s25  ;;  %4705 = vrot.lane.b32.xlu1 %v5757_v16, %s4992_s26  ;;  %v3150_v16 = vld [vmem:[%s6127_s9 + $0x8] sm:$0x3] }
 0x5c7   :  { %4725 = vrot.lane.b32.xlu0 %v5778_v25, %s4989_s23  ;;  %4720 = vrot.lane.b32.xlu1 %v5778_v25, %s4990_s24 }
 0x5cb   :  { %4735 = vrot.lane.b32.xlu0 %v4614_v43, %s4989_s23  ;;  %4730 = vrot.lane.b32.xlu1 %v4614_v43, %s4990_s24 }
 0x5cf   :  { %4750 = vrot.lane.b32.xlu0 %v4614_v43, %s4991_s25  ;;  %4740 = vrot.lane.b32.xlu1 %v4614_v43, %s4992_s26 }
 0x5d3   :  { %4755 = vrot.lane.b32.xlu0 %v5778_v25, %s4991_s25  ;;  %4745 = vrot.lane.b32.xlu1 %v5778_v25, %s4992_s26 }
 0x5d7   :  { %4765 = vrot.lane.b32.xlu0 %v5790_v5, %s4989_s23  ;;  %4760 = vrot.lane.b32.xlu1 %v5790_v5, %s4990_s24 }
 0x5d9   :  { %v5922_v57 = vpop.permute.xlu0 %4485  ;;  %v5924_v58 = vpop.permute.xlu1 %4480 }
 0x5db   :  { %4775 = vrot.lane.b32.xlu0 %v5790_v5, %s4991_s25  ;;  %4770 = vrot.lane.b32.xlu1 %v5790_v5, %s4992_s26 }
 0x5dd   :  { %v5934_v46 = vpop.permute.xlu0 %4495  ;;  %v5936_v61 = vpop.permute.xlu1 %4490 }
 0x5df   :  { %3158 = vperm.xlu0 %4477, %v3150_v16   ;;  %3153 = vperm.xlu1 %4478, %v3149_v59  }
 0x5e1   :  { %v5938_v62 = vpop.permute.xlu0 %4500  ;;  %v5940_v63 = vpop.permute.xlu1 %4505 }
 0x5e5   :  { %v5942_v1 = vpop.permute.xlu0 %4510  ;;  %v4516_v2 = vpop.permute.xlu1 %4515 }
 0x5e6   :  { %v4518_v37 = vunpack.i.h.bf16 %v4516_v2  ;;  %v4517_v38 = vunpack.i.l.bf16 %v4516_v2  ;;  %v4513_v15 = vunpack.i.h.bf16 %v5942_v1  ;;  %v4512_v20 = vunpack.i.l.bf16 %v5942_v1 }
 0x5e9   :  { %v5944_v21 = vpop.permute.xlu0 %4520  ;;  %v5946_v50 = vpop.permute.xlu1 %4525 }
 0x5ea   :  { %v4523_v2 = vunpack.i.h.bf16 %v5944_v21 }
 0x5ed   :  { %v5948_v33 = vpop.permute.xlu0 %4530  ;;  %v5950_v31 = vpop.permute.xlu1 %4535 }
 0x5f1   :  { %v5952_v49 = vpop.permute.xlu0 %4540  ;;  %v5954_v23 = vpop.permute.xlu1 %4545 }
 0x5f2   :  { %v4543_v11 = vunpack.i.h.bf16 %v5952_v49  ;;  %v4542_v13 = vunpack.i.l.bf16 %v5952_v49 }
 0x5f5   :  { %v4561_v3 = vpop.permute.xlu0 %4560  ;;  %v5956_v7 = vpop.permute.xlu1 %4550 }
 0x5f6   :  { %v4563_v56 = vunpack.i.h.bf16 %v4561_v3  ;;  %v4562_v12 = vunpack.i.l.bf16 %v4561_v3  ;;  %v4522_v3 = vunpack.i.l.bf16 %v5944_v21  ;;  %v4493_v21 = vunpack.i.h.bf16 %v5936_v61 }
 0x5f9   :  { %v5958_v8 = vpop.permute.xlu0 %4570  ;;  %v4556_v42 = vpop.permute.xlu1 %4555 }
 0x5fa   :  { %v4558_v60 = vunpack.i.h.bf16 %v4556_v42  ;;  %v4557_v17 = vunpack.i.l.bf16 %v4556_v42 }
 0x5fc   :  { %v3091_v41 = vpack.c.bf16 %v4558_v60, %v4557_v17  ;;  %v4573_v60 = vunpack.i.h.bf16 %v5958_v8  ;;  %v4572_v17 = vunpack.i.l.bf16 %v5958_v8  ;;  %v4492_v8 = vunpack.i.l.bf16 %v5936_v61 }
 0x5fd   :  { %v5960_v10 = vpop.permute.xlu0 %4575  ;;  %v4566_v6 = vpop.permute.xlu1 %4565  ;;  %v4497_v61 = vunpack.i.l.bf16 %v5934_v46 }
 0x5fe   :  { %v4568_v43 = vunpack.i.h.bf16 %v4566_v6  ;;  %v4567_v26 = vunpack.i.l.bf16 %v4566_v6  ;;  %v3083_v6 = vpack.c.bf16 %v4563_v56, %v4562_v12  ;;  %v3082_v56 = vpack.c.bf16 %v4523_v2, %v4522_v3 }
 0x5ff   :  { %v4577_v2 = vunpack.i.l.bf16 %v5960_v10 }
 0x601   :  { %v5962_v0 = vpop.permute.xlu0 %4585  ;;  %v5964_v19 = vpop.permute.xlu1 %4580 }
 0x605   :  { %v5966_v22 = vpop.permute.xlu0 %4595  ;;  %v5968_v18 = vpop.permute.xlu1 %4590 }
 0x606   :  { %v4593_v1 = vunpack.i.h.bf16 %v5968_v18  ;;  %v4592_v45 = vunpack.i.l.bf16 %v5968_v18  ;;  %v4598_v18 = vunpack.i.h.bf16 %v5966_v22 }
 0x609   :  { %v5970_v24 = vpop.permute.xlu0 %4605  ;;  %v5972_v25 = vpop.permute.xlu1 %4600 }
 0x60d   :  { %v4616_v27 = vpop.permute.xlu0 %4615  ;;  %v4611_v29 = vpop.permute.xlu1 %4610 }
 0x60e   :  { %v4618_v5 = vunpack.i.h.bf16 %v4616_v27  ;;  %v4617_v35 = vunpack.i.l.bf16 %v4616_v27  ;;  %v4613_v36 = vunpack.i.h.bf16 %v4611_v29  ;;  %v4612_v51 = vunpack.i.l.bf16 %v4611_v29 }
 0x60f   :  { %v4483_v27 = vunpack.i.h.bf16 %v5924_v58  ;;  %v4482_v29 = vunpack.i.l.bf16 %v5924_v58  ;;  %v4527_v58 = vunpack.i.l.bf16 %v5946_v50 }
 0x610   :  { %v3084_v39 = vpack.c.bf16 %v4618_v5, %v4617_v35  ;;  %v3092_v40 = vpack.c.bf16 %v4613_v36, %v4612_v51 }
 0x611   :  { %v4626_v55 = vpop.permute.xlu0 %4625  ;;  %v4621_v16 = vpop.permute.xlu1 %4620 }
 0x612   :  { %v4628_v59 = vunpack.i.h.bf16 %v4626_v55  ;;  %v4627_v54 = vunpack.i.l.bf16 %v4626_v55  ;;  %v4623_v42 = vunpack.i.h.bf16 %v4621_v16  ;;  %v4622_v48 = vunpack.i.l.bf16 %v4621_v16  ;;  %4053 = vmatprep.subr.bf16.mxu1 %v3092_v40 }
 0x613   :  { %4054 = vmatpush3.bf16.msra.mxu1 %v3084_v39  ;;  %v3090_v40 = vpack.c.bf16 %v4518_v37, %v4517_v38  ;;  %v4528_v39 = vunpack.i.h.bf16 %v5946_v50  ;;  %v3107_v55 = vpack.c.bf16 %v4568_v43, %v4567_v26  ;;  %v4533_v37 = vunpack.i.h.bf16 %v5948_v33 }
 0x614   :  { %v3100_v5 = vpack.c.bf16 %v4628_v59, %v4627_v54  ;;  %v3108_v35 = vpack.c.bf16 %v4623_v42, %v4622_v48  ;;  %4055 = vmatprep.subr.bf16.mxu1 %v3091_v41  ;;  %v4488_v48 = vunpack.i.h.bf16 %v5922_v57  ;;  %v4487_v54 = vunpack.i.l.bf16 %v5922_v57 }
 0x615   :  { %v5980_v36 = vpop.permute.xlu0 %4630  ;;  %v5982_v51 = vpop.permute.xlu1 %4635  ;;  %v4532_v38 = vunpack.i.l.bf16 %v5948_v33  ;;  %v3099_v50 = vpack.c.bf16 %v4573_v60, %v4572_v17  ;;  %v3089_v43 = vpack.c.bf16 %v4483_v27, %v4482_v29  ;;  %v3106_v26 = vpack.c.bf16 %v4528_v39, %v4527_v58 }
 0x616   :  { %4075 = vmatprep.subr.bf16.mxu0 %v3108_v35  ;;  %v3081_v57 = vpack.c.bf16 %v4488_v48, %v4487_v54  ;;  %v4498_v16 = vunpack.i.h.bf16 %v5934_v46  ;;  %v3105_v59 = vpack.c.bf16 %v4493_v21, %v4492_v8  ;;  %v4578_v33 = vunpack.i.h.bf16 %v5960_v10 }
 0x617   :  { %4056 = vmatpush3.bf16.msra.mxu1 %v3083_v6  ;;  %4076 = vmatpush3.bf16.msra.mxu0 %v3100_v5  ;;  %v3098_v42 = vpack.c.bf16 %v4533_v37, %v4532_v38  ;;  %v4538_v46 = vunpack.i.h.bf16 %v5950_v31  ;;  %v4583_v58 = vunpack.i.h.bf16 %v5964_v19  ;;  %v4582_v48 = vunpack.i.l.bf16 %v5964_v19 }
 0x618   :  { %4057 = vmatprep.subr.bf16.mxu1 %v3090_v40  ;;  %4077 = vmatprep.subr.bf16.mxu0 %v3107_v55  ;;  %v3097_v60 = vpack.c.bf16 %v4498_v16, %v4497_v61  ;;  %v4537_v40 = vunpack.i.l.bf16 %v5950_v31  ;;  %v3087_v39 = vpack.c.bf16 %v4578_v33, %v4577_v2  ;;  %v4503_v31 = vunpack.i.h.bf16 %v5938_v62 }
 0x619   :  { %v5992_v12 = vpop.permute.xlu0 %4640  ;;  %v5994_v41 = vpop.permute.xlu1 %4645  ;;  %v4502_v37 = vunpack.i.l.bf16 %v5938_v62  ;;  %v4588_v38 = vunpack.i.h.bf16 %v5962_v0  ;;  %v4587_v19 = vunpack.i.l.bf16 %v5962_v0  ;;  %v4508_v62 = vunpack.i.h.bf16 %v5940_v63 }
 0x61a   :  { %v4507_v0 = vunpack.i.l.bf16 %v5940_v63  ;;  %v4547_v16 = vunpack.i.l.bf16 %v5954_v23  ;;  %v3102_v33 = vpack.c.bf16 %v4543_v11, %v4542_v13  ;;  %v6043_v63 = vld [vmem:[%s6126_s8 + $0x30] sm:$0x11] }
 0x61b   :  { %4058 = vmatpush3.bf16.msra.mxu1 %v3082_v56  ;;  %4078 = vmatpush3.bf16.msra.mxu0 %v3099_v50  ;;  %v3095_v61 = vpack.c.bf16 %v4588_v38, %v4587_v19 }
 0x61c   :  { %4059 = vmatprep.subr.bf16.mxu1 %v3089_v43  ;;  %4079 = vmatprep.subr.bf16.mxu0 %v3106_v26  ;;  %v3086_v26 = vpack.c.bf16 %v4538_v46, %v4537_v40 }
 0x61d   :  { %v4656_v5 = vpop.permute.xlu0 %4655  ;;  %v4651_v35 = vpop.permute.xlu1 %4650 }
 0x61e   :  { %v4658_v3 = vunpack.i.h.bf16 %v4656_v5  ;;  %v4657_v27 = vunpack.i.l.bf16 %v4656_v5  ;;  %v4653_v29 = vunpack.i.h.bf16 %v4651_v35  ;;  %v4652_v6 = vunpack.i.l.bf16 %v4651_v35 }
 0x61f   :  { %4060 = vmatpush3.bf16.msra.mxu1 %v3081_v57  ;;  %4080 = vmatpush3.bf16.msra.mxu0 %v3098_v42  ;;  %v4548_v57 = vunpack.i.h.bf16 %v5954_v23  ;;  %v3085_v42 = vpack.c.bf16 %v4503_v31, %v4502_v37  ;;  %v3101_v23 = vpack.c.bf16 %v4508_v62, %v4507_v0  ;;  %v4607_v31 = vunpack.i.l.bf16 %v5970_v24 }
 0x620   :  { %v3088_v17 = vpack.c.bf16 %v4653_v29, %v4652_v6  ;;  %4081 = vmatprep.subr.bf16.mxu0 %v3105_v59  ;;  %v3104_v54 = vpack.c.bf16 %v4658_v3, %v4657_v27  ;;  %v3093_v29 = vpack.c.bf16 %v4513_v15, %v4512_v20  ;;  %v4553_v6 = vunpack.i.h.bf16 %v5956_v7 }
 0x621   :  { %v6003_v55 = vpop.permute.xlu0 %4660  ;;  %v4666_v10 = vpop.permute.xlu1 %4665  ;;  %v3094_v2 = vpack.c.bf16 %v4548_v57, %v4547_v16  ;;  %v4638_v62 = vunpack.i.h.bf16 %v5982_v51  ;;  %v4637_v0 = vunpack.i.l.bf16 %v5982_v51  ;;  %v4647_v57 = vunpack.i.l.bf16 %v5994_v41 }
 0x622   :  { %v4668_v21 = vunpack.i.h.bf16 %v4666_v10  ;;  %v4667_v8 = vunpack.i.l.bf16 %v4666_v10  ;;  %4061 = vmatprep.subr.bf16.mxu1 %v3088_v17  ;;  %v4552_v17 = vunpack.i.l.bf16 %v5956_v7  ;;  %v4603_v10 = vunpack.i.h.bf16 %v5972_v25 }
 0x623   :  { %4062 = vmatpush3.bf16.msra.mxu1 %v3080_v14  ;;  %4082 = vmatpush3.bf16.msra.mxu0 %v3097_v60  ;;  %v3103_v14 = vpack.c.bf16 %v4583_v58, %v4582_v48  ;;  %v3123_v58 = vpack.c.bf16 %v4593_v1, %v4592_v45  ;;  %v4602_v48 = vunpack.i.l.bf16 %v5972_v25  ;;  %v6129_v7 = vcombine.low %v5879_v44, %v5884_v47  ;;  %v6069_v25 = vld [vmem:[%s6126_s8 + $0x38] sm:$0x11] }
 0x624   :  { %v3096_v56 = vpack.c.bf16 %v4668_v21, %v4667_v8  ;;  %4063 = vmatprep.subr.bf16.mxu1 %v3087_v39  ;;  %4083 = vmatprep.subr.bf16.mxu0 %v3104_v54  ;;  %v4597_v39 = vunpack.i.l.bf16 %v5966_v22  ;;  %v6064_v22 = vld [vmem:[%s6126_s8 + $0x18] sm:$0xff]  ;;  %v4633_v44 = vunpack.i.h.bf16 %v5980_v36  ;;  %v4632_v47 = vunpack.i.l.bf16 %v5980_v36 }
 0x625   :  { %v6013_v50 = vpop.permute.xlu0 %4675  ;;  %v6015_v43 = vpop.permute.xlu1 %4670  ;;  %v3122_v19 = vpack.c.bf16 %v4553_v6, %v4552_v17  ;;  %v3139_v11 = vpack.c.bf16 %v4603_v10, %v4602_v48  ;;  %v4648_v36 = vunpack.i.h.bf16 %v5994_v41  ;;  %v6130_v16 = vcombine.low %v5897_v52, %v5902_v53 }
 0x626   :  { %v4642_v15 = vunpack.i.l.bf16 %v5992_v12  ;;  %v4663_v51 = vunpack.i.h.bf16 %v6003_v55  ;;  %v4662_v20 = vunpack.i.l.bf16 %v6003_v55  ;;  %v4673_v41 = vunpack.i.h.bf16 %v6015_v43 }
 0x627   :  { %4064 = vmatpush3.bf16.msra.mxu1 %v3079_v28  ;;  %4084 = vmatpush3.bf16.msra.mxu0 %v3096_v56  ;;  %v6038_v28 = vld [vmem:[%s6126_s8 + $0x10] sm:$0xff]  ;;  %v4608_v56 = vunpack.i.h.bf16 %v5970_v24  ;;  %v3784_v24 = vcombine.high %v6064_v22, %v6069_v25  ;;  %v4672_v52 = vunpack.i.l.bf16 %v6015_v43  ;;  %v3121_v1 = vpack.c.bf16 %v4648_v36, %v4647_v57 }
 0x628   :  { %4065 = vmatprep.subr.bf16.mxu1 %v3086_v26  ;;  %4085 = vmatprep.subr.bf16.mxu0 %v3103_v14  ;;  %v3782_v60 = vcombine.high %v6038_v28, %v6043_v63  ;;  %v3115_v26 = vpack.c.bf16 %v4598_v18, %v4597_v39  ;;  %v4678_v45 = vunpack.i.h.bf16 %v6013_v50  ;;  %v3113_v43 = vpack.c.bf16 %v4663_v51, %v4662_v20 }
 0x629   :  { %v6026_v59 = vpop.permute.xlu0 %4685  ;;  %v6028_v49 = vpop.permute.xlu1 %4680 }
 0x62a   :  { %v4682_v55 = vunpack.i.l.bf16 %v6028_v49  ;;  %v4687_v18 = vunpack.i.l.bf16 %v6026_v59 }
 0x62b   :  { %4066 = vmatpush3.bf16.msra.mxu1 %v3078_v9  ;;  %4086 = vmatpush3.bf16.msra.mxu0 %v3095_v61  ;;  %v3131_v61 = vpack.c.bf16 %v4608_v56, %v4607_v31 }
 0x62c   :  { %4067 = vmatprep.subr.bf16.mxu1 %v3085_v42  ;;  %4087 = vmatprep.subr.bf16.mxu0 %v3102_v33  ;;  %v3114_v42 = vpack.c.bf16 %v4633_v44, %v4632_v47  ;;  %v4643_v33 = vunpack.i.h.bf16 %v5992_v12  ;;  %v4677_v12 = vunpack.i.l.bf16 %v6013_v50  ;;  %v4688_v50 = vunpack.i.h.bf16 %v6026_v59 }
 0x62d   :  { %v4696_v4 = vpop.permute.xlu0 %4695  ;;  %v4691_v9 = vpop.permute.xlu1 %4690 }
 0x62e   :  { %v4698_v5 = vunpack.i.h.bf16 %v4696_v4  ;;  %v4697_v35 = vunpack.i.l.bf16 %v4696_v4  ;;  %v4693_v3 = vunpack.i.h.bf16 %v4691_v9  ;;  %v4692_v27 = vunpack.i.l.bf16 %v4691_v9 }
 0x62f   :  { %4068 = vmatpush3.bf16.msra.mxu1 %v3077_v30  ;;  %4088 = vmatpush3.bf16.msra.mxu0 %v3094_v2  ;;  %v3138_v2 = vpack.c.bf16 %v4638_v62, %v4637_v0  ;;  %v4683_v4 = vunpack.i.h.bf16 %v6028_v49  ;;  %v3130_v9 = vpack.c.bf16 %v4643_v33, %v4642_v15  ;;  %v3129_v17 = vpack.c.bf16 %v4678_v45, %v4677_v12 }
 0x630   :  { %v3116_v46 = vpack.c.bf16 %v4698_v5, %v4697_v35  ;;  %v3124_v40 = vpack.c.bf16 %v4693_v3, %v4692_v27  ;;  %4089 = vmatprep.subr.bf16.mxu0 %v3101_v23  ;;  %v3137_v5 = vpack.c.bf16 %v4673_v41, %v4672_v52  ;;  %v3111_v44 = vpack.c.bf16 %v4688_v50, %v4687_v18 }
 0x631   :  { %v4711_v32 = vpop.permute.xlu0 %4710  ;;  %v4701_v34 = vpop.permute.xlu1 %4700 }
 0x632   :  { %v4713_v30 = vunpack.i.h.bf16 %v4711_v32  ;;  %v4712_v54 = vunpack.i.l.bf16 %v4711_v32  ;;  %v4703_v21 = vunpack.i.h.bf16 %v4701_v34  ;;  %v4702_v8 = vunpack.i.l.bf16 %v4701_v34  ;;  %3234 = vmatmul.mubr.bf16.vlgmr.msra.gmra.mxu1 %v6129_v7  ;;  %4097 = vmatprep.subr.bf16.mxu1 %v3124_v40 }
 0x633   :  { %4090 = vmatpush3.bf16.msra.mxu0 %v3093_v29  ;;  %4098 = vmatpush3.bf16.msra.mxu1 %v3116_v46  ;;  %v3119_v46 = vpack.c.bf16 %v4683_v4, %v4682_v55 }
 0x634   :  { %v3132_v37 = vpack.c.bf16 %v4713_v30, %v4712_v54  ;;  %v3140_v38 = vpack.c.bf16 %v4703_v21, %v4702_v8  ;;  %4099 = vmatprep.subr.bf16.mxu1 %v3123_v58  ;;  %3315 = vmatprep.mubr.bf16.mxu1 %v3782_v60 }
 0x635   :  { %v6075_v13 = vpop.permute.xlu0 %4715  ;;  %v6077_v14 = vpop.permute.xlu1 %4705 }
 0x636   :  { %3275 = vmatmul.mubr.bf16.vlgmr.msra.gmra.mxu0 %v6130_v16  ;;  %4119 = vmatprep.subr.bf16.mxu0 %v3140_v38  ;;  %v4708_v39 = vunpack.i.h.bf16 %v6077_v14  ;;  %v4707_v58 = vunpack.i.l.bf16 %v6077_v14  ;;  %v4718_v59 = vunpack.i.h.bf16 %v6075_v13  ;;  %v4717_v7 = vunpack.i.l.bf16 %v6075_v13 }
 0x637   :  { %4100 = vmatpush3.bf16.msra.mxu1 %v3115_v26  ;;  %4120 = vmatpush3.bf16.msra.mxu0 %v3132_v37 }
 0x638   :  { %4101 = vmatprep.subr.bf16.mxu1 %v3122_v19  ;;  %4121 = vmatprep.subr.bf16.mxu0 %v3139_v11  ;;  %v3135_v26 = vpack.c.bf16 %v4708_v39, %v4707_v58  ;;  %v3127_v62 = vpack.c.bf16 %v4718_v59, %v4717_v7 }
 0x639   :  { %v6094_v53 = vpop.permute.xlu0 %4725  ;;  %v4721_v23 = vpop.permute.xlu1 %4720  ;;  %3356 = vmatprep.mubr.bf16.mxu0 %v3784_v24 }
 0x63a   :  { %v4723_v10 = vunpack.i.h.bf16 %v4721_v23  ;;  %v4722_v48 = vunpack.i.l.bf16 %v4721_v23  ;;  %v4728_v47 = vunpack.i.h.bf16 %v6094_v53  ;;  %v4727_v37 = vunpack.i.l.bf16 %v6094_v53 }
 0x63b   :  { %4102 = vmatpush3.bf16.msra.mxu1 %v3114_v42  ;;  %4122 = vmatpush3.bf16.msra.mxu0 %v3131_v61 }
 0x63c   :  { %4103 = vmatprep.subr.bf16.mxu1 %v3121_v1  ;;  %4123 = vmatprep.subr.bf16.mxu0 %v3138_v2  ;;  %v3118_v11 = vpack.c.bf16 %v4723_v10, %v4722_v48  ;;  %v3110_v13 = vpack.c.bf16 %v4728_v47, %v4727_v37  ;;  %v3781_v2 = vcombine.low %v6038_v28, %v6043_v63 }
 0x63d   :  { %v4736_v35 = vpop.permute.xlu0 %4735  ;;  %v4731_v3 = vpop.permute.xlu1 %4730 }
 0x63e   :  { %v4738_v27 = vunpack.i.h.bf16 %v4736_v35  ;;  %v4737_v29 = vunpack.i.l.bf16 %v4736_v35  ;;  %v4733_v6 = vunpack.i.h.bf16 %v4731_v3  ;;  %v4732_v60 = vunpack.i.l.bf16 %v4731_v3 }
 0x63f   :  { %4104 = vmatpush3.bf16.msra.mxu1 %v3113_v43  ;;  %4124 = vmatpush3.bf16.msra.mxu0 %v3130_v9  ;;  %v3783_v43 = vcombine.low %v6064_v22, %v6069_v25 }
 0x640   :  { %v3112_v49 = vpack.c.bf16 %v4738_v27, %v4737_v29  ;;  %v3120_v40 = vpack.c.bf16 %v4733_v6, %v4732_v60  ;;  %4125 = vmatprep.subr.bf16.mxu0 %v3137_v5 }
 0x641   :  { %v4751_v32 = vpop.permute.xlu0 %4750  ;;  %v4741_v34 = vpop.permute.xlu1 %4740 }
 0x642   :  { %v4753_v30 = vunpack.i.h.bf16 %v4751_v32  ;;  %v4752_v54 = vunpack.i.l.bf16 %v4751_v32  ;;  %v4743_v21 = vunpack.i.h.bf16 %v4741_v34  ;;  %v4742_v8 = vunpack.i.l.bf16 %v4741_v34  ;;  %4105 = vmatprep.subr.bf16.mxu1 %v3120_v40 }
 0x643   :  { %4106 = vmatpush3.bf16.msra.mxu1 %v3112_v49  ;;  %4126 = vmatpush3.bf16.msra.mxu0 %v3129_v17 }
 0x644   :  { %v3128_v56 = vpack.c.bf16 %v4753_v30, %v4752_v54  ;;  %v3136_v31 = vpack.c.bf16 %v4743_v21, %v4742_v8  ;;  %4107 = vmatprep.subr.bf16.mxu1 %v3119_v46 }
 0x645   :  { %v4756_v38 = vpop.permute.xlu0 %4755  ;;  %v4746_v19 = vpop.permute.xlu1 %4745 }
 0x646   :  { %v4748_v14 = vunpack.i.h.bf16 %v4746_v19  ;;  %v4747_v24 = vunpack.i.l.bf16 %v4746_v19  ;;  %4127 = vmatprep.subr.bf16.mxu0 %v3136_v31  ;;  %v4758_v0 = vunpack.i.h.bf16 %v4756_v38  ;;  %v4757_v36 = vunpack.i.l.bf16 %v4756_v38 }
 0x647   :  { %4108 = vmatpush3.bf16.msra.mxu1 %v3111_v44  ;;  %4128 = vmatpush3.bf16.msra.mxu0 %v3128_v56 }
 0x648   :  { %4109 = vmatprep.subr.bf16.mxu1 %v3118_v11  ;;  %4129 = vmatprep.subr.bf16.mxu0 %v3135_v26  ;;  %v3134_v57 = vpack.c.bf16 %v4748_v14, %v4747_v24  ;;  %v3126_v52 = vpack.c.bf16 %v4758_v0, %v4757_v36 }
 0x649   :  { %v4766_v16 = vpop.permute.xlu0 %4765  ;;  %v4761_v61 = vpop.permute.xlu1 %4760 }
 0x64a   :  { %v4768_v42 = vunpack.i.h.bf16 %v4766_v16  ;;  %v4767_v33 = vunpack.i.l.bf16 %v4766_v16  ;;  %v4763_v15 = vunpack.i.h.bf16 %v4761_v61  ;;  %v4762_v51 = vunpack.i.l.bf16 %v4761_v61 }
 0x64b   :  { %4110 = vmatpush3.bf16.msra.mxu1 %v3110_v13  ;;  %4130 = vmatpush3.bf16.msra.mxu0 %v3127_v62 }
 0x64c   :  { %v3109_v20 = vpack.c.bf16 %v4768_v42, %v4767_v33  ;;  %v3117_v41 = vpack.c.bf16 %v4763_v15, %v4762_v51  ;;  %4131 = vmatprep.subr.bf16.mxu0 %v3134_v57 }
 0x64d   :  { %v4776_v53 = vpop.permute.xlu0 %4775  ;;  %v4771_v23 = vpop.permute.xlu1 %4770 }
 0x64e   :  { %v4778_v1 = vunpack.i.h.bf16 %v4776_v53  ;;  %v4777_v45 = vunpack.i.l.bf16 %v4776_v53  ;;  %v4773_v12 = vunpack.i.h.bf16 %v4771_v23  ;;  %v4772_v4 = vunpack.i.l.bf16 %v4771_v23  ;;  %4111 = vmatprep.subr.bf16.mxu1 %v3117_v41 }
 0x64f   :  { %4112 = vmatpush3.bf16.msra.mxu1 %v3109_v20  ;;  %4132 = vmatpush3.bf16.msra.mxu0 %v3126_v52 }
 0x650   :  { %v3125_v55 = vpack.c.bf16 %v4778_v1, %v4777_v45  ;;  %v3133_v9 = vpack.c.bf16 %v4773_v12, %v4772_v4 }
 0x652   :  { %3316 = vmatmul.mubr.bf16.vlgmr.msra.gmra.mxu1 %v3781_v2  ;;  %4133 = vmatprep.subr.bf16.mxu0 %v3133_v9 }
 0x653   :  { %4134 = vmatpush3.bf16.msra.mxu0 %v3125_v55 }
 0x656   :  { %3357 = vmatmul.mubr.bf16.vlgmr.msra.gmra.mxu0 %v3783_v43 }
 0x65a   :  { %v3154_v17 = vpop.permute.xlu1 %3153  ;;  %v3159_v25 = vpop.permute.xlu0 %3158 }
 0x6f2   :  { %v4069_v5 = vpop.f32.mrf.mxu1 }
 0x6f4   :  { %v4070_v35 = vpop.f32.mrf.mxu1 }
 0x6f5   :  { %v4071_v6 = vadd.f32 %v4070_v35, %v4069_v5 }
 0x6f6   :  { %v4091_v3 = vpop.f32.mrf.mxu0  ;;  %v4072_v28 = vpop.f32.mrf.mxu1 }
 0x6f7   :  { %v3236_v49 = vadd.f32 %v4071_v6, %v3154_v17 }
 0x6f8   :  { %v4092_v63 = vpop.f32.mrf.mxu0  ;;  %v4073_v27 = vpop.f32.mrf.mxu1 }
 0x6f9   :  { %v4093_v50 = vadd.f32 %v4092_v63, %v4091_v3  ;;  %v4074_v40 = vadd.f32 %v4073_v27, %v4072_v28 }
 0x6fa   :  { %v4094_v29 = vpop.f32.mrf.mxu0 }
 0x6fb   :  { %v3277_v10 = vadd.f32 %v4093_v50, %v3236_v49  ;;  %v3239_v30 = vadd.f32 %v4074_v40, %v3159_v25 }
 0x6fc   :  { %v4095_v18 = vpop.f32.mrf.mxu0 }
 0x6fd   :  { %v4096_v48 = vadd.f32 %v4095_v18, %v4094_v29 }
 0x6ff   :  { %v3280_v7 = vadd.f32 %v4096_v48, %v3239_v30 }
 0x712   :  { %v4113_v60 = vpop.f32.mrf.mxu1 }
 0x714   :  { %v4114_v46 = vpop.f32.mrf.mxu1 }
 0x715   :  { %v4115_v39 = vadd.f32 %v4114_v46, %v4113_v60 }
 0x716   :  { %v4116_v58 = vpop.f32.mrf.mxu1  ;;  %v4135_v22 = vpop.f32.mrf.mxu0 }
 0x717   :  { %v3318_v54 = vadd.f32 %v4115_v39, %v3277_v10 }
 0x718   :  { %v4117_v32 = vpop.f32.mrf.mxu1  ;;  %v4136_v34 = vpop.f32.mrf.mxu0 }
 0x719   :  { %v4118_v21 = vadd.f32 %v4117_v32, %v4116_v58  ;;  %v4137_v8 = vadd.f32 %v4136_v34, %v4135_v22 }
 0x71a   :  { %v4138_v59 = vpop.f32.mrf.mxu0 }
 0x71b   :  { %v3359_v56 = vadd.f32 %v4137_v8, %v3318_v54  ;;  %v3321_v44 = vadd.f32 %v4118_v21, %v3280_v7 }
 0x71c   :  { %v4139_v31 = vpop.f32.mrf.mxu0 }
 0x71d   :  { %3366 = vst.msk [vmem:[%s6128_s10] sm:$0xff] %vm3365_vm13, %v3359_v56  ;;  %v4140_v47 = vadd.f32 %v4139_v31, %v4138_v59 }
 0x71f   :  { %v3362_v37 = vadd.f32 %v4140_v47, %v3321_v44 }
 0x721   :  { %3368 = vst.msk [vmem:[%s6128_s10 + $0x8] sm:$0x3] %vm3367_vm14, %v3362_v37 }

</bundles_post_ra>
